<compile_context>
chip_gen: v6e
topology: v6e:2x2x1
jax: 0.10.0
libtpu: 0.0.40
codegen_flags: <defaults>
</compile_context>

<pallas_src>
import functools
import math

import jax
import jax.numpy as jnp
from jax import lax
from jax.experimental import pallas as pl
from jax.experimental.pallas import tpu as pltpu


def _round_up(x, m):
    return (x + m - 1) // m * m


def _vmem_block_bytes(shape, dtype):
    """Approximate VMEM footprint of one buffer (lane/sublane padded)."""
    shape = list(shape)
    if len(shape) >= 1:
        shape[-1] = _round_up(int(shape[-1]), 128)
    if len(shape) >= 2:
        shape[-2] = _round_up(int(shape[-2]), 8)
    n = 1
    for d in shape:
        n *= int(d)
    return n * jnp.dtype(dtype).itemsize


def _equal_conv2d_kernel(x_ref, w_ref, b_ref, o_ref, patch_ref, *pad_scratch,
                         K, Ho, Wo, Cin, H, W, pad, scale, oc_store):
    """One (batch n, OC-tile j) grid cell; always a stride-1 conv.

    x_ref:     (1, H, W, Cin)        bf16 NHWC input slab (unpadded)
    w_ref:     (K*K*Cin, tn)         bf16 raw (unscaled) weight tile
    b_ref:     (1, tn)               f32 bias row for this OC tile
    o_ref:     (1, Ho*Wo, oc_store)  output tile (compute dtype)
    patch_ref: (Ho, Wo, K*K*Cin)     VMEM scratch holding the im2col patches
    pad_scratch: optionally one (H+2p, W+2p, Cin) zero-padded slab scratch
    """
    if pad > 0:
        (xpad_ref,) = pad_scratch
        xpad_ref[...] = jnp.zeros_like(xpad_ref)
        xpad_ref[pad:pad + H, pad:pad + W, :] = x_ref[0]

    # Build the (Ho, Wo, K*K*Cin) patch slab once: K*K cheap shifted-window
    # copies from the resident slab (no per-tap (Ho,Wo) collapse, no per-tap
    # matmul/accumulate).
    for kh in range(K):
        for kw in range(K):
            tap = kh * K + kw
            if pad > 0:
                win = xpad_ref[kh:kh + Ho, kw:kw + Wo, :]
            else:
                win = x_ref[0, kh:kh + Ho, kw:kw + Wo, :]
            patch_ref[:, :, tap * Cin:(tap + 1) * Cin] = win

    # Single MXU matmul with contraction depth K*K*Cin (instead of K*K shallow
    # matmuls of depth Cin), accumulated in f32 and stored exactly once.
    patch = patch_ref[...].reshape(Ho * Wo, K * K * Cin)
    acc = jnp.dot(patch, w_ref[...], preferred_element_type=jnp.float32)

    # Equalized-lr scale applied once on the f32 result, then (unscaled) bias.
    out = acc * scale + b_ref[...]
    if oc_store != out.shape[-1]:
        out = out[:, :oc_store]            # drop padded OC lanes before store
    o_ref[0] = out.astype(o_ref.dtype)


def equal_conv2d(x, weight, bias=None, *, stride=1, padding=0,
                 compute_dtype=jnp.bfloat16, out_dtype=None, oc_tile=None,
                 channels_last_out=False):
    """EqualConv2d forward (PyTorch semantics: conv2d(x, weight*scale) + bias).

    x:      (N, Cin, H, W)   NCHW
    weight: (OC, Cin, K, K)  raw / unscaled (as stored by the module)
    bias:   (OC,) or None
    """
    N, Cin, H, W = x.shape
    OC, Cin_w, K, K2 = weight.shape
    assert Cin == Cin_w and K == K2
    scale = 1.0 / math.sqrt(Cin * K * K)
    out_dtype = compute_dtype if out_dtype is None else out_dtype

    Ho = (H + 2 * padding - K) // stride + 1
    Wo = (W + 2 * padding - K) // stride + 1

    # Layout glue: NCHW -> NHWC + cast (one pass; the zero-pad is folded into
    # the kernel for the stride-1 path, so no extra HBM pad pass).
    x_nhwc = jnp.transpose(x, (0, 2, 3, 1)).astype(compute_dtype)
    w_hwio = jnp.transpose(weight, (2, 3, 1, 0))            # (K, K, Cin, OC)

    if stride == 1:
        Keff, Cin_eff, pad_k = K, Cin, padding
        x_eff, w_eff = x_nhwc, w_hwio
    else:
        # Space-to-depth (pixel unshuffle): a stride-s conv becomes a stride-1
        # conv with kernel ceil(K/s) and s*s*Cin input channels; the kernel
        # never does strided sublane gathers and the MXU contraction deepens.
        s = stride
        Hp, Wp = H + 2 * padding, W + 2 * padding
        Hs, Ws = -(-Hp // s), -(-Wp // s)
        xp = jnp.pad(x_nhwc, ((0, 0),
                              (padding, padding + Hs * s - Hp),
                              (padding, padding + Ws * s - Wp),
                              (0, 0)))
        x_eff = xp.reshape(N, Hs, s, Ws, s, Cin)
        x_eff = x_eff.transpose(0, 1, 3, 2, 4, 5).reshape(N, Hs, Ws, s * s * Cin)
        Keff = -(-K // s)
        Cin_eff = s * s * Cin
        pad_k = 0
        wz = jnp.pad(w_hwio, ((0, Keff * s - K), (0, Keff * s - K), (0, 0), (0, 0)))
        w_eff = wz.reshape(Keff, s, Keff, s, Cin, OC)
        w_eff = w_eff.transpose(0, 2, 1, 3, 4, 5).reshape(Keff, Keff, Cin_eff, OC)

    H_eff, W_eff = int(x_eff.shape[1]), int(x_eff.shape[2])
    KKC = Keff * Keff * Cin_eff

    # OC tile: 256 fills v6e/v7x's 256x256 MXU when OC and the contraction are
    # deep enough; otherwise 128 (v5e native width / small-OC layers).
    if oc_tile is None:
        oc_tile = 256 if (OC % 256 == 0 and KKC >= 256) else 128
    tn = oc_tile
    OCp = max(_round_up(OC, tn), tn)
    n_oc = OCp // tn
    # For OC < tn keep the wide compute tile but store only the real OC
    # channels (avoids up-to-16x HBM write amplification for tiny OC).
    oc_store = OC if OC <= tn else tn

    w_kc = w_eff.reshape(KKC, OC)
    if OCp != OC:
        w_kc = jnp.pad(w_kc, ((0, 0), (0, OCp - OC)))
    w_kc = w_kc.astype(compute_dtype)

    b = jnp.zeros((OC,), jnp.float32) if bias is None else bias.astype(jnp.float32)
    b_row = jnp.pad(b, (0, OCp - OC)).reshape(1, OCp)

    kernel = functools.partial(
        _equal_conv2d_kernel, K=Keff, Ho=Ho, Wo=Wo, Cin=Cin_eff,
        H=H_eff, W=W_eff, pad=pad_k, scale=scale, oc_store=oc_store)

    scratch_shapes = [pltpu.VMEM((Ho, Wo, KKC), compute_dtype)]
    if pad_k > 0:
        scratch_shapes.append(
            pltpu.VMEM((H_eff + 2 * pad_k, W_eff + 2 * pad_k, Cin_eff), compute_dtype))

    # ---- generation-aware VMEM budget (padded, double-buffered working set) ----
    x_blk = _vmem_block_bytes((H_eff, W_eff, Cin_eff), compute_dtype)
    w_blk = _vmem_block_bytes((KKC, tn), compute_dtype)
    b_blk = _vmem_block_bytes((1, tn), jnp.float32)
    o_blk = _vmem_block_bytes((Ho * Wo, oc_store), out_dtype)
    patch_blk = _vmem_block_bytes((Ho, Wo, KKC), compute_dtype)
    xpad_blk = (_vmem_block_bytes((H_eff + 2 * pad_k, W_eff + 2 * pad_k, Cin_eff),
                                  compute_dtype) if pad_k > 0 else 0)
    acc_blk = _vmem_block_bytes((Ho * Wo, tn), jnp.float32)
    working = (2 * (x_blk + w_blk + b_blk + o_blk)     # double-buffered pipeline blocks
               + patch_blk + xpad_blk + 2 * acc_blk    # scratch + matmul temporaries
               + (2 << 20))                            # slack
    try:
        vmem_cap = int(pltpu.get_tpu_info().vmem_capacity_bytes)
    except Exception:
        vmem_cap = 64 * 1024 * 1024                    # safe on every generation
    vmem_limit = int(min(max(working, 32 * 1024 * 1024), int(0.85 * vmem_cap)))

    # Grid order: keep the larger operand on the slow axis so it is not
    # re-fetched every grid step (early layers: big activations / tiny weights;
    # late StyleGAN layers: tiny spatial / 512x512 weights).
    if w_blk <= x_blk:
        grid = (N, n_oc)
        x_map = lambda n, j: (n, 0, 0, 0)
        w_map = lambda n, j: (0, j)
        b_map = lambda n, j: (0, j)
        o_map = lambda n, j: (n, 0, j)
    else:
        grid = (n_oc, N)
        x_map = lambda j, n: (n, 0, 0, 0)
        w_map = lambda j, n: (0, j)
        b_map = lambda j, n: (0, j)
        o_map = lambda j, n: (n, 0, j)

    out_flat = pl.pallas_call(
        kernel,
        out_shape=jax.ShapeDtypeStruct((N, Ho * Wo, n_oc * oc_store), out_dtype),
        grid=grid,
        in_specs=[
            pl.BlockSpec((1, H_eff, W_eff, Cin_eff), x_map),
            pl.BlockSpec((KKC, tn), w_map),
            pl.BlockSpec((1, tn), b_map),
        ],
        out_specs=pl.BlockSpec((1, Ho * Wo, oc_store), o_map),
        scratch_shapes=scratch_shapes,
        compiler_params=pltpu.CompilerParams(
            dimension_semantics=("parallel", "parallel"),
            vmem_limit_bytes=vmem_limit),
    )(x_eff, w_kc, b_row)

    out = out_flat.reshape(N, Ho, Wo, n_oc * oc_store)
    if n_oc * oc_store != OC:
        out = out[..., :OC]
    if channels_last_out:
        return out
    # TODO(synk): keep NHWC end-to-end in the surrounding network
    # (channels_last_out=True) to drop this extra HBM transpose pass.
    return jnp.transpose(out, (0, 3, 1, 2))


if __name__ == "__main__":
    key = jax.random.PRNGKey(0)
    kw_key, kb_key, kx_key = jax.random.split(key, 3)

    # module config: EqualConv2d(in_channel=4, out_channel=8, kernel_size=3,
    #                            stride=1, padding=1, bias=True)
    in_channel, out_channel, kernel_size = 4, 8, 3
    weight = jax.random.normal(
        kw_key, (out_channel, in_channel, kernel_size, kernel_size), jnp.float32)
    bias = 0.1 * jax.random.normal(kb_key, (out_channel,), jnp.float32)
    x = jax.random.normal(kx_key, (2, in_channel, 16, 16), jnp.float32)
    scale = 1.0 / math.sqrt(in_channel * kernel_size ** 2)

    def reference(x_in, stride, padding):
        r = lax.conv_general_dilated(
            x_in, weight * scale, (stride, stride),
            [(padding, padding), (padding, padding)],
            dimension_numbers=("NCHW", "OIHW", "NCHW"))
        return r + bias.reshape(1, -1, 1, 1)

    # stride=1, padding=1 (module config; zero-pad folded into the kernel)
    out1 = jax.block_until_ready(equal_conv2d(x, weight, bias, stride=1, padding=1))
    ref1 = reference(x, 1, 1)
    assert out1.shape == ref1.shape == (2, out_channel, 16, 16)
    assert jnp.allclose(out1.astype(jnp.float32), ref1, atol=6e-2, rtol=6e-2), \
        "stride=1 mismatch vs f32 reference"

    # stride=2, padding=1 (exercises the wrapper space-to-depth path)
    out2 = jax.block_until_ready(equal_conv2d(x, weight, bias, stride=2, padding=1))
    ref2 = reference(x, 2, 1)
    assert out2.shape == ref2.shape == (2, out_channel, 8, 8)
    assert jnp.allclose(out2.astype(jnp.float32), ref2, atol=6e-2, rtol=6e-2), \
        "stride=2 mismatch vs f32 reference"

    print("KERNEL_OK")
</pallas_src>

<mosaic_0001>
module attributes {stable_mosaic.version = 11 : i64} {
  func.func @_equal_conv2d_kernel(%arg0: i32, %arg1: i32, %arg2: memref<1x16x16x4xbf16, #tpu.memory_space<vmem>>, %arg3: memref<36x128xbf16, #tpu.memory_space<vmem>>, %arg4: memref<1x128xf32, #tpu.memory_space<vmem>>, %arg5: memref<1x256x8xbf16, #tpu.memory_space<vmem>>, %arg6: memref<16x16x36xbf16, #tpu.memory_space<vmem>>, %arg7: memref<18x18x4xbf16, #tpu.memory_space<vmem>>) attributes {dimension_semantics = [#tpu.dimension_semantics<parallel>, #tpu.dimension_semantics<parallel>], iteration_bounds = array<i64: 2, 1>, scalar_prefetch = 0 : i64, scratch_operands = 2 : i64, tpu.core_type = #tpu.core_type<tc>, window_params = [{transform_indices = @transform_0, window_bounds = array<i64: 1, 16, 16, 4>}, {transform_indices = @transform_1, window_bounds = array<i64: 36, 128>}, {transform_indices = @transform_2, window_bounds = array<i64: 1, 128>}, {transform_indices = @transform_3, window_bounds = array<i64: 1, 256, 8>}]} {
    %cst = arith.constant 0.000000e+00 : bf16
    %0 = vector.broadcast %cst : bf16 to vector<18x18x4xbf16>
    %c0 = arith.constant 0 : index
    %c0_0 = arith.constant 0 : index
    %c0_1 = arith.constant 0 : index
    %1 = vector.load %arg7[%c0, %c0_0, %c0_1] : memref<18x18x4xbf16, #tpu.memory_space<vmem>>, vector<18x18x4xbf16>
    tpu.vector_store %arg7[%c0, %c0_0, %c0_1], %0 {strides = array<i32>} : memref<18x18x4xbf16, #tpu.memory_space<vmem>>, vector<18x18x4xbf16>,
    %c0_2 = arith.constant 0 : index
    %c0_3 = arith.constant 0 : index
    %c0_4 = arith.constant 0 : index
    %c0_5 = arith.constant 0 : index
    %2 = vector.load %arg2[%c0_2, %c0_3, %c0_4, %c0_5] : memref<1x16x16x4xbf16, #tpu.memory_space<vmem>>, vector<1x16x16x4xbf16>
    %3 = vector.shape_cast %2 : vector<1x16x16x4xbf16> to vector<16x16x4xbf16>
    %c1 = arith.constant 1 : index
    %c1_6 = arith.constant 1 : index
    %c0_7 = arith.constant 0 : index
    %4 = vector.load %arg7[%c1, %c1_6, %c0_7] : memref<18x18x4xbf16, #tpu.memory_space<vmem>>, vector<16x16x4xbf16>
    tpu.vector_store %arg7[%c1, %c1_6, %c0_7], %3 {strides = array<i32>} : memref<18x18x4xbf16, #tpu.memory_space<vmem>>, vector<16x16x4xbf16>,
    %c0_8 = arith.constant 0 : index
    %c0_9 = arith.constant 0 : index
    %c0_10 = arith.constant 0 : index
    %5 = vector.load %arg7[%c0_8, %c0_9, %c0_10] : memref<18x18x4xbf16, #tpu.memory_space<vmem>>, vector<16x16x4xbf16>
    %c0_11 = arith.constant 0 : index
    %c0_12 = arith.constant 0 : index
    %c0_13 = arith.constant 0 : index
    %6 = vector.load %arg6[%c0_11, %c0_12, %c0_13] : memref<16x16x36xbf16, #tpu.memory_space<vmem>>, vector<16x16x4xbf16>
    tpu.vector_store %arg6[%c0_11, %c0_12, %c0_13], %5 {strides = array<i32>} : memref<16x16x36xbf16, #tpu.memory_space<vmem>>, vector<16x16x4xbf16>,
    %c0_14 = arith.constant 0 : index
    %c1_15 = arith.constant 1 : index
    %c0_16 = arith.constant 0 : index
    %7 = vector.load %arg7[%c0_14, %c1_15, %c0_16] : memref<18x18x4xbf16, #tpu.memory_space<vmem>>, vector<16x16x4xbf16>
    %c0_17 = arith.constant 0 : index
    %c0_18 = arith.constant 0 : index
    %c4 = arith.constant 4 : index
    %8 = vector.load %arg6[%c0_17, %c0_18, %c4] : memref<16x16x36xbf16, #tpu.memory_space<vmem>>, vector<16x16x4xbf16>
    tpu.vector_store %arg6[%c0_17, %c0_18, %c4], %7 {strides = array<i32>} : memref<16x16x36xbf16, #tpu.memory_space<vmem>>, vector<16x16x4xbf16>,
    %c0_19 = arith.constant 0 : index
    %c2 = arith.constant 2 : index
    %c0_20 = arith.constant 0 : index
    %9 = vector.load %arg7[%c0_19, %c2, %c0_20] : memref<18x18x4xbf16, #tpu.memory_space<vmem>>, vector<16x16x4xbf16>
    %c0_21 = arith.constant 0 : index
    %c0_22 = arith.constant 0 : index
    %c8 = arith.constant 8 : index
    %10 = vector.load %arg6[%c0_21, %c0_22, %c8] : memref<16x16x36xbf16, #tpu.memory_space<vmem>>, vector<16x16x4xbf16>
    tpu.vector_store %arg6[%c0_21, %c0_22, %c8], %9 {strides = array<i32>} : memref<16x16x36xbf16, #tpu.memory_space<vmem>>, vector<16x16x4xbf16>,
    %c1_23 = arith.constant 1 : index
    %c0_24 = arith.constant 0 : index
    %c0_25 = arith.constant 0 : index
    %11 = vector.load %arg7[%c1_23, %c0_24, %c0_25] : memref<18x18x4xbf16, #tpu.memory_space<vmem>>, vector<16x16x4xbf16>
    %c0_26 = arith.constant 0 : index
    %c0_27 = arith.constant 0 : index
    %c12 = arith.constant 12 : index
    %12 = vector.load %arg6[%c0_26, %c0_27, %c12] : memref<16x16x36xbf16, #tpu.memory_space<vmem>>, vector<16x16x4xbf16>
    tpu.vector_store %arg6[%c0_26, %c0_27, %c12], %11 {strides = array<i32>} : memref<16x16x36xbf16, #tpu.memory_space<vmem>>, vector<16x16x4xbf16>,
    %c1_28 = arith.constant 1 : index
    %c1_29 = arith.constant 1 : index
    %c0_30 = arith.constant 0 : index
    %13 = vector.load %arg7[%c1_28, %c1_29, %c0_30] : memref<18x18x4xbf16, #tpu.memory_space<vmem>>, vector<16x16x4xbf16>
    %c0_31 = arith.constant 0 : index
    %c0_32 = arith.constant 0 : index
    %c16 = arith.constant 16 : index
    %14 = vector.load %arg6[%c0_31, %c0_32, %c16] : memref<16x16x36xbf16, #tpu.memory_space<vmem>>, vector<16x16x4xbf16>
    tpu.vector_store %arg6[%c0_31, %c0_32, %c16], %13 {strides = array<i32>} : memref<16x16x36xbf16, #tpu.memory_space<vmem>>, vector<16x16x4xbf16>,
    %c1_33 = arith.constant 1 : index
    %c2_34 = arith.constant 2 : index
    %c0_35 = arith.constant 0 : index
    %15 = vector.load %arg7[%c1_33, %c2_34, %c0_35] : memref<18x18x4xbf16, #tpu.memory_space<vmem>>, vector<16x16x4xbf16>
    %c0_36 = arith.constant 0 : index
    %c0_37 = arith.constant 0 : index
    %c20 = arith.constant 20 : index
    %16 = vector.load %arg6[%c0_36, %c0_37, %c20] : memref<16x16x36xbf16, #tpu.memory_space<vmem>>, vector<16x16x4xbf16>
    tpu.vector_store %arg6[%c0_36, %c0_37, %c20], %15 {strides = array<i32>} : memref<16x16x36xbf16, #tpu.memory_space<vmem>>, vector<16x16x4xbf16>,
    %c2_38 = arith.constant 2 : index
    %c0_39 = arith.constant 0 : index
    %c0_40 = arith.constant 0 : index
    %17 = vector.load %arg7[%c2_38, %c0_39, %c0_40] : memref<18x18x4xbf16, #tpu.memory_space<vmem>>, vector<16x16x4xbf16>
    %c0_41 = arith.constant 0 : index
    %c0_42 = arith.constant 0 : index
    %c24 = arith.constant 24 : index
    %18 = vector.load %arg6[%c0_41, %c0_42, %c24] : memref<16x16x36xbf16, #tpu.memory_space<vmem>>, vector<16x16x4xbf16>
    tpu.vector_store %arg6[%c0_41, %c0_42, %c24], %17 {strides = array<i32>} : memref<16x16x36xbf16, #tpu.memory_space<vmem>>, vector<16x16x4xbf16>,
    %c2_43 = arith.constant 2 : index
    %c1_44 = arith.constant 1 : index
    %c0_45 = arith.constant 0 : index
    %19 = vector.load %arg7[%c2_43, %c1_44, %c0_45] : memref<18x18x4xbf16, #tpu.memory_space<vmem>>, vector<16x16x4xbf16>
    %c0_46 = arith.constant 0 : index
    %c0_47 = arith.constant 0 : index
    %c28 = arith.constant 28 : index
    %20 = vector.load %arg6[%c0_46, %c0_47, %c28] : memref<16x16x36xbf16, #tpu.memory_space<vmem>>, vector<16x16x4xbf16>
    tpu.vector_store %arg6[%c0_46, %c0_47, %c28], %19 {strides = array<i32>} : memref<16x16x36xbf16, #tpu.memory_space<vmem>>, vector<16x16x4xbf16>,
    %c2_48 = arith.constant 2 : index
    %c2_49 = arith.constant 2 : index
    %c0_50 = arith.constant 0 : index
    %21 = vector.load %arg7[%c2_48, %c2_49, %c0_50] : memref<18x18x4xbf16, #tpu.memory_space<vmem>>, vector<16x16x4xbf16>
    %c0_51 = arith.constant 0 : index
    %c0_52 = arith.constant 0 : index
    %c32 = arith.constant 32 : index
    %22 = vector.load %arg6[%c0_51, %c0_52, %c32] : memref<16x16x36xbf16, #tpu.memory_space<vmem>>, vector<16x16x4xbf16>
    tpu.vector_store %arg6[%c0_51, %c0_52, %c32], %21 {strides = array<i32>} : memref<16x16x36xbf16, #tpu.memory_space<vmem>>, vector<16x16x4xbf16>,
    %c0_53 = arith.constant 0 : index
    %c0_54 = arith.constant 0 : index
    %c0_55 = arith.constant 0 : index
    %23 = vector.load %arg6[%c0_53, %c0_54, %c0_55] : memref<16x16x36xbf16, #tpu.memory_space<vmem>>, vector<16x16x36xbf16>
    %24 = vector.shape_cast %23 : vector<16x16x36xbf16> to vector<256x36xbf16>
    %c0_56 = arith.constant 0 : index
    %c0_57 = arith.constant 0 : index
    %25 = vector.load %arg3[%c0_56, %c0_57] : memref<36x128xbf16, #tpu.memory_space<vmem>>, vector<36x128xbf16>
    %cst_58 = arith.constant dense<0.000000e+00> : vector<256x128xf32>
    %26 = tpu.matmul %24, %25, %cst_58 {dimension_numbers = #tpu.dot_dimension_numbers<[1], [0], [0], [1], [0, 0, 1, 1], [], []>} : vector<256x36xbf16>, vector<36x128xbf16>, vector<256x128xf32> -> vector<256x128xf32>
    %cst_59 = arith.constant 0.166666672 : f32
    %27 = vector.broadcast %cst_59 : f32 to vector<256x128xf32>
    %28 = arith.mulf %26, %27 : vector<256x128xf32>
    %c0_60 = arith.constant 0 : index
    %c0_61 = arith.constant 0 : index
    %29 = vector.load %arg4[%c0_60, %c0_61] : memref<1x128xf32, #tpu.memory_space<vmem>>, vector<1x128xf32>
    %30 = vector.broadcast %29 : vector<1x128xf32> to vector<256x128xf32>
    %31 = arith.addf %28, %30 : vector<256x128xf32>
    %32 = vector.extract_strided_slice %31 {offsets = [0, 0], sizes = [256, 8], strides = [1, 1]} : vector<256x128xf32> to vector<256x8xf32>
    %33 = arith.truncf %32 : vector<256x8xf32> to vector<256x8xbf16>
    %c0_62 = arith.constant 0 : index
    %c0_63 = arith.constant 0 : index
    %c0_64 = arith.constant 0 : index
    %34 = vector.load %arg5[%c0_62, %c0_63, %c0_64] : memref<1x256x8xbf16, #tpu.memory_space<vmem>>, vector<1x256x8xbf16>
    %35 = vector.shape_cast %34 : vector<1x256x8xbf16> to vector<256x8xbf16>
    %36 = vector.shape_cast %33 : vector<256x8xbf16> to vector<1x256x8xbf16>
    tpu.vector_store %arg5[%c0_62, %c0_63, %c0_64], %36 {strides = array<i32>} : memref<1x256x8xbf16, #tpu.memory_space<vmem>>, vector<1x256x8xbf16>,
    return
  }
  func.func @transform_0(%arg0: i32, %arg1: i32) -> (i32, i32, i32, i32) {
    %c0_i32 = arith.constant 0 : i32
    %c0_i32_0 = arith.constant 0 : i32
    %c0_i32_1 = arith.constant 0 : i32
    %c0_i32_2 = arith.constant 0 : i32
    return %arg0, %c0_i32, %c0_i32_0, %c0_i32_1 : i32, i32, i32, i32
  }
  func.func @transform_1(%arg0: i32, %arg1: i32) -> (i32, i32) {
    %c0_i32 = arith.constant 0 : i32
    %c0_i32_0 = arith.constant 0 : i32
    return %c0_i32, %arg1 : i32, i32
  }
  func.func @transform_2(%arg0: i32, %arg1: i32) -> (i32, i32) {
    %c0_i32 = arith.constant 0 : i32
    %c0_i32_0 = arith.constant 0 : i32
    return %c0_i32, %arg1 : i32, i32
  }
  func.func @transform_3(%arg0: i32, %arg1: i32) -> (i32, i32, i32) {
    %c0_i32 = arith.constant 0 : i32
    %c0_i32_0 = arith.constant 0 : i32
    return %arg0, %c0_i32, %arg1 : i32, i32, i32
  }
}

</mosaic_0001>

<bundles_post_ra>
// kernel: tpu_custom_call.1
= control target key start
LH: loop header
LB: loop body
LE: loop exit
PB: predicated region body
PF: predicated region fallthrough
CT: control target
= control target key end

     0   :  { %s4920_s12 = smov 0   ;;  %s4922_s13 = smov 0   ;;  %s6358_s0 = inlined_call_operand.vmem [shape: bf16[2,16,16,4], index: 0, kind: input, shape index: {}]   ;;  %s6359_s1 = inlined_call_operand.vmem [shape: bf16[36,128], index: 1, kind: input, shape index: {}]   ;;  %s6360_s2 = inlined_call_operand.vmem [shape: f32[1,128], index: 2, kind: input, shape index: {}]   ;;  %s6361_s3 = inlined_call_operand.vmem [shape: bf16[2,256,8], index: 3, kind: output, shape index: {}]  }
   0x1   :  { %s4924_s14 = smov 0  }
   0x2 LB: > { %s25_s15 = sadd.s32 1, %s4885_s13  ;;  %p4592_p0 = scmp.ge.s32.totalorder %s4889_s14, 1  ;;  %s4889_s14 = sphi %s4924_s14, %s13_s14   ;;  %s4885_s13 = sphi %s4922_s13, %s6373_s13   ;;  %s4881_s12 = sphi %s4920_s12, %s6372_s12  }
   0x3   : > { %p27_p1 = scmp.ge.s32.totalorder %s25_s15, 2  ;;  %p168_p2 = scmp.lt.s32.totalorder %s4889_s14, 3 }
   0x5   : > { %s6375_s15 = smov (%p27_p1, %s25_s15), 0  ;;  %p169_p3 = pnand %p4592_p0, %p168_p2 }
   0x6   : > { %p202_p4 = scmp.lt.s32.totalorder (!%p169_p3), %s4881_s12, 1  ;;  %s4892_s20 = smov (!%p169_p3), 4  }
   0x7   : > { %172 = sbr.rel (%p169_p3) target bundleno = 935 (0x3a7), region = 32  ;;  %s4893_s21 = smov (!%p169_p3), 8  }
   0x8   : > { %s4894_s22 = smov (!%p169_p3), 12   ;;  %s4895_s23 = smov (!%p169_p3), 16  }
   0x9   : > { %s4896_s24 = smov (!%p169_p3), 20   ;;  %s4897_s25 = smov (!%p169_p3), 24  }
   0xa   : > { %s4898_s26 = smov (!%p169_p3), 28   ;;  %s4899_s4 = smov (!%p169_p3), 32  }
   0xc   : > { %vm223_vm0 = vcmask 27648   ;;  %v4891_v0 = vmov 0   ;;  %vm226_vm1 = vcmask 24576   ;;  %s6377_s12 = smov (!%p202_p4, %s4881_s12), 1  ;;  %vm864_vm2 = vsmask.f32 3328 }
   0xd   : > { %224 = vst.msk [vmem:[#allocation3] sm:$0xf] %vm223_vm0, %v4891_v0  ;;  %225 = vst.msk [vmem:[#allocation3 + $0x4] sm:$0xf] %vm223_vm0, %v4891_v0  ;;  %s4715_s16 = sshll.u32 %s6377_s12, 7  ;;  %vm1476_vm11 = vcmask 1042432  }
   0xe   : > { %228 = vst.msk [vmem:[#allocation3 + $0xc] sm:$0xf] %vm223_vm0, %v4891_v0  ;;  %229 = vst.msk [vmem:[#allocation3 + $0x10] sm:$0xf] %vm223_vm0, %v4891_v0  ;;  %vm865_vm3 = vsmask.f32 7440  ;;  %s5006_s19 = scalar_lea.vmem %s6358_s0, %s4715_s16  ;;  %s6233_s11 = scalar_lea.vmem %s6361_s3, %s4715_s16 }
   0xf   : > { %231 = vst.msk [vmem:[#allocation3 + $0x18] sm:$0xf] %vm223_vm0, %v4891_v0  ;;  %232 = vst.msk [vmem:[#allocation3 + $0x1c] sm:$0xf] %vm223_vm0, %v4891_v0  ;;  %vm311_vm4 = vsmask.f32 256 }
  0x10   : > { %234 = vst.msk [vmem:[#allocation3 + $0x24] sm:$0xf] %vm223_vm0, %v4891_v0  ;;  %235 = vst.msk [vmem:[#allocation3 + $0x28] sm:$0xf] %vm223_vm0, %v4891_v0  ;;  %vm312_vm5 = vsmask.f32 4368 }
  0x11   : > { %237 = vst.msk [vmem:[#allocation3 + $0x30] sm:$0xf] %vm223_vm0, %v4891_v0  ;;  %238 = vst.msk [vmem:[#allocation3 + $0x34] sm:$0xf] %vm223_vm0, %v4891_v0  ;;  %v279_v1 = vld [vmem:[%s5006_s19] sm:$0xf] }
  0x12   : > { %240 = vst.msk [vmem:[#allocation3 + $0x3c] sm:$0xf] %vm223_vm0, %v4891_v0  ;;  %241 = vst.msk [vmem:[#allocation3 + $0x40] sm:$0xf] %vm223_vm0, %v4891_v0  ;;  %v280_v2 = vld [vmem:[%s5006_s19 + $0x4] sm:$0xf] }
  0x13   : > { %243 = vst.msk [vmem:[#allocation3 + $0x48] sm:$0xf] %vm223_vm0, %v4891_v0  ;;  %244 = vst.msk [vmem:[#allocation3 + $0x4c] sm:$0xf] %vm223_vm0, %v4891_v0  ;;  %vm636_vm6 = vsmask.f32 7938 }
  0x14   : > { %246 = vst.msk [vmem:[#allocation3 + $0x54] sm:$0xf] %vm223_vm0, %v4891_v0  ;;  %247 = vst.msk [vmem:[#allocation3 + $0x58] sm:$0xf] %vm223_vm0, %v4891_v0  ;;  %v816_v3 = vld [vmem:[#allocation3] sm:$0xf] }
  0x15   : > { %249 = vst.msk [vmem:[#allocation3 + $0x60] sm:$0xf] %vm223_vm0, %v4891_v0  ;;  %250 = vst.msk [vmem:[#allocation3 + $0x64] sm:$0xf] %vm223_vm0, %v4891_v0  ;;  %v817_v4 = vld [vmem:[#allocation3 + $0x4] sm:$0xf] }
  0x16   : > { %252 = vst.msk [vmem:[#allocation3 + $0x6c] sm:$0xf] %vm223_vm0, %v4891_v0  ;;  %253 = vst.msk [vmem:[#allocation3 + $0x70] sm:$0xf] %vm223_vm0, %v4891_v0  ;;  %v315_v5 = vshrl.u32 %v279_v1, 16  ;;  %v318_v6 = vshll.u32 %v279_v1, 16 }
  0x17   : > { %255 = vst.msk [vmem:[#allocation3 + $0x78] sm:$0xf] %vm223_vm0, %v4891_v0  ;;  %256 = vst.msk [vmem:[#allocation3 + $0x7c] sm:$0xf] %vm223_vm0, %v4891_v0  ;;  %v281_v7 = vld [vmem:[%s5006_s19 + $0x8] sm:$0xf] }
  0x18   : > { %258 = vst.msk [vmem:[#allocation3 + $0x84] sm:$0xf] %vm223_vm0, %v4891_v0  ;;  %259 = vst.msk [vmem:[#allocation3 + $0x88] sm:$0xf] %vm223_vm0, %v4891_v0  ;;  %v868_v8 = vshrl.u32 %v816_v3, 16  ;;  %v871_v9 = vshll.u32 %v816_v3, 16 }
  0x19   : > { %261 = vst.msk [vmem:[#allocation3 + $0x90] sm:$0xf] %vm223_vm0, %v4891_v0  ;;  %262 = vst.msk [vmem:[#allocation3 + $0x94] sm:$0xf] %vm223_vm0, %v4891_v0  ;;  %v877_v10 = vshll.u32 %v817_v4, 16  ;;  %v881_v11 = vshrl.u32 %v817_v4, 16 }
  0x1a   : > { %264 = vst.msk [vmem:[#allocation3 + $0x9c] sm:$0xf] %vm223_vm0, %v4891_v0  ;;  %265 = vst.msk [vmem:[#allocation3 + $0xa0] sm:$0xf] %vm223_vm0, %v4891_v0  ;;  %v317_v14 = vrot.slane %v315_v5, 7  ;;  %v323_v15 = vshrl.u32 %v280_v2, 16 }
  0x1b   : > { %267 = vst.msk [vmem:[#allocation3 + $0xa8] sm:$0xf] %vm223_vm0, %v4891_v0  ;;  %268 = vst.msk [vmem:[#allocation3 + $0xac] sm:$0xf] %vm223_vm0, %v4891_v0  ;;  %v326_v16 = vshll.u32 %v280_v2, 16  ;;  %v870_v18 = vrot.slane %v868_v8, 4 }
  0x1c   : > { %270 = vst.msk [vmem:[#allocation3 + $0xb4] sm:$0xf] %vm223_vm0, %v4891_v0  ;;  %271 = vst.msk [vmem:[#allocation3 + $0xb8] sm:$0xf] %vm223_vm0, %v4891_v0  ;;  %v638_v17 = vld [vmem:[#allocation3 + $0xc] sm:$0xf]  ;;  %v320_v25 = vor.u32 %v318_v6, %v317_v14 }
  0x1d   : > { %273 = vst.msk [vmem:[#allocation3 + $0xc0] sm:$0xf] %vm223_vm0, %v4891_v0  ;;  %274 = vst.msk [vmem:[#allocation3 + $0xc4] sm:$0xf] %vm223_vm0, %v4891_v0  ;;  %v873_v19 = vrot.slane %v871_v9, 5  ;;  %v879_v20 = vrot.slane %v877_v10, 5 }
  0x1e   : > { %276 = vst.msk [vmem:[#allocation3 + $0xcc] sm:$0xf] %vm223_vm0, %v4891_v0  ;;  %277 = vst.msk [vmem:[#allocation3 + $0xd0] sm:$0xf] %vm223_vm0, %v4891_v0  ;;  %v883_v21 = vrot.slane %v881_v11, 4  ;;  %v321_v26 = vrot.slane %v317_v14, 4 }
  0x1f   : > { %227 = vst.msk [vmem:[#allocation3 + $0x8] sm:$0x1] %vm226_vm1, %v4891_v0  ;;  %230 = vst.msk [vmem:[#allocation3 + $0x14] sm:$0x1] %vm226_vm1, %v4891_v0  ;;  %v282_v23 = vld [vmem:[%s5006_s19 + $0xc] sm:$0xf]  ;;  %v874_v28 = vor.u32 %v873_v19, %v870_v18 }
  0x20   : > { %233 = vst.msk [vmem:[#allocation3 + $0x20] sm:$0x1] %vm226_vm1, %v4891_v0  ;;  %236 = vst.msk [vmem:[#allocation3 + $0x2c] sm:$0x1] %vm226_vm1, %v4891_v0  ;;  %v325_v27 = vrot.slane %v323_v15, 7  ;;  %v884_v29 = vor.u32 %v883_v21, %v879_v20  ;;  %v332_v31 = vshrl.u32 %v281_v7, 16 }
  0x21   : > { %239 = vst.msk [vmem:[#allocation3 + $0x38] sm:$0x1] %vm226_vm1, %v4891_v0  ;;  %242 = vst.msk [vmem:[#allocation3 + $0x44] sm:$0x1] %vm226_vm1, %v4891_v0  ;;  %v335_v32 = vshll.u32 %v281_v7, 16  ;;  %v340_v37 = vshrl.u32 %v282_v23, 16 }
  0x22   : > { %245 = vst.msk [vmem:[#allocation3 + $0x50] sm:$0x1] %vm226_vm1, %v4891_v0  ;;  %248 = vst.msk [vmem:[#allocation3 + $0x5c] sm:$0x1] %vm226_vm1, %v4891_v0  ;;  %v283_v33 = vld [vmem:[%s5006_s19 + $0x10] sm:$0xf]  ;;  %v328_v35 = vor.u32 %v326_v16, %v325_v27 }
  0x23   : > { %251 = vst.msk [vmem:[#allocation3 + $0x68] sm:$0x1] %vm226_vm1, %v4891_v0  ;;  %254 = vst.msk [vmem:[#allocation3 + $0x74] sm:$0x1] %vm226_vm1, %v4891_v0  ;;  %v343_v38 = vshll.u32 %v282_v23, 16  ;;  %v875_v41 = vrot.slane %v874_v28, 4 }
  0x24   : > { %257 = vst.msk [vmem:[#allocation3 + $0x80] sm:$0x1] %vm226_vm1, %v4891_v0  ;;  %260 = vst.msk [vmem:[#allocation3 + $0x8c] sm:$0x1] %vm226_vm1, %v4891_v0  ;;  %v647_v39 = vld [vmem:[#allocation3 + $0x18] sm:$0xf] }
  0x25   : > { %263 = vst.msk [vmem:[#allocation3 + $0x98] sm:$0x1] %vm226_vm1, %v4891_v0  ;;  %266 = vst.msk [vmem:[#allocation3 + $0xa4] sm:$0x1] %vm226_vm1, %v4891_v0  ;;  %v885_v42 = vrot.slane %v884_v29, 4  ;;  %v334_v43 = vrot.slane %v332_v31, 7 }
  0x26   : > { %269 = vst.msk [vmem:[#allocation3 + $0xb0] sm:$0x1] %vm226_vm1, %v4891_v0  ;;  %272 = vst.msk [vmem:[#allocation3 + $0xbc] sm:$0x1] %vm226_vm1, %v4891_v0  ;;  %v818_v12 = vld [vmem:[#allocation3 + $0x8] sm:$0x1] }
  0x27   : > { %275 = vst.msk [vmem:[#allocation3 + $0xc8] sm:$0x1] %vm226_vm1, %v4891_v0  ;;  %278 = vst.msk [vmem:[#allocation3 + $0xd4] sm:$0x1] %vm226_vm1, %v4891_v0  ;;  %v887_v13 = vshll.u32 %v818_v12, 16  ;;  %v330_v44 = vrot.slane %v325_v27, 4  ;;  %v337_v54 = vor.u32 %v335_v32, %v334_v43 }
  0x28   : > { %vm5013_vm7 = vmand %vm223_vm0, %vm636_vm6  ;;  %v644_v40 = vld [vmem:[#allocation3 + $0x14] sm:$0x1]  ;;  %v342_v48 = vrot.slane %v340_v37, 7  ;;  %v349_v49 = vshrl.u32 %v283_v33, 16  ;;  %v352_v50 = vshll.u32 %v283_v33, 16  ;;  %v338_v55 = vrot.slane %v334_v43, 4 }
  0x29   : > { %v889_v24 = vrot.slane %v887_v13, 5  ;;  %vm5020_vm8 = vmor %vm311_vm4, %vm312_vm5  ;;  %v639_v36 = vsel %vm5013_vm7, %v320_v25, %v638_v17  ;;  %v284_v46 = vld [vmem:[%s5006_s19 + $0x14] sm:$0xf]  ;;  %v285_v51 = vld [vmem:[%s5006_s19 + $0x18] sm:$0xf]  ;;  %v648_v62 = vsel %vm5013_vm7, %v337_v54, %v647_v39  ;;  %vm1477_vm12 = vcmask 1046532  }
  0x2a   : > { %vm5027_vm9 = vmor %vm864_vm2, %vm865_vm3  ;;  %640 = vst [vmem:[#allocation3 + $0xc] sm:$0xf] %v639_v36  ;;  %v329_v47 = vsel %vm5020_vm8, %v321_v26, %v328_v35  ;;  %v345_v56 = vor.u32 %v343_v38, %v342_v48  ;;  %v351_v58 = vrot.slane %v349_v49, 7  ;;  %v357_v59 = vshrl.u32 %v284_v46, 16  ;;  %v651_v60 = vld [vmem:[#allocation3 + $0x20] sm:$0x1] }
  0x2b   : > { %vm5035_vm10 = vmand %vm226_vm1, %vm311_vm4  ;;  %v880_v52 = vsel %vm5027_vm9, %v875_v41, %v879_v20  ;;  %v890_v53 = vsel %vm5027_vm9, %v885_v42, %v889_v24  ;;  %641 = vst.msk [vmem:[#allocation3 + $0x10] sm:$0xf] %vm223_vm0, %v329_v47  ;;  %v286_v61 = vld [vmem:[%s5006_s19 + $0x1c] sm:$0xf]  ;;  %v360_v63 = vshll.u32 %v284_v46, 16  ;;  %v347_v1 = vrot.slane %v342_v48, 4 }
  0x2c   : > { %1251 = vrot.lane.b32.xlu0 %v880_v52, %s4892_s20  ;;  %v645_v57 = vsel %vm5035_vm10, %v330_v44, %v644_v40  ;;  %v654_v0 = vld [vmem:[#allocation3 + $0x24] sm:$0xf]  ;;  %v366_v2 = vshrl.u32 %v285_v51, 16  ;;  %v346_v3 = vsel %vm5020_vm8, %v338_v55, %v345_v56  ;;  %649 = vst [vmem:[#allocation3 + $0x18] sm:$0xf] %v648_v62  ;;  %v354_v4 = vor.u32 %v352_v50, %v351_v58  ;;  %vm5297_vm13 = vmor %vm1476_vm11, %vm1477_vm12 }
  0x2d   : > { %646 = vst [vmem:[#allocation3 + $0x14] sm:$0x1] %v645_v57  ;;  %v355_v5 = vrot.slane %v351_v58, 4  ;;  %v359_v6 = vrot.slane %v357_v59, 7  ;;  %v658_v7 = vld [vmem:[#allocation3 + $0x2c] sm:$0x1]  ;;  %v652_v8 = vsel %vm5035_vm10, %v347_v1, %v651_v60 }
  0x2e   : > { %650 = vst.msk [vmem:[#allocation3 + $0x1c] sm:$0xf] %vm223_vm0, %v346_v3  ;;  %v368_v9 = vrot.slane %v366_v2, 7  ;;  %v369_v10 = vshll.u32 %v285_v51, 16  ;;  %v374_v11 = vshrl.u32 %v286_v61, 16  ;;  %v655_v15 = vsel %vm5013_vm7, %v354_v4, %v654_v0 }
  0x2f   : > { %v287_v12 = vld [vmem:[%s5006_s19 + $0x20] sm:$0xf]  ;;  %v362_v14 = vor.u32 %v360_v63, %v359_v6  ;;  %653 = vst [vmem:[#allocation3 + $0x20] sm:$0x1] %v652_v8  ;;  %v377_v16 = vshll.u32 %v286_v61, 16  ;;  %v364_v17 = vrot.slane %v359_v6, 4 }
  0x30   : > { %1253 = vrot.lane.b32.xlu0 %v890_v53, %s4892_s20  ;;  %656 = vst [vmem:[#allocation3 + $0x24] sm:$0xf] %v655_v15  ;;  %v371_v20 = vor.u32 %v369_v10, %v368_v9  ;;  %v372_v21 = vrot.slane %v368_v9, 4  ;;  %v661_v23 = vld [vmem:[#allocation3 + $0x30] sm:$0xf]  ;;  %v5065_v26 = vrot.slane %v374_v11, 7 }
  0x31   : > { %v819_v13 = vld [vmem:[#allocation3 + $0xc] sm:$0xf]  ;;  %v363_v25 = vsel %vm5020_vm8, %v355_v5, %v362_v14  ;;  %v659_v27 = vsel %vm5035_vm10, %v364_v17, %v658_v7  ;;  %v383_v28 = vshrl.u32 %v287_v12, 16  ;;  %v386_v39 = vshll.u32 %v287_v12, 16 }
  0x32   : > { %v892_v18 = vshrl.u32 %v819_v13, 16  ;;  %v895_v19 = vshll.u32 %v819_v13, 16  ;;  %v820_v24 = vld [vmem:[#allocation3 + $0x10] sm:$0xf]  ;;  %657 = vst.msk [vmem:[#allocation3 + $0x28] sm:$0xf] %vm223_vm0, %v363_v25  ;;  %v379_v36 = vor.u32 %v377_v16, %v5065_v26  ;;  %v662_v37 = vsel %vm5013_vm7, %v371_v20, %v661_v23 }
  0x33   : > { %v901_v32 = vshll.u32 %v820_v24, 16  ;;  %v905_v33 = vshrl.u32 %v820_v24, 16  ;;  %660 = vst [vmem:[#allocation3 + $0x2c] sm:$0x1] %v659_v27  ;;  %v5073_v38 = vrot.slane %v383_v28, 7  ;;  %vm1347_vm14 = vcmask 60448  }
  0x34   : > { %v894_v29 = vrot.slane %v892_v18, 4  ;;  %v897_v31 = vrot.slane %v895_v19, 5  ;;  %v821_v35 = vld [vmem:[#allocation3 + $0x14] sm:$0x1]  ;;  %v822_v43 = vld [vmem:[#allocation3 + $0x18] sm:$0xf]  ;;  %v380_v49 = vsel %vm5020_vm8, %v372_v21, %v379_v36 }
  0x35   : > { %v903_v41 = vrot.slane %v901_v32, 5  ;;  %v907_v42 = vrot.slane %v905_v33, 4  ;;  %v911_v44 = vshll.u32 %v821_v35, 16  ;;  %663 = vst [vmem:[#allocation3 + $0x30] sm:$0xf] %v662_v37  ;;  %v916_v47 = vshrl.u32 %v822_v43, 16 }
  0x36   : > { %v898_v40 = vor.u32 %v897_v31, %v894_v29  ;;  %v823_v46 = vld [vmem:[#allocation3 + $0x1c] sm:$0xf]  ;;  %v919_v48 = vshll.u32 %v822_v43, 16  ;;  %v5078_v50 = vor.u32 %v386_v39, %v5073_v38  ;;  %v824_v55 = vld [vmem:[#allocation3 + $0x20] sm:$0x1]  ;;  %v389_v39 = vrot.slane %v5073_v38, 4 }
  0x37   : > { %v925_v52 = vshll.u32 %v823_v46, 16  ;;  %v929_v53 = vshrl.u32 %v823_v46, 16  ;;  %v908_v54 = vor.u32 %v907_v42, %v903_v41  ;;  %664 = vst.msk [vmem:[#allocation3 + $0x34] sm:$0xf] %vm223_vm0, %v380_v49  ;;  %v918_v56 = vrot.slane %v916_v47, 4 }
  0x38   : > { %v899_v51 = vrot.slane %v898_v40, 4  ;;  %v921_v57 = vrot.slane %v919_v48, 5  ;;  %v913_v58 = vrot.slane %v911_v44, 5  ;;  %v825_v59 = vld [vmem:[#allocation3 + $0x24] sm:$0xf]  ;;  %v935_v60 = vshll.u32 %v824_v55, 16 }
  0x39   : > { %v927_v62 = vrot.slane %v925_v52, 5  ;;  %v909_v63 = vrot.slane %v908_v54, 4  ;;  %v940_v0 = vshrl.u32 %v825_v59, 16  ;;  %v826_v2 = vld [vmem:[#allocation3 + $0x28] sm:$0xf]  ;;  %v943_v3 = vshll.u32 %v825_v59, 16 }
  0x3a   : > { %v904_v61 = vsel %vm5027_vm9, %v899_v51, %v903_v41  ;;  %v922_v1 = vor.u32 %v921_v57, %v918_v56  ;;  %v931_v4 = vrot.slane %v929_v53, 4  ;;  %v937_v5 = vrot.slane %v935_v60, 5  ;;  %v827_v10 = vld [vmem:[#allocation3 + $0x2c] sm:$0x1]  ;;  %v288_v27 = vld [vmem:[%s5006_s19 + $0x24] sm:$0xf] }
  0x3b   : > { %1255 = vrot.lane.b32.xlu1 %v904_v61, %s4892_s20  ;;  %v914_v6 = vsel %vm5027_vm9, %v909_v63, %v913_v58  ;;  %v942_v7 = vrot.slane %v940_v0, 4  ;;  %v949_v8 = vshll.u32 %v826_v2, 16  ;;  %v953_v9 = vshrl.u32 %v826_v2, 16  ;;  %v668_v33 = vld [vmem:[#allocation3 + $0x3c] sm:$0xf] }
  0x3c   : > { %v923_v11 = vrot.slane %v922_v1, 4  ;;  %v945_v12 = vrot.slane %v943_v3, 5  ;;  %v932_v13 = vor.u32 %v931_v4, %v927_v62  ;;  %v828_v14 = vld [vmem:[#allocation3 + $0x30] sm:$0xf]  ;;  %v959_v15 = vshll.u32 %v827_v10, 16 }
  0x3d   : > { %v951_v16 = vrot.slane %v949_v8, 5  ;;  %v964_v17 = vshrl.u32 %v828_v14, 16  ;;  %v967_v18 = vshll.u32 %v828_v14, 16  ;;  %v955_v19 = vrot.slane %v953_v9, 4  ;;  %v665_v40 = vld [vmem:[#allocation3 + $0x38] sm:$0x1] }
  0x3e   : > { %v928_v20 = vsel %vm5027_vm9, %v923_v11, %v927_v62  ;;  %v946_v21 = vor.u32 %v945_v12, %v942_v7  ;;  %v933_v23 = vrot.slane %v932_v13, 4  ;;  %v829_v24 = vld [vmem:[#allocation3 + $0x34] sm:$0xf]  ;;  %v961_v25 = vrot.slane %v959_v15, 5  ;;  %v289_v41 = vld [vmem:[%s5006_s19 + $0x28] sm:$0xf] }
  0x3f   : > { %1257 = vrot.lane.b32.xlu1 %v914_v6, %s4892_s20  ;;  %1259 = vrot.lane.b32.xlu0 %v928_v20, %s4892_s20  ;;  %v966_v28 = vrot.slane %v964_v17, 4  ;;  %v969_v29 = vrot.slane %v967_v18, 5  ;;  %v973_v31 = vshll.u32 %v829_v24, 16  ;;  %v977_v32 = vshrl.u32 %v829_v24, 16  ;;  %v290_v47 = vld [vmem:[%s5006_s19 + $0x2c] sm:$0xf] }
  0x40   : > { %v947_v35 = vrot.slane %v946_v21, 4  ;;  %v938_v36 = vsel %vm5027_vm9, %v933_v23, %v937_v5  ;;  %v956_v37 = vor.u32 %v955_v19, %v951_v16  ;;  %v391_v44 = vshrl.u32 %v288_v27, 16  ;;  %v291_v56 = vld [vmem:[%s5006_s19 + $0x30] sm:$0xf]  ;;  %v675_v63 = vld [vmem:[#allocation3 + $0x48] sm:$0xf] }
  0x41   : > { %v970_v42 = vor.u32 %v969_v29, %v966_v28  ;;  %v975_v43 = vrot.slane %v973_v31, 5  ;;  %v394_v46 = vshll.u32 %v288_v27, 16  ;;  %v669_v51 = vsel %vm5013_vm7, %v5078_v50, %v668_v33  ;;  %v672_v0 = vld [vmem:[#allocation3 + $0x44] sm:$0x1]  ;;  %v292_v4 = vld [vmem:[%s5006_s19 + $0x34] sm:$0xf] }
  0x42   : > { %v952_v48 = vsel %vm5027_vm9, %v947_v35, %v951_v16  ;;  %v957_v49 = vrot.slane %v956_v37, 4  ;;  %v381_v38 = vrot.slane %v5065_v26, 4  ;;  %v393_v53 = vrot.slane %v391_v44, 7  ;;  %670 = vst [vmem:[#allocation3 + $0x3c] sm:$0xf] %v669_v51 }
  0x43   : > { %1261 = vrot.lane.b32.xlu1 %v938_v36, %s4892_s20  ;;  %1263 = vrot.lane.b32.xlu0 %v952_v48, %s4892_s20  ;;  %v971_v52 = vrot.slane %v970_v42, 4  ;;  %v979_v54 = vrot.slane %v977_v32, 4  ;;  %v400_v55 = vshrl.u32 %v289_v41, 16  ;;  %v403_v59 = vshll.u32 %v289_v41, 16  ;;  %v293_v10 = vld [vmem:[%s5006_s19 + $0x38] sm:$0xf] }
  0x44   : > { %v962_v57 = vsel %vm5027_vm9, %v957_v49, %v961_v25  ;;  %v666_v58 = vsel %vm5035_vm10, %v381_v38, %v665_v40  ;;  %v408_v60 = vshrl.u32 %v290_v47, 16  ;;  %v396_v50 = vor.u32 %v394_v46, %v393_v53  ;;  %v682_v15 = vld [vmem:[#allocation3 + $0x54] sm:$0xf]  ;;  %v679_v16 = vld [vmem:[#allocation3 + $0x50] sm:$0x1] }
  0x45   : > { %v976_v26 = vsel %vm5027_vm9, %v971_v52, %v975_v43  ;;  %667 = vst [vmem:[#allocation3 + $0x38] sm:$0x1] %v666_v58  ;;  %v980_v61 = vor.u32 %v979_v54, %v975_v43  ;;  %v402_v62 = vrot.slane %v400_v55, 7  ;;  %v411_v2 = vshll.u32 %v290_v47, 16  ;;  %v294_v21 = vld [vmem:[%s5006_s19 + $0x3c] sm:$0xf] }
  0x46   : > { %v410_v1 = vrot.slane %v408_v60, 7  ;;  %v398_v3 = vrot.slane %v393_v53, 4  ;;  %v417_v5 = vshrl.u32 %v291_v56, 16  ;;  %v397_v6 = vsel %vm5020_vm8, %v389_v39, %v396_v50  ;;  %v689_v46 = vld [vmem:[#allocation3 + $0x60] sm:$0xf] }
  0x47   : > { %1265 = vrot.lane.b32.xlu1 %v962_v57, %s4892_s20  ;;  %1267 = vrot.lane.b32.xlu0 %v976_v26, %s4892_s20  ;;  %v5116_v7 = vrot.slane %v980_v61, 4  ;;  %v405_v8 = vor.u32 %v403_v59, %v402_v62  ;;  %v406_v9 = vrot.slane %v402_v62, 4  ;;  %671 = vst.msk [vmem:[#allocation3 + $0x40] sm:$0xf] %vm223_vm0, %v397_v6  ;;  %v420_v14 = vshll.u32 %v291_v56, 16 }
  0x48   : > { %v413_v11 = vor.u32 %v411_v2, %v410_v1  ;;  %v673_v12 = vsel %vm5035_vm10, %v398_v3, %v672_v0  ;;  %v419_v13 = vrot.slane %v417_v5, 7  ;;  %v425_v18 = vshrl.u32 %v292_v4, 16  ;;  %v686_v38 = vld [vmem:[#allocation3 + $0x5c] sm:$0x1] }
  0x49   : > { %v676_v17 = vsel %vm5013_vm7, %v405_v8, %v675_v63  ;;  %674 = vst [vmem:[#allocation3 + $0x44] sm:$0x1] %v673_v12  ;;  %v428_v19 = vshll.u32 %v292_v4, 16  ;;  %v415_v20 = vrot.slane %v410_v1, 4  ;;  %v831_v23 = vld [vmem:[#allocation3 + $0x3c] sm:$0xf] }
  0x4a   : > { %v414_v24 = vsel %vm5020_vm8, %v406_v9, %v413_v11  ;;  %677 = vst [vmem:[#allocation3 + $0x48] sm:$0xf] %v676_v17  ;;  %v422_v25 = vor.u32 %v420_v14, %v419_v13  ;;  %v423_v27 = vrot.slane %v419_v13, 4  ;;  %v434_v28 = vshrl.u32 %v293_v10, 16  ;;  %v5146_v1 = vld [vmem:[%s5006_s19 + $0x40] sm:$0xf] }
  0x4b   : > { %v988_v29 = vshrl.u32 %v831_v23, 16  ;;  %v991_v31 = vshll.u32 %v831_v23, 16  ;;  %678 = vst.msk [vmem:[#allocation3 + $0x4c] sm:$0xf] %vm223_vm0, %v414_v24  ;;  %v427_v32 = vrot.slane %v425_v18, 7  ;;  %v680_v33 = vsel %vm5035_vm10, %v415_v20, %v679_v16 }
  0x4c   : > { %v830_v35 = vld [vmem:[#allocation3 + $0x38] sm:$0x1]  ;;  %v683_v36 = vsel %vm5013_vm7, %v422_v25, %v682_v15  ;;  %681 = vst [vmem:[#allocation3 + $0x50] sm:$0x1] %v680_v33  ;;  %v436_v37 = vrot.slane %v434_v28, 7  ;;  %v437_v39 = vshll.u32 %v293_v10, 16 }
  0x4d   : > { %v442_v40 = vshrl.u32 %v294_v21, 16  ;;  %v990_v41 = vrot.slane %v988_v29, 4  ;;  %v993_v42 = vrot.slane %v991_v31, 5  ;;  %v983_v43 = vshll.u32 %v830_v35, 16  ;;  %684 = vst [vmem:[#allocation3 + $0x54] sm:$0xf] %v683_v36 }
  0x4e   : > { %v430_v44 = vor.u32 %v428_v19, %v427_v32  ;;  %v439_v47 = vor.u32 %v437_v39, %v436_v37  ;;  %v440_v48 = vrot.slane %v436_v37, 4  ;;  %v445_v51 = vshll.u32 %v294_v21, 16  ;;  %v832_v52 = vld [vmem:[#allocation3 + $0x40] sm:$0xf] }
  0x4f   : > { %v5132_v49 = vrot.slane %v442_v40, 7  ;;  %v994_v53 = vor.u32 %v993_v42, %v990_v41  ;;  %v985_v54 = vrot.slane %v983_v43, 5  ;;  %v432_v56 = vrot.slane %v427_v32, 4 }
  0x50   : > { %v431_v55 = vsel %vm5020_vm8, %v423_v27, %v430_v44  ;;  %v997_v57 = vshll.u32 %v832_v52, 16  ;;  %v1001_v58 = vshrl.u32 %v832_v52, 16  ;;  %v833_v59 = vld [vmem:[#allocation3 + $0x44] sm:$0x1]  ;;  %v690_v26 = vsel %vm5013_vm7, %v439_v47, %v689_v46 }
  0x51   : > { %685 = vst.msk [vmem:[#allocation3 + $0x58] sm:$0xf] %vm223_vm0, %v431_v55  ;;  %v447_v60 = vor.u32 %v445_v51, %v5132_v49  ;;  %v995_v50 = vrot.slane %v994_v53, 4  ;;  %v986_v61 = vsel %vm5027_vm9, %v5116_v7, %v985_v54  ;;  %v834_v62 = vld [vmem:[#allocation3 + $0x48] sm:$0xf]  ;;  %v1007_v63 = vshll.u32 %v833_v59, 16 }
  0x52   : > { %691 = vst [vmem:[#allocation3 + $0x60] sm:$0xf] %v690_v26  ;;  %v687_v0 = vsel %vm5035_vm10, %v432_v56, %v686_v38  ;;  %v999_v2 = vrot.slane %v997_v57, 5  ;;  %1269 = vrot.lane.b32.xlu1 %v986_v61, %s4892_s20  ;;  %v835_v3 = vld [vmem:[#allocation3 + $0x4c] sm:$0xf]  ;;  %v1012_v4 = vshrl.u32 %v834_v62, 16 }
  0x53   : > { %v1015_v5 = vshll.u32 %v834_v62, 16  ;;  %v1003_v6 = vrot.slane %v1001_v58, 4  ;;  %688 = vst [vmem:[#allocation3 + $0x5c] sm:$0x1] %v687_v0  ;;  %v1021_v8 = vshll.u32 %v835_v3, 16  ;;  %v1025_v9 = vshrl.u32 %v835_v3, 16 }
  0x54   : > { %v1009_v10 = vrot.slane %v1007_v63, 5  ;;  %v836_v7 = vld [vmem:[#allocation3 + $0x50] sm:$0x1]  ;;  %v448_v11 = vsel %vm5020_vm8, %v440_v48, %v447_v60  ;;  %v1000_v12 = vsel %vm5027_vm9, %v995_v50, %v999_v2  ;;  %v1014_v13 = vrot.slane %v1012_v4, 4  ;;  %v837_v16 = vld [vmem:[#allocation3 + $0x54] sm:$0xf] }
  0x55   : > { %v1017_v14 = vrot.slane %v1015_v5, 5  ;;  %v1004_v15 = vor.u32 %v1003_v6, %v999_v2  ;;  %692 = vst.msk [vmem:[#allocation3 + $0x64] sm:$0xf] %vm223_vm0, %v448_v11  ;;  %1271 = vrot.lane.b32.xlu0 %v1000_v12, %s4892_s20  ;;  %v1023_v17 = vrot.slane %v1021_v8, 5  ;;  %v1036_v18 = vshrl.u32 %v837_v16, 16 }
  0x56   : > { %v1039_v19 = vshll.u32 %v837_v16, 16  ;;  %v1027_v20 = vrot.slane %v1025_v9, 4  ;;  %v1031_v24 = vshll.u32 %v836_v7, 16  ;;  %v451_v25 = vshrl.u32 %v5146_v1, 16  ;;  %v296_v38 = vld [vmem:[%s5006_s19 + $0x44] sm:$0xf] }
  0x57   : > { %v1018_v21 = vor.u32 %v1017_v14, %v1014_v13  ;;  %v1005_v23 = vrot.slane %v1004_v15, 4  ;;  %v1038_v28 = vrot.slane %v1036_v18, 4  ;;  %v454_v32 = vshll.u32 %v5146_v1, 16  ;;  %v696_v26 = vld [vmem:[#allocation3 + $0x6c] sm:$0xf] }
  0x58   : > { %v838_v27 = vld [vmem:[#allocation3 + $0x58] sm:$0xf]  ;;  %v1041_v29 = vrot.slane %v1039_v19, 5  ;;  %v1028_v31 = vor.u32 %v1027_v20, %v1023_v17  ;;  %v1033_v42 = vrot.slane %v1031_v24, 5  ;;  %v453_v62 = vrot.slane %v451_v25, 7 }
  0x59   : > { %v1019_v33 = vrot.slane %v1018_v21, 4  ;;  %v1010_v35 = vsel %vm5027_vm9, %v1005_v23, %v1009_v10  ;;  %v1045_v36 = vshll.u32 %v838_v27, 16  ;;  %v1049_v37 = vshrl.u32 %v838_v27, 16  ;;  %v840_v39 = vld [vmem:[#allocation3 + $0x60] sm:$0xf] }
  0x5a   : > { %1273 = vrot.lane.b32.xlu1 %v1010_v35, %s4892_s20  ;;  %v1042_v40 = vor.u32 %v1041_v29, %v1038_v28  ;;  %v1029_v41 = vrot.slane %v1028_v31, 4  ;;  %v1060_v43 = vshrl.u32 %v840_v39, 16  ;;  %v839_v44 = vld [vmem:[#allocation3 + $0x5c] sm:$0x1]  ;;  %v1063_v48 = vshll.u32 %v840_v39, 16 }
  0x5b   : > { %v1024_v46 = vsel %vm5027_vm9, %v1019_v33, %v1023_v17  ;;  %v1047_v47 = vrot.slane %v1045_v36, 5  ;;  %v1051_v51 = vrot.slane %v1049_v37, 4  ;;  %v1055_v56 = vshll.u32 %v839_v44, 16  ;;  %v297_v0 = vld [vmem:[%s5006_s19 + $0x48] sm:$0xf] }
  0x5c   : > { %1275 = vrot.lane.b32.xlu0 %v1024_v46, %s4892_s20  ;;  %v1043_v52 = vrot.slane %v1042_v40, 4  ;;  %v1034_v53 = vsel %vm5027_vm9, %v1029_v41, %v1033_v42  ;;  %v841_v54 = vld [vmem:[#allocation3 + $0x64] sm:$0xf]  ;;  %v1062_v55 = vrot.slane %v1060_v43, 4  ;;  %v1065_v57 = vrot.slane %v1063_v48, 5 }
  0x5d   : > { %v1069_v58 = vshll.u32 %v841_v54, 16  ;;  %v1073_v59 = vshrl.u32 %v841_v54, 16  ;;  %v1052_v60 = vor.u32 %v1051_v51, %v1047_v47  ;;  %v1057_v61 = vrot.slane %v1055_v56, 5  ;;  %v693_v5 = vld [vmem:[#allocation3 + $0x68] sm:$0x1] }
  0x5e   : > { %v1048_v50 = vsel %vm5027_vm9, %v1043_v52, %v1047_v47  ;;  %1277 = vrot.lane.b32.xlu1 %v1034_v53, %s4892_s20  ;;  %v459_v63 = vshrl.u32 %v296_v38, 16  ;;  %v1066_v1 = vor.u32 %v1065_v57, %v1062_v55  ;;  %v462_v4 = vshll.u32 %v296_v38, 16  ;;  %v298_v7 = vld [vmem:[%s5006_s19 + $0x4c] sm:$0xf]  ;;  %v299_v15 = vld [vmem:[%s5006_s19 + $0x50] sm:$0xf] }
  0x5f   : > { %v1071_v2 = vrot.slane %v1069_v58, 5  ;;  %v1053_v3 = vrot.slane %v1052_v60, 4  ;;  %v456_v6 = vor.u32 %v454_v32, %v453_v62  ;;  %v457_v8 = vrot.slane %v453_v62, 4  ;;  %v700_v25 = vld [vmem:[#allocation3 + $0x74] sm:$0x1] }
  0x60   : > { %1279 = vrot.lane.b32.xlu0 %v1048_v50, %s4892_s20  ;;  %v461_v9 = vrot.slane %v459_v63, 7  ;;  %v449_v10 = vrot.slane %v5132_v49, 4  ;;  %v1067_v11 = vrot.slane %v1066_v1, 4  ;;  %v1075_v13 = vrot.slane %v1073_v59, 4  ;;  %v703_v49 = vld [vmem:[#allocation3 + $0x78] sm:$0xf] }
  0x61   : > { %v1058_v12 = vsel %vm5027_vm9, %v1053_v3, %v1057_v61  ;;  %v468_v14 = vshrl.u32 %v297_v0, 16  ;;  %v697_v17 = vsel %vm5013_vm7, %v456_v6, %v696_v26  ;;  %v471_v19 = vshll.u32 %v297_v0, 16  ;;  %v300_v27 = vld [vmem:[%s5006_s19 + $0x54] sm:$0xf]  ;;  %v707_v33 = vld [vmem:[#allocation3 + $0x80] sm:$0x1] }
  0x62   : > { %1281 = vrot.lane.b32.xlu1 %v1058_v12, %s4892_s20  ;;  %v464_v16 = vor.u32 %v462_v4, %v461_v9  ;;  %v694_v18 = vsel %vm5035_vm10, %v449_v10, %v693_v5  ;;  %v1072_v20 = vsel %vm5027_vm9, %v1067_v11, %v1071_v2  ;;  %698 = vst [vmem:[#allocation3 + $0x6c] sm:$0xf] %v697_v17  ;;  %v476_v24 = vshrl.u32 %v298_v7, 16  ;;  %v301_v40 = vld [vmem:[%s5006_s19 + $0x58] sm:$0xf] }
  0x63   : > { %695 = vst [vmem:[#allocation3 + $0x68] sm:$0x1] %v694_v18  ;;  %v1076_v21 = vor.u32 %v1075_v13, %v1071_v2  ;;  %v470_v23 = vrot.slane %v468_v14, 7  ;;  %v479_v29 = vshll.u32 %v298_v7, 16  ;;  %v466_v31 = vrot.slane %v461_v9, 4 }
  0x64   : > { %1283 = vrot.lane.b32.xlu0 %v1072_v20, %s4892_s20  ;;  %v465_v28 = vsel %vm5020_vm8, %v457_v8, %v464_v16  ;;  %v485_v32 = vshrl.u32 %v299_v15, 16  ;;  %v478_v39 = vrot.slane %v476_v24, 7  ;;  %v488_v43 = vshll.u32 %v299_v15, 16  ;;  %v302_v46 = vld [vmem:[%s5006_s19 + $0x5c] sm:$0xf] }
  0x65   : > { %699 = vst.msk [vmem:[#allocation3 + $0x70] sm:$0xf] %vm223_vm0, %v465_v28  ;;  %v5188_v35 = vrot.slane %v1076_v21, 4  ;;  %v473_v36 = vor.u32 %v471_v19, %v470_v23  ;;  %v474_v37 = vrot.slane %v470_v23, 4  ;;  %v701_v41 = vsel %vm5035_vm10, %v466_v31, %v700_v25  ;;  %v710_v38 = vld [vmem:[#allocation3 + $0x84] sm:$0xf] }
  0x66   : > { %v487_v42 = vrot.slane %v485_v32, 7  ;;  %v493_v44 = vshrl.u32 %v300_v27, 16  ;;  %v481_v47 = vor.u32 %v479_v29, %v478_v39  ;;  %702 = vst [vmem:[#allocation3 + $0x74] sm:$0x1] %v701_v41  ;;  %v496_v51 = vshll.u32 %v300_v27, 16 }
  0x67   : > { %v704_v48 = vsel %vm5013_vm7, %v473_v36, %v703_v49  ;;  %v483_v52 = vrot.slane %v478_v39, 4  ;;  %v502_v56 = vshrl.u32 %v301_v40, 16  ;;  %v505_v59 = vshll.u32 %v301_v40, 16  ;;  %v717_v26 = vld [vmem:[#allocation3 + $0x90] sm:$0xf] }
  0x68   : > { %705 = vst [vmem:[#allocation3 + $0x78] sm:$0xf] %v704_v48  ;;  %v490_v53 = vor.u32 %v488_v43, %v487_v42  ;;  %v491_v54 = vrot.slane %v487_v42, 4  ;;  %v495_v55 = vrot.slane %v493_v44, 7  ;;  %v482_v57 = vsel %vm5020_vm8, %v474_v37, %v481_v47  ;;  %v714_v6 = vld [vmem:[#allocation3 + $0x8c] sm:$0x1] }
  0x69   : > { %v708_v58 = vsel %vm5035_vm10, %v483_v52, %v707_v33  ;;  %v510_v60 = vshrl.u32 %v302_v46, 16  ;;  %v843_v50 = vld [vmem:[#allocation3 + $0x6c] sm:$0xf]  ;;  %706 = vst.msk [vmem:[#allocation3 + $0x7c] sm:$0xf] %vm223_vm0, %v482_v57  ;;  %v504_v0 = vrot.slane %v502_v56, 7 }
  0x6a   : > { %v842_v61 = vld [vmem:[#allocation3 + $0x68] sm:$0x1]  ;;  %v498_v62 = vor.u32 %v496_v51, %v495_v55  ;;  %v711_v63 = vsel %vm5013_vm7, %v490_v53, %v710_v38  ;;  %709 = vst [vmem:[#allocation3 + $0x80] sm:$0x1] %v708_v58  ;;  %v513_v1 = vshll.u32 %v302_v46, 16  ;;  %v1084_v2 = vshrl.u32 %v843_v50, 16 }
  0x6b   : > { %v1087_v3 = vshll.u32 %v843_v50, 16  ;;  %v1079_v4 = vshll.u32 %v842_v61, 16  ;;  %712 = vst [vmem:[#allocation3 + $0x84] sm:$0xf] %v711_v63  ;;  %v5203_v5 = vrot.slane %v510_v60, 7  ;;  %v507_v10 = vor.u32 %v505_v59, %v504_v0 }
  0x6c   : > { %v844_v8 = vld [vmem:[#allocation3 + $0x70] sm:$0xf]  ;;  %v499_v9 = vsel %vm5020_vm8, %v491_v54, %v498_v62  ;;  %v508_v7 = vrot.slane %v504_v0, 4  ;;  %v500_v11 = vrot.slane %v495_v55, 4  ;;  %v1086_v12 = vrot.slane %v1084_v2, 4 }
  0x6d   : > { %v1089_v13 = vrot.slane %v1087_v3, 5  ;;  %v1093_v14 = vshll.u32 %v844_v8, 16  ;;  %v1097_v15 = vshrl.u32 %v844_v8, 16  ;;  %713 = vst.msk [vmem:[#allocation3 + $0x88] sm:$0xf] %vm223_vm0, %v499_v9  ;;  %v1081_v16 = vrot.slane %v1079_v4, 5 }
  0x6e   : > { %v845_v17 = vld [vmem:[#allocation3 + $0x74] sm:$0x1]  ;;  %v515_v18 = vor.u32 %v513_v1, %v5203_v5  ;;  %v718_v19 = vsel %vm5013_vm7, %v507_v10, %v717_v26  ;;  %v715_v49 = vsel %vm5035_vm10, %v500_v11, %v714_v6  ;;  %v303_v62 = vld [vmem:[%s5006_s19 + $0x60] sm:$0xf]  ;;  %vm1687_vm15 = vcmask 93248  }
  0x6f   : > { %v1090_v20 = vor.u32 %v1089_v13, %v1086_v12  ;;  %v1095_v21 = vrot.slane %v1093_v14, 5  ;;  %v846_v23 = vld [vmem:[#allocation3 + $0x78] sm:$0xf]  ;;  %v1099_v24 = vrot.slane %v1097_v15, 4  ;;  %v1103_v25 = vshll.u32 %v845_v17, 16 }
  0x70   : > { %719 = vst [vmem:[#allocation3 + $0x90] sm:$0xf] %v718_v19  ;;  %716 = vst [vmem:[#allocation3 + $0x8c] sm:$0x1] %v715_v49  ;;  %v1082_v27 = vsel %vm5027_vm9, %v5188_v35, %v1081_v16  ;;  %v1108_v28 = vshrl.u32 %v846_v23, 16  ;;  %v1111_v29 = vshll.u32 %v846_v23, 16  ;;  %v516_v31 = vsel %vm5020_vm8, %v508_v7, %v515_v18 }
  0x71   : > { %v1091_v32 = vrot.slane %v1090_v20, 4  ;;  %1285 = vrot.lane.b32.xlu1 %v1082_v27, %s4892_s20  ;;  %v847_v33 = vld [vmem:[#allocation3 + $0x7c] sm:$0xf]  ;;  %v1100_v36 = vor.u32 %v1099_v24, %v1095_v21  ;;  %v1105_v37 = vrot.slane %v1103_v25, 5  ;;  %v848_v39 = vld [vmem:[#allocation3 + $0x80] sm:$0x1] }
  0x72   : > { %720 = vst.msk [vmem:[#allocation3 + $0x94] sm:$0xf] %vm223_vm0, %v516_v31  ;;  %v1110_v40 = vrot.slane %v1108_v28, 4  ;;  %v1113_v41 = vrot.slane %v1111_v29, 5  ;;  %v1117_v42 = vshll.u32 %v847_v33, 16  ;;  %v1121_v43 = vshrl.u32 %v847_v33, 16 }
  0x73   : > { %v849_v44 = vld [vmem:[#allocation3 + $0x84] sm:$0xf]  ;;  %v1096_v35 = vsel %vm5027_vm9, %v1091_v32, %v1095_v21  ;;  %v1101_v46 = vrot.slane %v1100_v36, 4  ;;  %v1127_v54 = vshll.u32 %v848_v39, 16  ;;  %v519_v21 = vshrl.u32 %v303_v62, 16 }
  0x74   : > { %v1132_v47 = vshrl.u32 %v849_v44, 16  ;;  %v1135_v48 = vshll.u32 %v849_v44, 16  ;;  %1287 = vrot.lane.b32.xlu0 %v1096_v35, %s4892_s20  ;;  %v1114_v51 = vor.u32 %v1113_v41, %v1110_v40  ;;  %v1119_v38 = vrot.slane %v1117_v42, 5  ;;  %v850_v52 = vld [vmem:[#allocation3 + $0x88] sm:$0xf] }
  0x75   : > { %v1123_v53 = vrot.slane %v1121_v43, 4  ;;  %v1106_v55 = vsel %vm5027_vm9, %v1101_v46, %v1105_v37  ;;  %v1141_v58 = vshll.u32 %v850_v52, 16  ;;  %v1145_v60 = vshrl.u32 %v850_v52, 16  ;;  %v304_v14 = vld [vmem:[%s5006_s19 + $0x64] sm:$0xf] }
  0x76   : > { %v1134_v56 = vrot.slane %v1132_v47, 4  ;;  %v1137_v57 = vrot.slane %v1135_v48, 5  ;;  %v1115_v59 = vrot.slane %v1114_v51, 4  ;;  %1289 = vrot.lane.b32.xlu1 %v1106_v55, %s4892_s20  ;;  %v1129_v50 = vrot.slane %v1127_v54, 5  ;;  %v305_v23 = vld [vmem:[%s5006_s19 + $0x68] sm:$0xf] }
  0x77   : > { %v1124_v26 = vor.u32 %v1123_v53, %v1119_v38  ;;  %v852_v61 = vld [vmem:[#allocation3 + $0x90] sm:$0xf]  ;;  %v1143_v0 = vrot.slane %v1141_v58, 5  ;;  %v851_v3 = vld [vmem:[#allocation3 + $0x8c] sm:$0x1]  ;;  %v1147_v9 = vrot.slane %v1145_v60, 4 }
  0x78   : > { %v1138_v63 = vor.u32 %v1137_v57, %v1134_v56  ;;  %v1156_v1 = vshrl.u32 %v852_v61, 16  ;;  %v1159_v2 = vshll.u32 %v852_v61, 16  ;;  %v1120_v4 = vsel %vm5027_vm9, %v1115_v59, %v1119_v38  ;;  %v724_v29 = vld [vmem:[#allocation3 + $0x9c] sm:$0xf]  ;;  %v721_v31 = vld [vmem:[#allocation3 + $0x98] sm:$0x1] }
  0x79   : > { %v1125_v6 = vrot.slane %v1124_v26, 4  ;;  %v853_v8 = vld [vmem:[#allocation3 + $0x94] sm:$0xf]  ;;  %v1151_v10 = vshll.u32 %v851_v3, 16  ;;  %1291 = vrot.lane.b32.xlu0 %v1120_v4, %s4892_s20  ;;  %v1148_v17 = vor.u32 %v1147_v9, %v1143_v0  ;;  %v522_v25 = vshll.u32 %v303_v62, 16 }
  0x7a   : > { %v1139_v7 = vrot.slane %v1138_v63, 4  ;;  %v1158_v11 = vrot.slane %v1156_v1, 4  ;;  %v1161_v12 = vrot.slane %v1159_v2, 5  ;;  %v1165_v13 = vshll.u32 %v853_v8, 16  ;;  %v306_v39 = vld [vmem:[%s5006_s19 + $0x6c] sm:$0xf] }
  0x7b   : > { %v1130_v15 = vsel %vm5027_vm9, %v1125_v6, %v1129_v50  ;;  %v1169_v16 = vshrl.u32 %v853_v8, 16  ;;  %v1153_v18 = vrot.slane %v1151_v10, 5  ;;  %v1149_v24 = vrot.slane %v1148_v17, 4  ;;  %v307_v44 = vld [vmem:[%s5006_s19 + $0x70] sm:$0xf] }
  0x7c   : > { %v1144_v19 = vsel %vm5027_vm9, %v1139_v7, %v1143_v0  ;;  %1293 = vrot.lane.b32.xlu1 %v1130_v15, %s4892_s20  ;;  %v1162_v49 = vor.u32 %v1161_v12, %v1158_v11  ;;  %v5236_v20 = vrot.slane %v1165_v13, 5  ;;  %v527_v27 = vshrl.u32 %v304_v14, 16  ;;  %v731_v52 = vld [vmem:[#allocation3 + $0xa8] sm:$0xf]  ;;  %v728_v53 = vld [vmem:[#allocation3 + $0xa4] sm:$0x1] }
  0x7d   : > { %v530_v28 = vshll.u32 %v304_v14, 16  ;;  %1295 = vrot.lane.b32.xlu0 %v1144_v19, %s4892_s20  ;;  %v521_v33 = vrot.slane %v519_v21, 7  ;;  %v517_v36 = vrot.slane %v5203_v5, 4  ;;  %v1171_v37 = vrot.slane %v1169_v16, 4  ;;  %v308_v57 = vld [vmem:[%s5006_s19 + $0x74] sm:$0xf] }
  0x7e   : > { %v1163_v32 = vrot.slane %v1162_v49, 4  ;;  %v1154_v40 = vsel %vm5027_vm9, %v1149_v24, %v1153_v18  ;;  %v529_v41 = vrot.slane %v527_v27, 7  ;;  %v536_v42 = vshrl.u32 %v305_v23, 16  ;;  %v738_v1 = vld [vmem:[#allocation3 + $0xb4] sm:$0xf] }
  0x7f   : > { %v539_v43 = vshll.u32 %v305_v23, 16  ;;  %v524_v46 = vor.u32 %v522_v25, %v521_v33  ;;  %v525_v47 = vrot.slane %v521_v33, 4  ;;  %v722_v5 = vsel %vm5035_vm10, %v517_v36, %v721_v31  ;;  %v735_v6 = vld [vmem:[#allocation3 + $0xb0] sm:$0x1]  ;;  %v752_v8 = vld [vmem:[#allocation3] sm:$0xf] }
  0x80   : > { %v1168_v35 = vsel %vm5027_vm9, %v1163_v32, %v5236_v20  ;;  %1297 = vrot.lane.b32.xlu1 %v1154_v40, %s4892_s20  ;;  %v532_v48 = vor.u32 %v530_v28, %v529_v41  ;;  %723 = vst [vmem:[#allocation3 + $0x98] sm:$0x1] %v722_v5  ;;  %v538_v51 = vrot.slane %v536_v42, 7  ;;  %v544_v38 = vshrl.u32 %v306_v39, 16  ;;  %784 = vst.msk [vmem:[#allocation2] sm:$0xf] %vm223_vm0, %v752_v8 }
  0x81   : > { %1299 = vrot.lane.b32.xlu0 %v1168_v35, %s4892_s20  ;;  %v725_v54 = vsel %vm5013_vm7, %v524_v46, %v724_v29  ;;  %v547_v55 = vshll.u32 %v306_v39, 16  ;;  %v534_v56 = vrot.slane %v529_v41, 4  ;;  %v553_v58 = vshrl.u32 %v307_v44, 16  ;;  %v753_v11 = vld [vmem:[#allocation3 + $0x4] sm:$0xf] }
  0x82   : > { %v533_v59 = vsel %vm5020_vm8, %v525_v47, %v532_v48  ;;  %726 = vst [vmem:[#allocation3 + $0x9c] sm:$0xf] %v725_v54  ;;  %v1172_v60 = vor.u32 %v1171_v37, %v5236_v20  ;;  %v541_v26 = vor.u32 %v539_v43, %v538_v51  ;;  %v542_v50 = vrot.slane %v538_v51, 4  ;;  %v754_v12 = vld [vmem:[#allocation3 + $0xc] sm:$0xf] }
  0x83   : > { %727 = vst.msk [vmem:[#allocation3 + $0xa0] sm:$0xf] %vm223_vm0, %v533_v59  ;;  %v546_v61 = vrot.slane %v544_v38, 7  ;;  %v729_v62 = vsel %vm5035_vm10, %v534_v56, %v728_v53  ;;  %v555_v63 = vrot.slane %v553_v58, 7  ;;  %v556_v0 = vshll.u32 %v307_v44, 16 }
  0x84   : > { %v732_v2 = vsel %vm5013_vm7, %v541_v26, %v731_v52  ;;  %730 = vst [vmem:[#allocation3 + $0xa4] sm:$0x1] %v729_v62  ;;  %v561_v3 = vshrl.u32 %v308_v57, 16  ;;  %v564_v4 = vshll.u32 %v308_v57, 16  ;;  %785 = vst.msk [vmem:[#allocation2 + $0x4] sm:$0xf] %vm223_vm0, %v753_v11 }
  0x85   : > { %v549_v9 = vor.u32 %v547_v55, %v546_v61  ;;  %733 = vst [vmem:[#allocation3 + $0xa8] sm:$0xf] %v732_v2  ;;  %v558_v10 = vor.u32 %v556_v0, %v555_v63  ;;  %v551_v7 = vrot.slane %v546_v61, 4  ;;  %v559_v13 = vrot.slane %v555_v63, 4  ;;  %786 = vst.msk [vmem:[#allocation2 + $0x8] sm:$0xf] %vm223_vm0, %v754_v12 }
  0x86   : > { %v563_v14 = vrot.slane %v561_v3, 7  ;;  %v756_v15 = vld [vmem:[#allocation3 + $0x18] sm:$0xf]  ;;  %v1173_v17 = vrot.slane %v1172_v60, 4  ;;  %v742_v20 = vld [vmem:[#allocation3 + $0xbc] sm:$0x1] }
  0x87   : > { %v854_v16 = vld [vmem:[#allocation3 + $0x98] sm:$0x1]  ;;  %v550_v18 = vsel %vm5020_vm8, %v542_v50, %v549_v9  ;;  %v739_v19 = vsel %vm5013_vm7, %v558_v10, %v738_v1  ;;  %v736_v49 = vsel %vm5035_vm10, %v551_v7, %v735_v6  ;;  %788 = vst.msk [vmem:[#allocation2 + $0x10] sm:$0xf] %vm223_vm0, %v756_v15  ;;  %v755_v25 = vld [vmem:[#allocation3 + $0x10] sm:$0xf] }
  0x88   : > { %v1175_v21 = vshll.u32 %v854_v16, 16  ;;  %734 = vst.msk [vmem:[#allocation3 + $0xac] sm:$0xf] %vm223_vm0, %v550_v18  ;;  %v566_v23 = vor.u32 %v564_v4, %v563_v14  ;;  %740 = vst [vmem:[#allocation3 + $0xb4] sm:$0xf] %v739_v19  ;;  %v568_v24 = vrot.slane %v563_v14, 4 }
  0x89   : > { %737 = vst [vmem:[#allocation3 + $0xb0] sm:$0x1] %v736_v49  ;;  %v758_v27 = vld [vmem:[#allocation3 + $0x24] sm:$0xf]  ;;  %v855_v28 = vld [vmem:[#allocation3 + $0x9c] sm:$0xf] }
  0x8a   : > { %787 = vst.msk [vmem:[#allocation2 + $0xc] sm:$0xf] %vm223_vm0, %v755_v25  ;;  %790 = vst.msk [vmem:[#allocation2 + $0x18] sm:$0xf] %vm223_vm0, %v758_v27  ;;  %v856_v29 = vld [vmem:[#allocation3 + $0xa0] sm:$0xf]  ;;  %v567_v36 = vsel %vm5020_vm8, %v559_v13, %v566_v23  ;;  %v743_v41 = vsel %vm5035_vm10, %v568_v24, %v742_v20 }
  0x8b   : > { %v1180_v31 = vshrl.u32 %v855_v28, 16  ;;  %v1183_v32 = vshll.u32 %v855_v28, 16  ;;  %v1177_v33 = vrot.slane %v1175_v21, 5  ;;  %v1189_v37 = vshll.u32 %v856_v29, 16  ;;  %v857_v40 = vld [vmem:[#allocation3 + $0xa4] sm:$0x1] }
  0x8c   : > { %v1193_v39 = vshrl.u32 %v856_v29, 16  ;;  %741 = vst.msk [vmem:[#allocation3 + $0xb8] sm:$0xf] %vm223_vm0, %v567_v36  ;;  %v858_v35 = vld [vmem:[#allocation3 + $0xa8] sm:$0xf]  ;;  %v1199_v46 = vshll.u32 %v857_v40, 16 }
  0x8d   : > { %v1182_v42 = vrot.slane %v1180_v31, 4  ;;  %v1185_v43 = vrot.slane %v1183_v32, 5  ;;  %v1178_v44 = vsel %vm5027_vm9, %v1173_v17, %v1177_v33  ;;  %744 = vst [vmem:[#allocation3 + $0xbc] sm:$0x1] %v743_v41  ;;  %v1191_v47 = vrot.slane %v1189_v37, 5 }
  0x8e   : > { %1301 = vrot.lane.b32.xlu1 %v1178_v44, %s4892_s20  ;;  %v1204_v5 = vshrl.u32 %v858_v35, 16  ;;  %v1207_v48 = vshll.u32 %v858_v35, 16  ;;  %v1195_v51 = vrot.slane %v1193_v39, 4  ;;  %v1201_v52 = vrot.slane %v1199_v46, 5  ;;  %v1380_v15 = vld [vmem:[#allocation3] sm:$0xe] }
  0x8f   : > { %v1186_v38 = vor.u32 %v1185_v43, %v1182_v42  ;;  %v859_v53 = vld [vmem:[#allocation3 + $0xac] sm:$0xf]  ;;  %v861_v57 = vld [vmem:[#allocation3 + $0xb4] sm:$0xf]  ;;  %v1381_v49 = vld [vmem:[#allocation3 + $0x4] sm:$0xf] }
  0x90   : > { %v1206_v54 = vrot.slane %v1204_v5, 4  ;;  %v1209_v55 = vrot.slane %v1207_v48, 5  ;;  %v1196_v56 = vor.u32 %v1195_v51, %v1191_v47  ;;  %v1213_v59 = vshll.u32 %v859_v53, 16  ;;  %v860_v50 = vld [vmem:[#allocation3 + $0xb0] sm:$0x1] }
  0x91   : > { %v1187_v58 = vrot.slane %v1186_v38, 4  ;;  %v1217_v60 = vshrl.u32 %v859_v53, 16  ;;  %v1228_v26 = vshrl.u32 %v861_v57, 16  ;;  %v1231_v63 = vshll.u32 %v861_v57, 16  ;;  %v757_v23 = vld [vmem:[#allocation3 + $0x1c] sm:$0xf] }
  0x92   : > { %v1210_v61 = vor.u32 %v1209_v55, %v1206_v54  ;;  %v1197_v62 = vrot.slane %v1196_v56, 4  ;;  %v1223_v0 = vshll.u32 %v860_v50, 16  ;;  %v1215_v2 = vrot.slane %v1213_v59, 5  ;;  %v1382_v27 = vld [vmem:[#allocation3 + $0x8] sm:$0x1] }
  0x93   : > { %v1192_v1 = vsel %vm5027_vm9, %v1187_v58, %v1191_v47  ;;  %v862_v3 = vld [vmem:[#allocation3 + $0xb8] sm:$0xf]  ;;  %v1230_v4 = vrot.slane %v1228_v26, 4  ;;  %v1219_v6 = vrot.slane %v1217_v60, 4  ;;  %v1233_v10 = vrot.slane %v1231_v63, 5 }
  0x94   : > { %1303 = vrot.lane.b32.xlu0 %v1192_v1, %s4892_s20  ;;  %v1211_v8 = vrot.slane %v1210_v61, 4  ;;  %v1202_v9 = vsel %vm5027_vm9, %v1197_v62, %v1201_v52  ;;  %v1237_v7 = vshll.u32 %v862_v3, 16  ;;  %v863_v11 = vld [vmem:[#allocation3 + $0xbc] sm:$0x1]  ;;  %v1241_v12 = vshrl.u32 %v862_v3, 16 }
  0x95   : > { %1305 = vrot.lane.b32.xlu1 %v1202_v9, %s4892_s20  ;;  %v1220_v13 = vor.u32 %v1219_v6, %v1215_v2  ;;  %v1225_v14 = vrot.slane %v1223_v0, 5  ;;  %v1247_v16 = vshll.u32 %v863_v11, 16  ;;  %v1234_v18 = vor.u32 %v1233_v10, %v1230_v4  ;;  %789 = vst.msk [vmem:[#allocation2 + $0x14] sm:$0xf] %vm223_vm0, %v757_v23  ;;  %v760_v36 = vld [vmem:[#allocation3 + $0x30] sm:$0xf] }
  0x96   : > { %v1216_v17 = vsel %vm5027_vm9, %v1211_v8, %v1215_v2  ;;  %v1239_v19 = vrot.slane %v1237_v7, 5  ;;  %v1243_v21 = vrot.slane %v1241_v12, 4  ;;  %v4597_v25 = vrot.slane %v1380_v15, 9  ;;  %v1383_v39 = vld [vmem:[#allocation3 + $0xc] sm:$0xe] }
  0x97   : > { %v1221_v20 = vrot.slane %v1220_v13, 4  ;;  %v1235_v24 = vrot.slane %v1234_v18, 4  ;;  %v1481_v31 = vrot.slane %v1381_v49, 5  ;;  %v1249_v33 = vrot.slane %v1247_v16, 5  ;;  %v1384_v40 = vld [vmem:[#allocation3 + $0x10] sm:$0xf] }
  0x98   : > { %1307 = vrot.lane.b32.xlu0 %v1216_v17, %s4892_s20  ;;  %v1244_v32 = vor.u32 %v1243_v21, %v1239_v19  ;;  %792 = vst.msk [vmem:[#allocation2 + $0x20] sm:$0xf] %vm223_vm0, %v760_v36  ;;  %v759_v41 = vld [vmem:[#allocation3 + $0x28] sm:$0xf]  ;;  %v1484_v44 = vrot.slane %v1382_v27, 5  ;;  %v4598_v48 = vrot.slane %v1383_v39, 9 }
  0x99   : > { %v1226_v28 = vsel %vm5027_vm9, %v1221_v20, %v1225_v14  ;;  %v1240_v37 = vsel %vm5027_vm9, %v1235_v24, %v1239_v19  ;;  %v1483_v43 = vrot.slane %v1481_v31, 4  ;;  %791 = vst.msk [vmem:[#allocation2 + $0x1c] sm:$0xf] %vm223_vm0, %v759_v41  ;;  %v1385_v35 = vld [vmem:[#allocation3 + $0x14] sm:$0x1]  ;;  %v1482_v47 = vsel %vm5297_vm13, %v4597_v25, %v1481_v31 }
  0x9a   : > { %1309 = vrot.lane.b32.xlu1 %v1226_v28, %s4892_s20  ;;  %v1245_v42 = vrot.slane %v1244_v32, 4  ;;  %v762_v46 = vld [vmem:[#allocation3 + $0x3c] sm:$0xf]  ;;  %v1488_v51 = vrot.slane %v1384_v40, 5  ;;  %v761_v38 = vld [vmem:[#allocation3 + $0x34] sm:$0xf] }
  0x9b   : > { %794 = vst.msk [vmem:[#allocation2 + $0x28] sm:$0xf] %vm223_vm0, %v762_v46  ;;  %v1386_v52 = vld [vmem:[#allocation3 + $0x18] sm:$0xe]  ;;  %v1387_v53 = vld [vmem:[#allocation3 + $0x1c] sm:$0xf]  ;;  %v1485_v55 = vsel %vm5297_vm13, %v1483_v43, %v1484_v44 }
  0x9c   : > { %1311 = vrot.lane.b32.xlu0 %v1240_v37, %s4892_s20  ;;  %v1250_v5 = vsel %vm5027_vm9, %v1245_v42, %v1249_v33  ;;  %793 = vst.msk [vmem:[#allocation2 + $0x24] sm:$0xf] %vm223_vm0, %v761_v38  ;;  %v764_v54 = vld [vmem:[#allocation3 + $0x48] sm:$0xf]  ;;  %v1490_v56 = vrot.slane %v1488_v51, 4  ;;  %v1491_v57 = vrot.slane %v1385_v35, 5  ;;  %v1489_v60 = vsel %vm5297_vm13, %v4598_v48, %v1488_v51 }
  0x9d   : > { %796 = vst.msk [vmem:[#allocation2 + $0x30] sm:$0xf] %vm223_vm0, %v764_v54  ;;  %v763_v58 = vld [vmem:[#allocation3 + $0x40] sm:$0xf]  ;;  %v4599_v26 = vrot.slane %v1386_v52, 9  ;;  %v1495_v50 = vrot.slane %v1387_v53, 5 }
  0x9e   : > { %1313 = vrot.lane.b32.xlu1 %v1250_v5, %s4892_s20  ;;  %v1388_v59 = vld [vmem:[#allocation3 + $0x20] sm:$0x1]  ;;  %795 = vst.msk [vmem:[#allocation2 + $0x2c] sm:$0xf] %vm223_vm0, %v763_v58  ;;  %v1389_v61 = vld [vmem:[#allocation3 + $0x24] sm:$0xe]  ;;  %v1252_v62 = vpop.permute.xlu0 %1251  ;;  %v1492_v2 = vsel %vm5297_vm13, %v1490_v56, %v1491_v57 }
  0x9f   : > { %v1390_v63 = vld [vmem:[#allocation3 + $0x28] sm:$0xf]  ;;  %v766_v0 = vld [vmem:[#allocation3 + $0x54] sm:$0xf]  ;;  %v765_v1 = vld [vmem:[#allocation3 + $0x4c] sm:$0xf]  ;;  %v1496_v8 = vsel %vm5297_vm13, %v4599_v26, %v1495_v50 }
  0xa0   : > { %1591 = vrot.lane.b32.xlu0 %v1482_v47, %s4893_s21  ;;  %v1497_v3 = vrot.slane %v1495_v50, 4  ;;  %v1498_v4 = vrot.slane %v1388_v59, 5  ;;  %798 = vst.msk [vmem:[#allocation2 + $0x38] sm:$0xf] %vm223_vm0, %v766_v0  ;;  %797 = vst.msk [vmem:[#allocation2 + $0x34] sm:$0xf] %vm223_vm0, %v765_v1 }
  0xa1   : > { %v1391_v6 = vld [vmem:[#allocation3 + $0x2c] sm:$0x1]  ;;  %v4600_v9 = vrot.slane %v1389_v61, 9  ;;  %v1502_v10 = vrot.slane %v1390_v63, 5  ;;  %v768_v7 = vld [vmem:[#allocation3 + $0x60] sm:$0xf] }
  0xa2   : > { %1593 = vrot.lane.b32.xlu1 %v1485_v55, %s4893_s21  ;;  %v767_v11 = vld [vmem:[#allocation3 + $0x58] sm:$0xf]  ;;  %v1392_v12 = vld [vmem:[#allocation3 + $0x30] sm:$0xe]  ;;  %v1393_v13 = vld [vmem:[#allocation3 + $0x34] sm:$0xf]  ;;  %v1499_v14 = vsel %vm5297_vm13, %v1497_v3, %v1498_v4  ;;  %v1254_v17 = vpop.permute.xlu0 %1253 }
  0xa3   : > { %800 = vst.msk [vmem:[#allocation2 + $0x40] sm:$0xf] %vm223_vm0, %v768_v7  ;;  %799 = vst.msk [vmem:[#allocation2 + $0x3c] sm:$0xf] %vm223_vm0, %v767_v11  ;;  %v1504_v15 = vrot.slane %v1502_v10, 4  ;;  %v1505_v16 = vrot.slane %v1391_v6, 5  ;;  %v1503_v20 = vsel %vm5297_vm13, %v4600_v9, %v1502_v10 }
  0xa4   : > { %1595 = vrot.lane.b32.xlu0 %v1489_v60, %s4893_s21  ;;  %v1394_v18 = vld [vmem:[#allocation3 + $0x38] sm:$0x1]  ;;  %1348 = vst.msk [vmem:[#allocation2] sm:$0xf] %vm1347_vm14, %v1252_v62  ;;  %1349 = vst.msk [vmem:[#allocation2 + $0x4] sm:$0xf] %vm1347_vm14, %v1254_v17 }
  0xa5   : > { %v770_v19 = vld [vmem:[#allocation3 + $0x6c] sm:$0xf]  ;;  %v769_v49 = vld [vmem:[#allocation3 + $0x64] sm:$0xf]  ;;  %v4601_v21 = vrot.slane %v1392_v12, 9  ;;  %v1509_v23 = vrot.slane %v1393_v13, 5  ;;  %v1506_v27 = vsel %vm5297_vm13, %v1504_v15, %v1505_v16 }
  0xa6   : > { %1597 = vrot.lane.b32.xlu1 %v1492_v2, %s4893_s21  ;;  %802 = vst.msk [vmem:[#allocation2 + $0x48] sm:$0xf] %vm223_vm0, %v770_v19  ;;  %801 = vst.msk [vmem:[#allocation2 + $0x44] sm:$0xf] %vm223_vm0, %v769_v49  ;;  %v1395_v24 = vld [vmem:[#allocation3 + $0x3c] sm:$0xe] }
  0xa7   : > { %v1396_v25 = vld [vmem:[#allocation3 + $0x40] sm:$0xf]  ;;  %v1511_v28 = vrot.slane %v1509_v23, 4  ;;  %v1512_v31 = vrot.slane %v1394_v18, 5  ;;  %v772_v32 = vld [vmem:[#allocation3 + $0x78] sm:$0xf]  ;;  %v1510_v37 = vsel %vm5297_vm13, %v4601_v21, %v1509_v23 }
  0xa8   : > { %1599 = vrot.lane.b32.xlu0 %v1496_v8, %s4893_s21  ;;  %v1397_v33 = vld [vmem:[#allocation3 + $0x44] sm:$0x1]  ;;  %804 = vst.msk [vmem:[#allocation2 + $0x50] sm:$0xf] %vm223_vm0, %v772_v32  ;;  %v771_v36 = vld [vmem:[#allocation3 + $0x70] sm:$0xf] }
  0xa9   : > { %v4602_v39 = vrot.slane %v1395_v24, 9  ;;  %v1516_v40 = vrot.slane %v1396_v25, 5  ;;  %803 = vst.msk [vmem:[#allocation2 + $0x4c] sm:$0xf] %vm223_vm0, %v771_v36  ;;  %v774_v41 = vld [vmem:[#allocation3 + $0x84] sm:$0xf]  ;;  %v1513_v46 = vsel %vm5297_vm13, %v1511_v28, %v1512_v31 }
  0xaa   : > { %1601 = vrot.lane.b32.xlu1 %v1499_v14, %s4893_s21  ;;  %v1398_v42 = vld [vmem:[#allocation3 + $0x48] sm:$0xe]  ;;  %v1399_v43 = vld [vmem:[#allocation3 + $0x4c] sm:$0xf]  ;;  %806 = vst.msk [vmem:[#allocation2 + $0x58] sm:$0xf] %vm223_vm0, %v774_v41 }
  0xab   : > { %v773_v35 = vld [vmem:[#allocation3 + $0x7c] sm:$0xf]  ;;  %v1518_v47 = vrot.slane %v1516_v40, 4  ;;  %v1519_v5 = vrot.slane %v1397_v33, 5  ;;  %v776_v48 = vld [vmem:[#allocation3 + $0x90] sm:$0xf]  ;;  %v1517_v54 = vsel %vm5297_vm13, %v4602_v39, %v1516_v40 }
  0xac   : > { %1603 = vrot.lane.b32.xlu0 %v1503_v20, %s4893_s21  ;;  %805 = vst.msk [vmem:[#allocation2 + $0x54] sm:$0xf] %vm223_vm0, %v773_v35  ;;  %v775_v51 = vld [vmem:[#allocation3 + $0x88] sm:$0xf]  ;;  %v1400_v38 = vld [vmem:[#allocation3 + $0x50] sm:$0x1] }
  0xad   : > { %v1256_v44 = vpop.permute.xlu1 %1255  ;;  %808 = vst.msk [vmem:[#allocation2 + $0x60] sm:$0xf] %vm223_vm0, %v776_v48  ;;  %807 = vst.msk [vmem:[#allocation2 + $0x5c] sm:$0xf] %vm223_vm0, %v775_v51  ;;  %v778_v52 = vld [vmem:[#allocation3 + $0x9c] sm:$0xf]  ;;  %v1520_v61 = vsel %vm5297_vm13, %v1518_v47, %v1519_v5 }
  0xae   : > { %1605 = vrot.lane.b32.xlu1 %v1506_v27, %s4893_s21  ;;  %1350 = vst.msk [vmem:[#allocation2 + $0x8] sm:$0xf] %vm1347_vm14, %v1256_v44  ;;  %v777_v53 = vld [vmem:[#allocation3 + $0x94] sm:$0xf]  ;;  %v4603_v55 = vrot.slane %v1398_v42, 9  ;;  %v1523_v56 = vrot.slane %v1399_v43, 5 }
  0xaf   : > { %v1402_v57 = vld [vmem:[#allocation3 + $0x58] sm:$0xf]  ;;  %810 = vst.msk [vmem:[#allocation2 + $0x68] sm:$0xf] %vm223_vm0, %v778_v52  ;;  %809 = vst.msk [vmem:[#allocation2 + $0x64] sm:$0xf] %vm223_vm0, %v777_v53 }
  0xb0   : > { %1607 = vrot.lane.b32.xlu0 %v1510_v37, %s4893_s21  ;;  %v780_v58 = vld [vmem:[#allocation3 + $0xa8] sm:$0xf]  ;;  %v1401_v59 = vld [vmem:[#allocation3 + $0x54] sm:$0xe]  ;;  %v1403_v60 = vld [vmem:[#allocation3 + $0x5c] sm:$0x1]  ;;  %v1524_v6 = vsel %vm5297_vm13, %v4603_v55, %v1523_v56 }
  0xb1   : > { %v1258_v26 = vpop.permute.xlu1 %1257  ;;  %812 = vst.msk [vmem:[#allocation2 + $0x70] sm:$0xf] %vm223_vm0, %v780_v58  ;;  %v779_v50 = vld [vmem:[#allocation3 + $0xa0] sm:$0xf]  ;;  %v1525_v62 = vrot.slane %v1523_v56, 4  ;;  %v1526_v63 = vrot.slane %v1400_v38, 5  ;;  %v1260_v0 = vpop.permute.xlu0 %1259 }
  0xb2   : > { %1609 = vrot.lane.b32.xlu1 %v1513_v46, %s4893_s21  ;;  %1351 = vst.msk [vmem:[#allocation2 + $0xc] sm:$0xf] %vm1347_vm14, %v1258_v26  ;;  %v782_v1 = vld [vmem:[#allocation3 + $0xb4] sm:$0xf]  ;;  %v781_v2 = vld [vmem:[#allocation3 + $0xac] sm:$0xf] }
  0xb3   : > { %811 = vst.msk [vmem:[#allocation2 + $0x6c] sm:$0xf] %vm223_vm0, %v779_v50  ;;  %v1530_v3 = vrot.slane %v1402_v57, 5  ;;  %814 = vst.msk [vmem:[#allocation2 + $0x78] sm:$0xf] %vm223_vm0, %v782_v1  ;;  %v4604_v8 = vrot.slane %v1401_v59, 9  ;;  %v1527_v14 = vsel %vm5297_vm13, %v1525_v62, %v1526_v63 }
  0xb4   : > { %1611 = vrot.lane.b32.xlu0 %v1517_v54, %s4893_s21  ;;  %1352 = vst.msk [vmem:[#allocation2 + $0x10] sm:$0xf] %vm1347_vm14, %v1260_v0  ;;  %v783_v4 = vld [vmem:[#allocation3 + $0xb8] sm:$0xf]  ;;  %v1404_v9 = vld [vmem:[#allocation3 + $0x60] sm:$0xe] }
  0xb5   : > { %813 = vst.msk [vmem:[#allocation2 + $0x74] sm:$0xf] %vm223_vm0, %v781_v2  ;;  %v1405_v10 = vld [vmem:[#allocation3 + $0x64] sm:$0xf]  ;;  %815 = vst.msk [vmem:[#allocation2 + $0x7c] sm:$0xf] %vm223_vm0, %v783_v4  ;;  %v1262_v12 = vpop.permute.xlu1 %1261  ;;  %v1264_v15 = vpop.permute.xlu0 %1263  ;;  %v1531_v21 = vsel %vm5297_vm13, %v4604_v8, %v1530_v3 }
  0xb6   : > { %1613 = vrot.lane.b32.xlu1 %v1520_v61, %s4893_s21  ;;  %v1532_v7 = vrot.slane %v1530_v3, 4  ;;  %v1533_v11 = vrot.slane %v1403_v60, 5  ;;  %v309_v13 = vld [vmem:[%s5006_s19 + $0x78] sm:$0xf]  ;;  %1353 = vst.msk [vmem:[#allocation2 + $0x14] sm:$0xf] %vm1347_vm14, %v1262_v12 }
  0xb7   : > { %v570_v16 = vshrl.u32 %v309_v13, 16  ;;  %v573_v17 = vshll.u32 %v309_v13, 16  ;;  %v4605_v18 = vrot.slane %v1404_v9, 9  ;;  %v1537_v19 = vrot.slane %v1405_v10, 5  ;;  %v1406_v49 = vld [vmem:[#allocation3 + $0x68] sm:$0x1] }
  0xb8   : > { %1615 = vrot.lane.b32.xlu0 %v1524_v6, %s4893_s21  ;;  %1354 = vst.msk [vmem:[#allocation2 + $0x18] sm:$0xf] %vm1347_vm14, %v1264_v15  ;;  %v310_v20 = vld [vmem:[%s5006_s19 + $0x7c] sm:$0xf]  ;;  %v1407_v23 = vld [vmem:[#allocation3 + $0x6c] sm:$0xe]  ;;  %v1534_v28 = vsel %vm5297_vm13, %v1532_v7, %v1533_v11 }
  0xb9   : > { %v572_v24 = vrot.slane %v570_v16, 7  ;;  %v578_v25 = vshrl.u32 %v310_v20, 16  ;;  %v581_v27 = vshll.u32 %v310_v20, 16  ;;  %v1408_v31 = vld [vmem:[#allocation3 + $0x70] sm:$0xf]  ;;  %v1539_v32 = vrot.slane %v1537_v19, 4  ;;  %v1266_v33 = vpop.permute.xlu1 %1265  ;;  %v1268_v39 = vpop.permute.xlu0 %1267 }
  0xba   : > { %1617 = vrot.lane.b32.xlu1 %v1527_v14, %s4893_s21  ;;  %v745_v36 = vld [vmem:[#allocation3 + $0xc0] sm:$0xf]  ;;  %v1540_v37 = vrot.slane %v1406_v49, 5  ;;  %1355 = vst.msk [vmem:[#allocation2 + $0x1c] sm:$0xf] %vm1347_vm14, %v1266_v33  ;;  %v4606_v43 = vrot.slane %v1407_v23, 9  ;;  %v1538_v35 = vsel %vm5297_vm13, %v4605_v18, %v1537_v19 }
  0xbb   : > { %v575_v40 = vor.u32 %v573_v17, %v572_v24  ;;  %v576_v41 = vrot.slane %v572_v24, 4  ;;  %v5389_v42 = vrot.slane %v578_v25, 7  ;;  %v1409_v44 = vld [vmem:[#allocation3 + $0x74] sm:$0x1]  ;;  %1356 = vst.msk [vmem:[#allocation2 + $0x20] sm:$0xf] %vm1347_vm14, %v1268_v39 }
  0xbc   : > { %1619 = vrot.lane.b32.xlu0 %v1531_v21, %s4893_s21  ;;  %v1544_v46 = vrot.slane %v1408_v31, 5  ;;  %v1410_v48 = vld [vmem:[#allocation3 + $0x78] sm:$0xe]  ;;  %v1411_v51 = vld [vmem:[#allocation3 + $0x7c] sm:$0xf]  ;;  %v1541_v38 = vsel %vm5297_vm13, %v1539_v32, %v1540_v37  ;;  %v1547_v53 = vrot.slane %v1409_v44, 5 }
  0xbd   : > { %v746_v47 = vsel %vm5013_vm7, %v575_v40, %v745_v36  ;;  %v583_v5 = vor.u32 %v581_v27, %v5389_v42  ;;  %v1412_v55 = vld [vmem:[#allocation3 + $0x80] sm:$0x1]  ;;  %v4607_v56 = vrot.slane %v1410_v48, 9  ;;  %v1551_v57 = vrot.slane %v1411_v51, 5  ;;  %v1413_v58 = vld [vmem:[#allocation3 + $0x84] sm:$0xe] }
  0xbe   : > { %1621 = vrot.lane.b32.xlu1 %v1534_v28, %s4893_s21  ;;  %747 = vst [vmem:[#allocation3 + $0xc0] sm:$0xf] %v746_v47  ;;  %v1546_v52 = vrot.slane %v1544_v46, 4  ;;  %v1545_v22 = vsel %vm5297_vm13, %v4606_v43, %v1544_v46  ;;  %v1414_v59 = vld [vmem:[#allocation3 + $0x88] sm:$0xf]  ;;  %v1554_v30 = vrot.slane %v1412_v55, 5 }
  0xbf   : > { %v584_v54 = vsel %vm5020_vm8, %v576_v41, %v583_v5  ;;  %v1553_v26 = vrot.slane %v1551_v57, 4  ;;  %v1415_v50 = vld [vmem:[#allocation3 + $0x8c] sm:$0x1]  ;;  %v1552_v61 = vsel %vm5297_vm13, %v4607_v56, %v1551_v57  ;;  %v4608_v62 = vrot.slane %v1413_v58, 9  ;;  %v1416_v0 = vld [vmem:[#allocation3 + $0x90] sm:$0xe] }
  0xc0   : > { %1623 = vrot.lane.b32.xlu0 %v1538_v35, %s4893_s21  ;;  %748 = vst.msk [vmem:[#allocation3 + $0xc4] sm:$0xf] %vm223_vm0, %v584_v54  ;;  %v1548_v60 = vsel %vm5297_vm13, %v1546_v52, %v1547_v53  ;;  %v1558_v63 = vrot.slane %v1414_v59, 5  ;;  %v1417_v1 = vld [vmem:[#allocation3 + $0x94] sm:$0xf]  ;;  %v1561_v6 = vrot.slane %v1415_v50, 5 }
  0xc1   : > { %v1555_v3 = vsel %vm5297_vm13, %v1553_v26, %v1554_v30  ;;  %v1418_v8 = vld [vmem:[#allocation3 + $0x98] sm:$0x1]  ;;  %v4609_v10 = vrot.slane %v1416_v0, 9  ;;  %v1565_v7 = vrot.slane %v1417_v1, 5  ;;  %v1419_v12 = vld [vmem:[#allocation3 + $0x9c] sm:$0xe] }
  0xc2   : > { %1625 = vrot.lane.b32.xlu1 %v1541_v38, %s4893_s21  ;;  %v1560_v4 = vrot.slane %v1558_v63, 4  ;;  %v1559_v9 = vsel %vm5297_vm13, %v4608_v62, %v1558_v63  ;;  %v1420_v13 = vld [vmem:[#allocation3 + $0xa0] sm:$0xf]  ;;  %v1568_v16 = vrot.slane %v1418_v8, 5  ;;  %v1421_v17 = vld [vmem:[#allocation3 + $0xa4] sm:$0x1] }
  0xc3   : > { %v1567_v15 = vrot.slane %v1565_v7, 4  ;;  %v1566_v18 = vsel %vm5297_vm13, %v4609_v10, %v1565_v7  ;;  %v4610_v19 = vrot.slane %v1419_v12, 9  ;;  %v1572_v49 = vrot.slane %v1420_v13, 5  ;;  %v1422_v21 = vld [vmem:[#allocation3 + $0xa8] sm:$0xe] }
  0xc4   : > { %1627 = vrot.lane.b32.xlu0 %v1545_v22, %s4893_s21  ;;  %v1270_v2 = vpop.permute.xlu1 %1269  ;;  %v1562_v14 = vsel %vm5297_vm13, %v1560_v4, %v1561_v6  ;;  %v1423_v23 = vld [vmem:[#allocation3 + $0xac] sm:$0xf]  ;;  %v1575_v27 = vrot.slane %v1421_v17, 5  ;;  %v1424_v31 = vld [vmem:[#allocation3 + $0xb0] sm:$0x1]  ;;  %v4611_v33 = vrot.slane %v1422_v21, 9 }
  0xc5   : > { %1357 = vst.msk [vmem:[#allocation2 + $0x24] sm:$0xf] %vm1347_vm14, %v1270_v2  ;;  %v1569_v24 = vsel %vm5297_vm13, %v1567_v15, %v1568_v16  ;;  %v1574_v25 = vrot.slane %v1572_v49, 4  ;;  %v1573_v32 = vsel %vm5297_vm13, %v4610_v19, %v1572_v49  ;;  %v1579_v36 = vrot.slane %v1423_v23, 5  ;;  %v1425_v39 = vld [vmem:[#allocation3 + $0xb4] sm:$0xe] }
  0xc6   : > { %1629 = vrot.lane.b32.xlu1 %v1548_v60, %s4893_s21  ;;  %v1426_v40 = vld [vmem:[#allocation3 + $0xb8] sm:$0xf]  ;;  %v1582_v44 = vrot.slane %v1424_v31, 5  ;;  %v1427_v46 = vld [vmem:[#allocation3 + $0xbc] sm:$0x1]  ;;  %v4612_v5 = vrot.slane %v1425_v39, 9 }
  0xc7   : > { %v1272_v11 = vpop.permute.xlu0 %1271  ;;  %v1576_v41 = vsel %vm5297_vm13, %v1574_v25, %v1575_v27  ;;  %v1581_v43 = vrot.slane %v1579_v36, 4  ;;  %v1580_v47 = vsel %vm5297_vm13, %v4611_v33, %v1579_v36  ;;  %v1586_v48 = vrot.slane %v1426_v40, 5  ;;  %v1720_v56 = vld [vmem:[#allocation3 + $0xc] sm:$0xf]  ;;  %v1721_v57 = vld [vmem:[#allocation3 + $0x10] sm:$0xf] }
  0xc8   : > { %1631 = vrot.lane.b32.xlu0 %v1552_v61, %s4893_s21  ;;  %1358 = vst.msk [vmem:[#allocation2 + $0x28] sm:$0xf] %vm1347_vm14, %v1272_v11  ;;  %v1589_v53 = vrot.slane %v1427_v46, 5  ;;  %v1722_v58 = vld [vmem:[#allocation3 + $0x18] sm:$0xf]  ;;  %vm1880_vm0 = vcmask 126048  }
  0xc9   : > { %v1583_v38 = vsel %vm5297_vm13, %v1581_v43, %v1582_v44  ;;  %v1588_v52 = vrot.slane %v1586_v48, 4  ;;  %v1587_v55 = vsel %vm5297_vm13, %v4612_v5, %v1586_v48  ;;  %v1723_v59 = vld [vmem:[#allocation3 + $0x1c] sm:$0xf]  ;;  %v1724_v26 = vld [vmem:[#allocation3 + $0x24] sm:$0xf]  ;;  %vm4084_vm1 = vcmask 1041408  }
  0xca   : > { %1633 = vrot.lane.b32.xlu1 %v1555_v3, %s4893_s21  ;;  %v1725_v30 = vld [vmem:[#allocation3 + $0x28] sm:$0xf]  ;;  %v1726_v61 = vld [vmem:[#allocation3 + $0x30] sm:$0xf]  ;;  %v1727_v63 = vld [vmem:[#allocation3 + $0x34] sm:$0xf] }
  0xcb   : > { %v1590_v22 = vsel %vm5297_vm13, %v1588_v52, %v1589_v53  ;;  %v1728_v1 = vld [vmem:[#allocation3 + $0x3c] sm:$0xf]  ;;  %v1729_v3 = vld [vmem:[#allocation3 + $0x40] sm:$0xf]  ;;  %v1730_v6 = vld [vmem:[#allocation3 + $0x48] sm:$0xf] }
  0xcc   : > { %1635 = vrot.lane.b32.xlu0 %v1559_v9, %s4893_s21  ;;  %v1274_v20 = vpop.permute.xlu1 %1273  ;;  %v1731_v9 = vld [vmem:[#allocation3 + $0x4c] sm:$0xf]  ;;  %v1732_v7 = vld [vmem:[#allocation3 + $0x54] sm:$0xf]  ;;  %v1733_v11 = vld [vmem:[#allocation3 + $0x58] sm:$0xf] }
  0xcd   : > { %1359 = vst.msk [vmem:[#allocation2 + $0x2c] sm:$0xf] %vm1347_vm14, %v1274_v20  ;;  %v1734_v12 = vld [vmem:[#allocation3 + $0x60] sm:$0xf]  ;;  %v1735_v13 = vld [vmem:[#allocation3 + $0x64] sm:$0xf] }
  0xce   : > { %1637 = vrot.lane.b32.xlu1 %v1562_v14, %s4893_s21  ;;  %v1276_v28 = vpop.permute.xlu0 %1275  ;;  %v1736_v14 = vld [vmem:[#allocation3 + $0x6c] sm:$0xf]  ;;  %v1737_v15 = vld [vmem:[#allocation3 + $0x70] sm:$0xf]  ;;  %v1738_v17 = vld [vmem:[#allocation3 + $0x78] sm:$0xf] }
  0xcf   : > { %1360 = vst.msk [vmem:[#allocation2 + $0x30] sm:$0xf] %vm1347_vm14, %v1276_v28  ;;  %v1740_v19 = vld [vmem:[#allocation3 + $0x84] sm:$0xf]  ;;  %v1741_v21 = vld [vmem:[#allocation3 + $0x88] sm:$0xf] }
  0xd0   : > { %1639 = vrot.lane.b32.xlu0 %v1566_v18, %s4893_s21  ;;  %v1278_v37 = vpop.permute.xlu1 %1277  ;;  %v1739_v18 = vld [vmem:[#allocation3 + $0x7c] sm:$0xf]  ;;  %v1742_v23 = vld [vmem:[#allocation3 + $0x90] sm:$0xf]  ;;  %v1743_v27 = vld [vmem:[#allocation3 + $0x94] sm:$0xf] }
  0xd1   : > { %1361 = vst.msk [vmem:[#allocation2 + $0x34] sm:$0xf] %vm1347_vm14, %v1278_v37  ;;  %v1914_v31 = vld [vmem:[#allocation3 + $0x10] sm:$0xf]  ;;  %v1744_v36 = vld [vmem:[#allocation3 + $0x9c] sm:$0xf] }
  0xd2   : > { %1641 = vrot.lane.b32.xlu1 %v1569_v24, %s4893_s21  ;;  %v1280_v35 = vpop.permute.xlu0 %1279  ;;  %v1913_v24 = vld [vmem:[#allocation3 + $0xc] sm:$0xf]  ;;  %v1916_v39 = vld [vmem:[#allocation3 + $0x18] sm:$0xf]  ;;  %v1917_v40 = vld [vmem:[#allocation3 + $0x1c] sm:$0xf] }
  0xd3   : > { %1362 = vst.msk [vmem:[#allocation2 + $0x38] sm:$0xf] %vm1347_vm14, %v1280_v35  ;;  %v1965_v33 = vshll.u32 %v1913_v24, 16  ;;  %v1971_v43 = vshll.u32 %v1914_v31, 16  ;;  %v1975_v44 = vshrl.u32 %v1914_v31, 16  ;;  %v1995_v52 = vshll.u32 %v1917_v40, 16 }
  0xd4   : > { %1643 = vrot.lane.b32.xlu0 %v1573_v32, %s4893_s21  ;;  %v1282_v51 = vpop.permute.xlu1 %1281  ;;  %v1962_v32 = vshrl.u32 %v1913_v24, 16  ;;  %v1919_v5 = vld [vmem:[#allocation3 + $0x24] sm:$0xf]  ;;  %v1746_v48 = vld [vmem:[#allocation3 + $0xa8] sm:$0xf]  ;;  %v1999_v53 = vshrl.u32 %v1917_v40, 16 }
  0xd5   : > { %1363 = vst.msk [vmem:[#allocation2 + $0x3c] sm:$0xf] %vm1347_vm14, %v1282_v51  ;;  %v1986_v51 = vshrl.u32 %v1916_v39, 16  ;;  %vm2441_vm2 = vcmask 158848   ;;  %vm2778_vm3 = vcmask 191648   ;;  %vm2972_vm4 = vcmask 224448  }
  0xd6   : > { %1645 = vrot.lane.b32.xlu1 %v1576_v41, %s4893_s21  ;;  %v1284_v54 = vpop.permute.xlu0 %1283  ;;  %v1745_v41 = vld [vmem:[#allocation3 + $0xa0] sm:$0xf]  ;;  %v1964_v46 = vrot.slane %v1962_v32, 4  ;;  %vm3533_vm5 = vcmask 257248   ;;  %vm3870_vm6 = vcmask 290048   ;;  %vm4035_vm7 = vcmask 293888  }
  0xd7   : > { %1364 = vst.msk [vmem:[#allocation2 + $0x40] sm:$0xf] %vm1347_vm14, %v1284_v54  ;;  %vm4448_vm8 = vcmask 60416  }
  0xd8   : > { %1647 = vrot.lane.b32.xlu0 %v1580_v47, %s4893_s21  ;;  %v1967_v47 = vrot.slane %v1965_v33, 5 }
  0xda   : > { %1649 = vrot.lane.b32.xlu1 %v1583_v38, %s4893_s21  ;;  %v1989_v38 = vshll.u32 %v1916_v39, 16 }
  0xdc   : > { %1651 = vrot.lane.b32.xlu0 %v1587_v55, %s4893_s21  ;;  %v1747_v55 = vld [vmem:[#allocation3 + $0xac] sm:$0xf] }
  0xde   : > { %1653 = vrot.lane.b32.xlu1 %v1590_v22, %s4893_s21  ;;  %v5498_v22 = vrot.slane %v1971_v43, 5 }
  0xe0   : > { %1784 = vrot.lane.b32.xlu0 %v1720_v56, %s4894_s22  ;;  %v1977_v56 = vrot.slane %v1975_v44, 4  ;;  %v1937_v44 = vld [vmem:[#allocation3 + $0x6c] sm:$0xf] }
  0xe2   : > { %1786 = vrot.lane.b32.xlu1 %v1721_v57, %s4894_s22  ;;  %v1920_v57 = vld [vmem:[#allocation3 + $0x28] sm:$0xf] }
  0xe3   : > { %v1286_v60 = vpop.permute.xlu1 %1285 }
  0xe4   : > { %1788 = vrot.lane.b32.xlu0 %v1722_v58, %s4894_s22  ;;  %1365 = vst.msk [vmem:[#allocation2 + $0x44] sm:$0xf] %vm1347_vm14, %v1286_v60  ;;  %v2010_v58 = vshrl.u32 %v1919_v5, 16 }
  0xe6   : > { %1790 = vrot.lane.b32.xlu1 %v1723_v59, %s4894_s22  ;;  %v1288_v50 = vpop.permute.xlu0 %1287  ;;  %v2013_v59 = vshll.u32 %v1919_v5, 16 }
  0xe7   : > { %1366 = vst.msk [vmem:[#allocation2 + $0x48] sm:$0xf] %vm1347_vm14, %v1288_v50  ;;  %v1915_v50 = vld [vmem:[#allocation3 + $0x14] sm:$0x1] }
  0xe8   : > { %1792 = vrot.lane.b32.xlu0 %v1724_v26, %s4894_s22  ;;  %v1290_v62 = vpop.permute.xlu1 %1289  ;;  %v1748_v26 = vld [vmem:[#allocation3 + $0xb4] sm:$0xf] }
  0xe9   : > { %1367 = vst.msk [vmem:[#allocation2 + $0x4c] sm:$0xf] %vm1347_vm14, %v1290_v62  ;;  %v1991_v62 = vrot.slane %v1989_v38, 5 }
  0xea   : > { %1794 = vrot.lane.b32.xlu1 %v1725_v30, %s4894_s22  ;;  %v1968_v30 = vor.u32 %v1967_v47, %v1964_v46 }
  0xeb   : > { %v1292_v0 = vpop.permute.xlu0 %1291 }
  0xec   : > { %1796 = vrot.lane.b32.xlu0 %v1726_v61, %s4894_s22  ;;  %1368 = vst.msk [vmem:[#allocation2 + $0x50] sm:$0xf] %vm1347_vm14, %v1292_v0  ;;  %v1988_v61 = vrot.slane %v1986_v51, 4  ;;  %v2001_v0 = vrot.slane %v1999_v53, 4 }
  0xee   : > { %1798 = vrot.lane.b32.xlu1 %v1727_v63, %s4894_s22  ;;  %v1294_v2 = vpop.permute.xlu1 %1293  ;;  %v5502_v63 = vrot.slane %v1995_v52, 5 }
  0xef   : > { %1369 = vst.msk [vmem:[#allocation2 + $0x54] sm:$0xf] %vm1347_vm14, %v1294_v2  ;;  %v1296_v4 = vpop.permute.xlu0 %1295 }
  0xf0   : > { %1800 = vrot.lane.b32.xlu0 %v1728_v1, %s4894_s22  ;;  %1370 = vst.msk [vmem:[#allocation2 + $0x58] sm:$0xf] %vm1347_vm14, %v1296_v4  ;;  %v1922_v1 = vld [vmem:[#allocation3 + $0x30] sm:$0xf]  ;;  %v2019_v4 = vshll.u32 %v1920_v57, 16 }
  0xf2   : > { %1802 = vrot.lane.b32.xlu1 %v1729_v3, %s4894_s22  ;;  %v1298_v8 = vpop.permute.xlu1 %1297  ;;  %v1749_v3 = vld [vmem:[#allocation3 + $0xb8] sm:$0xf] }
  0xf3   : > { %1371 = vst.msk [vmem:[#allocation2 + $0x5c] sm:$0xf] %vm1347_vm14, %v1298_v8  ;;  %v1300_v10 = vpop.permute.xlu0 %1299  ;;  %v1918_v8 = vld [vmem:[#allocation3 + $0x20] sm:$0x1] }
  0xf4   : > { %1804 = vrot.lane.b32.xlu0 %v1730_v6, %s4894_s22  ;;  %1372 = vst.msk [vmem:[#allocation2 + $0x60] sm:$0xf] %vm1347_vm14, %v1300_v10  ;;  %v2023_v6 = vshrl.u32 %v1920_v57, 16  ;;  %v1981_v10 = vshll.u32 %v1915_v50, 16  ;;  %v2157_v57 = vshll.u32 %v1937_v44, 16 }
  0xf5   : > { %v1940_v50 = vld [vmem:[#allocation3 + $0x78] sm:$0xf] }
  0xf6   : > { %1806 = vrot.lane.b32.xlu1 %v1731_v9, %s4894_s22  ;;  %v1978_v9 = vor.u32 %v1977_v56, %v5498_v22  ;;  %v1983_v32 = vrot.slane %v1981_v10, 5  ;;  %v1924_v56 = vld [vmem:[#allocation3 + $0x38] sm:$0x1]  ;;  %v1941_v10 = vld [vmem:[#allocation3 + $0x7c] sm:$0xf] }
  0xf8   : > { %1808 = vrot.lane.b32.xlu0 %v1732_v7, %s4894_s22  ;;  %v2012_v7 = vrot.slane %v2010_v58, 4  ;;  %v1979_v31 = vrot.slane %v1978_v9, 4  ;;  %v2053_v9 = vshll.u32 %v1924_v56, 16 }
  0xfa   : > { %1810 = vrot.lane.b32.xlu1 %v1733_v11, %s4894_s22  ;;  %v2015_v11 = vrot.slane %v2013_v59, 5 }
  0xfc   : > { %1812 = vrot.lane.b32.xlu0 %v1734_v12, %s4894_s22  ;;  %v1923_v12 = vld [vmem:[#allocation3 + $0x34] sm:$0xf]  ;;  %v2016_v33 = vor.u32 %v2015_v11, %v2012_v7  ;;  %v2159_v11 = vrot.slane %v2157_v57, 5 }
  0xfd   : > { %v2043_v24 = vshll.u32 %v1923_v12, 16 }
  0xfe   : > { %1814 = vrot.lane.b32.xlu1 %v1735_v13, %s4894_s22  ;;  %v2017_v59 = vrot.slane %v2016_v33, 4 }
  0xff   : > { %v5520_v51 = vrot.slane %v2043_v24, 5 }
 0x100   : > { %1816 = vrot.lane.b32.xlu0 %v1736_v14, %s4894_s22  ;;  %v1302_v16 = vpop.permute.xlu1 %1301  ;;  %v2034_v14 = vshrl.u32 %v1922_v1, 16 }
 0x101   : > { %1373 = vst.msk [vmem:[#allocation2 + $0x64] sm:$0xf] %vm1347_vm14, %v1302_v16  ;;  %v1750_v16 = vld [vmem:[#allocation3 + $0xc0] sm:$0xf] }
 0x102   : > { %1818 = vrot.lane.b32.xlu1 %v1737_v15, %s4894_s22  ;;  %v2037_v15 = vshll.u32 %v1922_v1, 16  ;;  %v2036_v39 = vrot.slane %v2034_v14, 4 }
 0x104   : > { %1820 = vrot.lane.b32.xlu0 %v1738_v17, %s4894_s22  ;;  %v1969_v17 = vrot.slane %v1968_v30, 4  ;;  %v2039_v40 = vrot.slane %v2037_v15, 5 }
 0x106   : > { %v1304_v49 = vpop.permute.xlu0 %1303  ;;  %1822 = vrot.lane.b32.xlu1 %v1739_v18, %s4894_s22  ;;  %v1992_v18 = vor.u32 %v1991_v62, %v1988_v61 }
 0x107   : > { %1374 = vst.msk [vmem:[#allocation2 + $0x68] sm:$0xf] %vm1347_vm14, %v1304_v49  ;;  %v1306_v20 = vpop.permute.xlu1 %1305  ;;  %v2005_v49 = vshll.u32 %v1918_v8, 16 }
 0x108   : > { %1824 = vrot.lane.b32.xlu0 %v1740_v19, %s4894_s22  ;;  %1375 = vst.msk [vmem:[#allocation2 + $0x6c] sm:$0xf] %vm1347_vm14, %v1306_v20  ;;  %v2002_v19 = vor.u32 %v2001_v0, %v5502_v63  ;;  %v1925_v20 = vld [vmem:[#allocation3 + $0x3c] sm:$0xf]  ;;  %v1993_v46 = vrot.slane %v1992_v18, 4 }
 0x109   : > { %v2061_v43 = vshll.u32 %v1925_v20, 16  ;;  %v2007_v5 = vrot.slane %v2005_v49, 5  ;;  %v1926_v0 = vld [vmem:[#allocation3 + $0x40] sm:$0xf]  ;;  %v1939_v18 = vld [vmem:[#allocation3 + $0x74] sm:$0x1] }
 0x10a   : > { %v1308_v25 = vpop.permute.xlu0 %1307  ;;  %1826 = vrot.lane.b32.xlu1 %v1741_v21, %s4894_s22  ;;  %v2003_v47 = vrot.slane %v2002_v19, 4  ;;  %v1998_v61 = vsel %vm5027_vm9, %v1993_v46, %v5502_v63  ;;  %v2178_v63 = vshrl.u32 %v1940_v50, 16  ;;  %v1942_v46 = vld [vmem:[#allocation3 + $0x80] sm:$0x1] }
 0x10b   : > { %1376 = vst.msk [vmem:[#allocation2 + $0x70] sm:$0xf] %vm1347_vm14, %v1308_v25  ;;  %v2047_v25 = vshrl.u32 %v1923_v12, 16  ;;  %v2063_v30 = vrot.slane %v2061_v43, 5  ;;  %v2181_v12 = vshll.u32 %v1940_v50, 16 }
 0x10c   : > { %1828 = vrot.lane.b32.xlu0 %v1742_v23, %s4894_s22  ;;  %v1310_v28 = vpop.permute.xlu1 %1309  ;;  %v5511_v23 = vrot.slane %v2019_v4, 5  ;;  %v2008_v62 = vsel %vm5027_vm9, %v2003_v47, %v2007_v5 }
 0x10d   : > { %1377 = vst.msk [vmem:[#allocation2 + $0x74] sm:$0xf] %vm1347_vm14, %v1310_v28  ;;  %v1751_v28 = vld [vmem:[#allocation3 + $0xc4] sm:$0xf]  ;;  %v2049_v53 = vrot.slane %v2047_v25, 4 }
 0x10e   : > { %v1312_v37 = vpop.permute.xlu0 %1311  ;;  %1830 = vrot.lane.b32.xlu1 %v1743_v27, %s4894_s22  ;;  %v2025_v27 = vrot.slane %v2023_v6, 4  ;;  %v2022_v14 = vsel %vm5027_vm9, %v2017_v59, %v5511_v23 }
 0x10f   : > { %1378 = vst.msk [vmem:[#allocation2 + $0x78] sm:$0xf] %vm1347_vm14, %v1312_v37  ;;  %v2050_v8 = vor.u32 %v2049_v53, %v5520_v51 }
 0x110   : > { %1832 = vrot.lane.b32.xlu0 %v1744_v36, %s4894_s22  ;;  %v1314_v35 = vpop.permute.xlu1 %1313  ;;  %v1921_v36 = vld [vmem:[#allocation3 + $0x2c] sm:$0x1]  ;;  %v2026_v38 = vor.u32 %v2025_v27, %v5511_v23  ;;  %v2055_v27 = vrot.slane %v2053_v9, 5 }
 0x111   : > { %1379 = vst.msk [vmem:[#allocation2 + $0x7c] sm:$0xf] %vm1347_vm14, %v1314_v35  ;;  %v1974_v35 = vsel %vm5027_vm9, %v1969_v17, %v5498_v22  ;;  %v2029_v52 = vshll.u32 %v1921_v36, 16  ;;  %v2154_v22 = vshrl.u32 %v1937_v44, 16  ;;  %v2067_v17 = vshll.u32 %v1926_v0, 16 }
 0x112   : > { %v1592_v54 = vpop.permute.xlu0 %1591  ;;  %1834 = vrot.lane.b32.xlu1 %v1745_v41, %s4894_s22  ;;  %v2058_v41 = vshrl.u32 %v1925_v20, 16  ;;  %v2027_v4 = vrot.slane %v2026_v38, 4  ;;  %v2187_v20 = vshll.u32 %v1941_v10, 16  ;;  %v2051_v23 = vrot.slane %v2050_v8, 4  ;;  %v2476_v0 = vld [vmem:[#allocation3 + $0x14] sm:$0x1] }
 0x113   : > { %1688 = vst.msk [vmem:[#allocation2] sm:$0xf] %vm1687_vm15, %v1592_v54  ;;  %v1938_v54 = vld [vmem:[#allocation3 + $0x70] sm:$0xf]  ;;  %v2031_v6 = vrot.slane %v2029_v52, 5  ;;  %v2156_v7 = vrot.slane %v2154_v22, 4 }
 0x114   : > { %1836 = vrot.lane.b32.xlu0 %v1746_v48, %s4894_s22  ;;  %v1594_v60 = vpop.permute.xlu1 %1593  ;;  %v2163_v1 = vshll.u32 %v1938_v54, 16  ;;  %v2189_v43 = vrot.slane %v2187_v20, 5  ;;  %v2056_v47 = vsel %vm5027_vm9, %v2051_v23, %v2055_v27  ;;  %v2475_v22 = vld [vmem:[#allocation3 + $0x10] sm:$0xf] }
 0x115   : > { %1689 = vst.msk [vmem:[#allocation2 + $0x4] sm:$0xf] %vm1687_vm15, %v1594_v60  ;;  %v2040_v60 = vor.u32 %v2039_v40, %v2036_v39  ;;  %v2032_v25 = vsel %vm5027_vm9, %v2027_v4, %v2031_v6  ;;  %v2173_v39 = vshll.u32 %v1939_v18, 16  ;;  %v2498_v6 = vld [vmem:[#allocation3 + $0x6c] sm:$0xe] }
 0x116   : > { %v1596_v2 = vpop.permute.xlu0 %1595  ;;  %1838 = vrot.lane.b32.xlu1 %v1747_v55, %s4894_s22  ;;  %v1984_v55 = vsel %vm5027_vm9, %v1979_v31, %v1983_v32  ;;  %v2165_v19 = vrot.slane %v2163_v1, 5  ;;  %v2180_v31 = vrot.slane %v2178_v63, 4  ;;  %v2183_v32 = vrot.slane %v2181_v12, 5  ;;  %v2499_v1 = vld [vmem:[#allocation3 + $0x70] sm:$0xf] }
 0x117   : > { %1690 = vst.msk [vmem:[#allocation2 + $0x8] sm:$0xf] %vm1687_vm15, %v1596_v2  ;;  %v2167_v2 = vshrl.u32 %v1938_v54, 16  ;;  %v2041_v15 = vrot.slane %v2040_v60, 4  ;;  %v2175_v38 = vrot.slane %v2173_v39, 5 }
 0x118   : > { %1840 = vrot.lane.b32.xlu0 %v1748_v26, %s4894_s22  ;;  %v1598_v13 = vpop.permute.xlu1 %1597  ;;  %v2060_v26 = vrot.slane %v2058_v41, 4  ;;  %v2474_v60 = vld [vmem:[#allocation3 + $0xc] sm:$0xe]  ;;  %v2500_v63 = vld [vmem:[#allocation3 + $0x74] sm:$0x1] }
 0x119   : > { %1691 = vst.msk [vmem:[#allocation2 + $0xc] sm:$0xf] %vm1687_vm15, %v1598_v13  ;;  %v2169_v49 = vrot.slane %v2167_v2, 4  ;;  %v2046_v36 = vsel %vm5027_vm9, %v2041_v15, %v5520_v51  ;;  %v2478_v12 = vld [vmem:[#allocation3 + $0x1c] sm:$0xf] }
 0x11a   : > { %v1600_v21 = vpop.permute.xlu0 %1599  ;;  %1842 = vrot.lane.b32.xlu1 %v1749_v3, %s4894_s22 }
 0x11b   : > { %1692 = vst.msk [vmem:[#allocation2 + $0x10] sm:$0xf] %vm1687_vm15, %v1600_v21  ;;  %v2191_v21 = vshrl.u32 %v1941_v10, 16  ;;  %v2170_v41 = vor.u32 %v2169_v49, %v2165_v19  ;;  %v2575_v10 = vrot.slane %v2476_v0, 5  ;;  %v2579_v49 = vrot.slane %v2478_v12, 5 }
 0x11c   : > { %1844 = vrot.lane.b32.xlu0 %v1750_v16, %s4894_s22  ;;  %v1602_v37 = vpop.permute.xlu1 %1601  ;;  %v2064_v16 = vor.u32 %v2063_v30, %v2060_v26 }
 0x11d   : > { %1693 = vst.msk [vmem:[#allocation2 + $0x14] sm:$0xf] %vm1687_vm15, %v1602_v37  ;;  %v5549_v37 = vrot.slane %v2067_v17, 5  ;;  %v2193_v44 = vrot.slane %v2191_v21, 4  ;;  %v2171_v53 = vrot.slane %v2170_v41, 4 }
 0x11e   : > { %v1604_v48 = vpop.permute.xlu0 %1603  ;;  %1846 = vrot.lane.b32.xlu1 %v1751_v28, %s4894_s22  ;;  %v2160_v28 = vor.u32 %v2159_v11, %v2156_v7  ;;  %v2065_v40 = vrot.slane %v2064_v16, 4  ;;  %v2628_v7 = vrot.slane %v2499_v1, 5  ;;  %v2477_v16 = vld [vmem:[#allocation3 + $0x18] sm:$0xe]  ;;  %v2479_v21 = vld [vmem:[#allocation3 + $0x20] sm:$0x1] }
 0x11f   : > { %1694 = vst.msk [vmem:[#allocation2 + $0x18] sm:$0xf] %vm1687_vm15, %v1604_v48  ;;  %v2184_v48 = vor.u32 %v2183_v32, %v2180_v31  ;;  %v2194_v54 = vor.u32 %v2193_v44, %v2189_v43  ;;  %v2176_v26 = vsel %vm5027_vm9, %v2171_v53, %v2175_v38  ;;  %v4614_v27 = vrot.slane %v2477_v16, 9  ;;  %v3006_v53 = vld [vmem:[#allocation3 + $0x1c] sm:$0xf] }
 0x120   : > { %2345 = vrot.lane.b32.xlu0 %v1974_v35, %s4895_s23  ;;  %v1606_v58 = vpop.permute.xlu1 %1605  ;;  %v2161_v5 = vrot.slane %v2160_v28, 4  ;;  %v2070_v52 = vsel %vm5027_vm9, %v2065_v40, %v5549_v37  ;;  %v2630_v18 = vrot.slane %v2628_v7, 4  ;;  %v2501_v28 = vld [vmem:[#allocation3 + $0x78] sm:$0xe]  ;;  %v2581_v32 = vrot.slane %v2579_v49, 4 }
 0x121   : > { %1695 = vst.msk [vmem:[#allocation2 + $0x1c] sm:$0xf] %vm1687_vm15, %v1606_v58  ;;  %v2185_v58 = vrot.slane %v2184_v48, 4  ;;  %v2195_v30 = vrot.slane %v2194_v54, 4  ;;  %v2503_v40 = vld [vmem:[#allocation3 + $0x80] sm:$0x1]  ;;  %v2580_v41 = vsel %vm5297_vm13, %v4614_v27, %v2579_v49 }
 0x122   : > { %v1608_v3 = vpop.permute.xlu0 %1607  ;;  %2347 = vrot.lane.b32.xlu1 %v1984_v55, %s4895_s23  ;;  %v2197_v55 = vshll.u32 %v1942_v46, 16  ;;  %v2166_v57 = vsel %vm5027_vm9, %v2161_v5, %v2165_v19  ;;  %v2631_v19 = vrot.slane %v2500_v63, 5  ;;  %v2814_v16 = vld [vmem:[#allocation3 + $0x24] sm:$0xf]  ;;  %v2815_v27 = vld [vmem:[#allocation3 + $0x28] sm:$0xf] }
 0x123   : > { %1696 = vst.msk [vmem:[#allocation2 + $0x20] sm:$0xf] %vm1687_vm15, %v1608_v3  ;;  %v2190_v2 = vsel %vm5027_vm9, %v2185_v58, %v2189_v43  ;;  %v4613_v3 = vrot.slane %v2474_v60, 9  ;;  %v4622_v43 = vrot.slane %v2501_v28, 9  ;;  %v3067_v60 = vshrl.u32 %v3006_v53, 16 }
 0x124   : > { %2349 = vrot.lane.b32.xlu0 %v1998_v61, %s4895_s23  ;;  %v1610_v13 = vpop.permute.xlu1 %1609  ;;  %v2199_v50 = vrot.slane %v2197_v55, 5  ;;  %v2572_v61 = vrot.slane %v2475_v22, 5  ;;  %v2632_v31 = vsel %vm5297_vm13, %v2630_v18, %v2631_v19  ;;  %v2812_v22 = vld [vmem:[#allocation3 + $0x18] sm:$0xf] }
 0x125   : > { %1697 = vst.msk [vmem:[#allocation2 + $0x24] sm:$0xf] %vm1687_vm15, %v1610_v13 }
 0x126   : > { %v1612_v24 = vpop.permute.xlu0 %1611  ;;  %2351 = vrot.lane.b32.xlu1 %v2008_v62, %s4895_s23  ;;  %v2200_v8 = vsel %vm5027_vm9, %v2195_v30, %v2199_v50  ;;  %v2574_v9 = vrot.slane %v2572_v61, 4  ;;  %v2573_v13 = vsel %vm5297_vm13, %v4613_v3, %v2572_v61  ;;  %v3030_v30 = vld [vmem:[#allocation3 + $0x7c] sm:$0xf] }
 0x127   : > { %1698 = vst.msk [vmem:[#allocation2 + $0x28] sm:$0xf] %vm1687_vm15, %v1612_v24  ;;  %v2502_v24 = vld [vmem:[#allocation3 + $0x7c] sm:$0xf] }
 0x128   : > { %2353 = vrot.lane.b32.xlu0 %v2022_v14, %s4895_s23  ;;  %v1614_v33 = vpop.permute.xlu1 %1613  ;;  %v4621_v14 = vrot.slane %v2498_v6, 9  ;;  %v2576_v17 = vsel %vm5297_vm13, %v2574_v9, %v2575_v10  ;;  %v3069_v6 = vrot.slane %v3067_v60, 4  ;;  %v3259_v9 = vshrl.u32 %v3030_v30, 16  ;;  %v3008_v10 = vld [vmem:[#allocation3 + $0x24] sm:$0xf] }
 0x129   : > { %1699 = vst.msk [vmem:[#allocation2 + $0x2c] sm:$0xf] %vm1687_vm15, %v1614_v33  ;;  %v2582_v33 = vrot.slane %v2479_v21, 5  ;;  %v3081_v18 = vshll.u32 %v3008_v10, 16 }
 0x12a   : > { %v1616_v35 = vpop.permute.xlu0 %1615  ;;  %2355 = vrot.lane.b32.xlu1 %v2032_v25, %s4895_s23  ;;  %v2629_v25 = vsel %vm5297_vm13, %v4621_v14, %v2628_v7  ;;  %v2829_v7 = vld [vmem:[#allocation3 + $0x7c] sm:$0xf] }
 0x12b   : > { %1700 = vst.msk [vmem:[#allocation2 + $0x30] sm:$0xf] %vm1687_vm15, %v1616_v35  ;;  %v2583_v35 = vsel %vm5297_vm13, %v2581_v32, %v2582_v33 }
 0x12c   : > { %2357 = vrot.lane.b32.xlu0 %v2046_v36, %s4895_s23  ;;  %v1618_v51 = vpop.permute.xlu1 %1617  ;;  %v2635_v36 = vrot.slane %v2502_v24, 5  ;;  %v3261_v24 = vrot.slane %v3259_v9, 4 }
 0x12d   : > { %1701 = vst.msk [vmem:[#allocation2 + $0x34] sm:$0xf] %vm1687_vm15, %v1618_v51  ;;  %v3005_v51 = vld [vmem:[#allocation3 + $0x18] sm:$0xf] }
 0x12e   : > { %v1620_v56 = vpop.permute.xlu0 %1619  ;;  %2359 = vrot.lane.b32.xlu1 %v2056_v47, %s4895_s23  ;;  %v2637_v46 = vrot.slane %v2635_v36, 4  ;;  %v2638_v47 = vrot.slane %v2503_v40, 5  ;;  %v2636_v48 = vsel %vm5297_vm13, %v4622_v43, %v2635_v36  ;;  %v3054_v55 = vshrl.u32 %v3005_v51, 16  ;;  %v2830_v40 = vld [vmem:[#allocation3 + $0x84] sm:$0xf] }
 0x12f   : > { %1702 = vst.msk [vmem:[#allocation2 + $0x38] sm:$0xf] %vm1687_vm15, %v1620_v56  ;;  %v3057_v56 = vshll.u32 %v3005_v51, 16  ;;  %v3083_v43 = vrot.slane %v3081_v18, 5 }
 0x130   : > { %2361 = vrot.lane.b32.xlu0 %v2070_v52, %s4895_s23  ;;  %v1622_v59 = vpop.permute.xlu1 %1621  ;;  %v2639_v52 = vsel %vm5297_vm13, %v2637_v46, %v2638_v47  ;;  %v3056_v61 = vrot.slane %v3054_v55, 4  ;;  %v2831_v47 = vld [vmem:[#allocation3 + $0x88] sm:$0xf] }
 0x131   : > { %1703 = vst.msk [vmem:[#allocation2 + $0x3c] sm:$0xf] %vm1687_vm15, %v1622_v59  ;;  %v3063_v59 = vshll.u32 %v3006_v53, 16 }
 0x132   : > { %v1624_v62 = vpop.permute.xlu0 %1623  ;;  %2377 = vrot.lane.b32.xlu1 %v2166_v57, %s4895_s23  ;;  %v3029_v57 = vld [vmem:[#allocation3 + $0x78] sm:$0xf] }
 0x133   : > { %1704 = vst.msk [vmem:[#allocation2 + $0x40] sm:$0xf] %vm1687_vm15, %v1624_v62  ;;  %v3059_v62 = vrot.slane %v3057_v56, 5  ;;  %v3246_v0 = vshrl.u32 %v3029_v57, 16  ;;  %v3249_v1 = vshll.u32 %v3029_v57, 16 }
 0x134   : > { %2379 = vrot.lane.b32.xlu0 %v2176_v26, %s4895_s23  ;;  %v1626_v4 = vpop.permute.xlu1 %1625  ;;  %v2813_v26 = vld [vmem:[#allocation3 + $0x1c] sm:$0xf] }
 0x135   : > { %1705 = vst.msk [vmem:[#allocation2 + $0x44] sm:$0xf] %vm1687_vm15, %v1626_v4  ;;  %v5616_v4 = vrot.slane %v3063_v59, 5  ;;  %v3060_v12 = vor.u32 %v3059_v62, %v3056_v61  ;;  %v3251_v14 = vrot.slane %v3249_v1, 5 }
 0x136   : > { %v1628_v11 = vpop.permute.xlu0 %1627  ;;  %2381 = vrot.lane.b32.xlu1 %v2190_v2, %s4895_s23  ;;  %v2828_v2 = vld [vmem:[#allocation3 + $0x78] sm:$0xf] }
 0x137   : > { %1706 = vst.msk [vmem:[#allocation2 + $0x48] sm:$0xf] %vm1687_vm15, %v1628_v11  ;;  %v3007_v11 = vld [vmem:[#allocation3 + $0x20] sm:$0x1]  ;;  %v3070_v49 = vor.u32 %v3069_v6, %v5616_v4  ;;  %v3061_v33 = vrot.slane %v3060_v12, 4 }
 0x138   : > { %2383 = vrot.lane.b32.xlu0 %v2200_v8, %s4895_s23  ;;  %v1630_v15 = vpop.permute.xlu1 %1629  ;;  %v3255_v8 = vshll.u32 %v3030_v30, 16  ;;  %v3034_v6 = vld [vmem:[#allocation3 + $0x8c] sm:$0x1] }
 0x139   : > { %1707 = vst.msk [vmem:[#allocation2 + $0x4c] sm:$0xf] %vm1687_vm15, %v1630_v15  ;;  %v3009_v15 = vld [vmem:[#allocation3 + $0x28] sm:$0xf]  ;;  %v3066_v57 = vsel %vm5027_vm9, %v3061_v33, %v5616_v4 }
 0x13a   : > { %v1632_v20 = vpop.permute.xlu0 %1631  ;;  %2682 = vrot.lane.b32.xlu1 %v2573_v13, %s4896_s24  ;;  %v3248_v13 = vrot.slane %v3246_v0, 4  ;;  %v5623_v21 = vrot.slane %v3255_v8, 5  ;;  %v3087_v28 = vshll.u32 %v3009_v15, 16 }
 0x13b   : > { %1708 = vst.msk [vmem:[#allocation2 + $0x50] sm:$0xf] %vm1687_vm15, %v1632_v20  ;;  %v3073_v20 = vshll.u32 %v3007_v11, 16 }
 0x13c   : > { %2684 = vrot.lane.b32.xlu0 %v2576_v17, %s4896_s24  ;;  %v1634_v23 = vpop.permute.xlu1 %1633  ;;  %v3078_v17 = vshrl.u32 %v3008_v10, 16  ;;  %v3252_v36 = vor.u32 %v3251_v14, %v3248_v13  ;;  %v3262_v51 = vor.u32 %v3261_v24, %v5623_v21  ;;  %v3089_v53 = vrot.slane %v3087_v28, 5  ;;  %v3568_v28 = vld [vmem:[#allocation3 + $0x20] sm:$0x1] }
 0x13d   : > { %1709 = vst.msk [vmem:[#allocation2 + $0x54] sm:$0xf] %vm1687_vm15, %v1634_v23  ;;  %v3031_v23 = vld [vmem:[#allocation3 + $0x80] sm:$0x1]  ;;  %v3289_v14 = vshll.u32 %v3034_v6, 16 }
 0x13e   : > { %v1636_v39 = vpop.permute.xlu0 %1635  ;;  %2714 = vrot.lane.b32.xlu1 %v2629_v25, %s4896_s24  ;;  %v3032_v25 = vld [vmem:[#allocation3 + $0x84] sm:$0xf]  ;;  %v3263_v0 = vrot.slane %v3262_v51, 4 }
 0x13f   : > { %1710 = vst.msk [vmem:[#allocation2 + $0x58] sm:$0xf] %vm1687_vm15, %v1636_v39  ;;  %v3033_v39 = vld [vmem:[#allocation3 + $0x88] sm:$0xf]  ;;  %v3291_v24 = vrot.slane %v3289_v14, 5 }
 0x140   : > { %2716 = vrot.lane.b32.xlu0 %v2632_v31, %s4896_s24  ;;  %v1638_v44 = vpop.permute.xlu1 %1637  ;;  %v3091_v31 = vshrl.u32 %v3009_v15, 16  ;;  %v3279_v55 = vshll.u32 %v3033_v39, 16  ;;  %v3283_v56 = vshrl.u32 %v3033_v39, 16  ;;  %v3593_v14 = vld [vmem:[#allocation3 + $0x84] sm:$0xe] }
 0x141   : > { %1711 = vst.msk [vmem:[#allocation2 + $0x5c] sm:$0xf] %vm1687_vm15, %v1638_v44  ;;  %v3270_v44 = vshrl.u32 %v3032_v25, 16 }
 0x142   : > { %v1640_v5 = vpop.permute.xlu0 %1639  ;;  %2686 = vrot.lane.b32.xlu1 %v2580_v41, %s4896_s24  ;;  %v3080_v41 = vrot.slane %v3078_v17, 4 }
 0x143   : > { %1712 = vst.msk [vmem:[#allocation2 + $0x60] sm:$0xf] %vm1687_vm15, %v1640_v5  ;;  %v3071_v5 = vrot.slane %v3070_v49, 4  ;;  %v3272_v60 = vrot.slane %v3270_v44, 4  ;;  %v3566_v49 = vld [vmem:[#allocation3 + $0x18] sm:$0xe] }
 0x144   : > { %2688 = vrot.lane.b32.xlu0 %v2583_v35, %s4896_s24  ;;  %v1642_v38 = vpop.permute.xlu1 %1641  ;;  %v3273_v35 = vshll.u32 %v3032_v25, 16  ;;  %v3084_v59 = vor.u32 %v3083_v43, %v3080_v41  ;;  %v4629_v33 = vrot.slane %v3566_v49, 9  ;;  %v1943_v41 = vld [vmem:[#allocation3 + $0x84] sm:$0xf] }
 0x145   : > { %1713 = vst.msk [vmem:[#allocation2 + $0x64] sm:$0xf] %vm1687_vm15, %v1642_v38  ;;  %v3265_v38 = vshll.u32 %v3031_v23, 16 }
 0x146   : > { %v1644_v54 = vpop.permute.xlu0 %1643  ;;  %2718 = vrot.lane.b32.xlu1 %v2636_v48, %s4896_s24  ;;  %v3075_v48 = vrot.slane %v3073_v20, 5  ;;  %v3085_v9 = vrot.slane %v3084_v59, 4 }
 0x147   : > { %1714 = vst.msk [vmem:[#allocation2 + $0x68] sm:$0xf] %vm1687_vm15, %v1644_v54  ;;  %v3093_v54 = vrot.slane %v3091_v31, 4  ;;  %v3267_v61 = vrot.slane %v3265_v38, 5  ;;  %v1944_v38 = vld [vmem:[#allocation3 + $0x88] sm:$0xf] }
 0x148   : > { %2720 = vrot.lane.b32.xlu0 %v2639_v52, %s4896_s24  ;;  %v1646_v58 = vpop.permute.xlu1 %1645  ;;  %v3010_v52 = vld [vmem:[#allocation3 + $0x2c] sm:$0x1]  ;;  %v3090_v17 = vsel %vm5027_vm9, %v3085_v9, %v3089_v53  ;;  %v4847_v31 = vld [vmem:[%s6359_s1 + $0x10] ss:$0 sps:$4 sm:$0x33]  }
 0x149   : > { %1715 = vst.msk [vmem:[#allocation2 + $0x6c] sm:$0xf] %vm1687_vm15, %v1646_v58  ;;  %v3253_v58 = vrot.slane %v3252_v36, 4  ;;  %v3097_v62 = vshll.u32 %v3010_v52, 16  ;;  %v3094_v1 = vor.u32 %v3093_v54, %v3089_v53  ;;  %v3590_v36 = vld [vmem:[#allocation3 + $0x78] sm:$0xe]  ;;  %4812 = vmatprep.subr.msk.bf16.mxu0 %vm4084_vm1, %v4847_v31  ;;  %4813 = vmatprep.subr.msk.bf16.mxu1 %vm4084_vm1, %v4847_v31 }
 0x14a   : > { %v1648_v50 = vpop.permute.xlu0 %1647  ;;  %2876 = vrot.lane.b32.xlu1 %v2812_v22, %s4897_s25  ;;  %v4086_v43 = vsel %vm4084_vm1, %v4847_v31, 0  ;;  %v4637_v51 = vrot.slane %v3590_v36, 9  ;;  %v4848_v52 = vld [vmem:[%s6359_s1 + $0x8] sm:$0xff]   ;;  %v3569_v54 = vld [vmem:[#allocation3 + $0x24] sm:$0xe] }
 0x14b   : > { %1716 = vst.msk [vmem:[#allocation2 + $0x70] sm:$0xf] %vm1687_vm15, %v1648_v50  ;;  %v3076_v50 = vsel %vm5027_vm9, %v3071_v5, %v3075_v48  ;;  %v3258_v8 = vsel %vm5027_vm9, %v3253_v58, %v5623_v21  ;;  %v3099_v11 = vrot.slane %v3097_v62, 5  ;;  %v3095_v12 = vrot.slane %v3094_v1, 4  ;;  %v3570_v5 = vld [vmem:[#allocation3 + $0x28] sm:$0xf]  ;;  %4769 = vmatpush3.bf16.msra.mxu0 %v4086_v43  ;;  %4809 = vmatpush3.bf16.msra.mxu1 %v4086_v43 }
 0x14c   : > { %2878 = vrot.lane.b32.xlu0 %v2813_v26, %s4897_s25  ;;  %v1650_v3 = vpop.permute.xlu1 %1649  ;;  %v3275_v26 = vrot.slane %v3273_v35, 5  ;;  %v3671_v59 = vrot.slane %v3570_v5, 5  ;;  %4770 = vmatprep.subr.bf16.mxu0 %v4848_v52  ;;  %v2215_v62 = vshrl.u32 %v1944_v38, 16 }
 0x14d   : > { %1717 = vst.msk [vmem:[#allocation2 + $0x74] sm:$0xf] %vm1687_vm15, %v1650_v3  ;;  %v3285_v3 = vrot.slane %v3283_v56, 4  ;;  %v3100_v20 = vsel %vm5027_vm9, %v3095_v12, %v3099_v11  ;;  %v2205_v56 = vshll.u32 %v1943_v41, 16  ;;  %4807 = vmatprep.subr.bf16.mxu1 %v4848_v52 }
 0x14e   : > { %v1652_v63 = vpop.permute.xlu0 %1651  ;;  %2908 = vrot.lane.b32.xlu1 %v2828_v2, %s4897_s25  ;;  %v3281_v2 = vrot.slane %v3279_v55, 5  ;;  %v3276_v10 = vor.u32 %v3275_v26, %v3272_v60  ;;  %v2202_v55 = vshrl.u32 %v1943_v41, 16  ;;  %v1946_v60 = vld [vmem:[#allocation3 + $0x90] sm:$0xf] }
 0x14f   : > { %1718 = vst.msk [vmem:[#allocation2 + $0x78] sm:$0xf] %vm1687_vm15, %v1652_v63  ;;  %v3268_v63 = vsel %vm5027_vm9, %v3263_v0, %v3267_v61  ;;  %v2211_v61 = vshll.u32 %v1944_v38, 16  ;;  %4771 = vmatpush3.bf16.msra.mxu0 %v4848_v52  ;;  %4810 = vmatpush3.bf16.msra.mxu1 %v4848_v52  ;;  %v2226_v9 = vshrl.u32 %v1946_v60, 16 }
 0x150   : > { %2910 = vrot.lane.b32.xlu0 %v2829_v7, %s4897_s25  ;;  %v1654_v19 = vpop.permute.xlu1 %1653  ;;  %v3286_v13 = vor.u32 %v3285_v3, %v3281_v2  ;;  %v3277_v18 = vrot.slane %v3276_v10, 4  ;;  %v1947_v3 = vld [vmem:[#allocation3 + $0x94] sm:$0xf]  ;;  %v2204_v6 = vrot.slane %v2202_v55, 4  ;;  %v2229_v10 = vshll.u32 %v1946_v60, 16 }
 0x151   : > { %1719 = vst.msk [vmem:[#allocation2 + $0x7c] sm:$0xf] %vm1687_vm15, %v1654_v19  ;;  %v2481_v55 = vld [vmem:[#allocation3 + $0x28] sm:$0xf] }
 0x152   : > { %v1785_v32 = vpop.permute.xlu0 %1784  ;;  %2880 = vrot.lane.b32.xlu1 %v2814_v16, %s4897_s25  ;;  %v3567_v16 = vld [vmem:[#allocation3 + $0x1c] sm:$0xf]  ;;  %v3287_v21 = vrot.slane %v3286_v13, 4 }
 0x153   : > { %1881 = vst.msk [vmem:[#allocation2] sm:$0xf] %vm1880_vm0, %v1785_v32  ;;  %v3664_v25 = vrot.slane %v3567_v16, 5  ;;  %v3282_v32 = vsel %vm5027_vm9, %v3277_v18, %v3281_v2  ;;  %v4630_v2 = vrot.slane %v3569_v54, 9  ;;  %v2213_v16 = vrot.slane %v2211_v61, 5 }
 0x154   : > { %2882 = vrot.lane.b32.xlu0 %v2815_v27, %s4897_s25  ;;  %v1787_v46 = vpop.permute.xlu1 %1786  ;;  %v3591_v27 = vld [vmem:[#allocation3 + $0x7c] sm:$0xf]  ;;  %v3292_v44 = vsel %vm5027_vm9, %v3287_v21, %v3291_v24  ;;  %v2235_v18 = vshll.u32 %v1947_v3, 16  ;;  %v1945_v21 = vld [vmem:[#allocation3 + $0x8c] sm:$0x1]  ;;  %v4638_v24 = vrot.slane %v3593_v14, 9 }
 0x155   : > { %1882 = vst.msk [vmem:[#allocation2 + $0x4] sm:$0xf] %vm1880_vm0, %v1787_v46  ;;  %v3666_v35 = vrot.slane %v3664_v25, 4  ;;  %v3667_v46 = vrot.slane %v3568_v28, 5  ;;  %v3665_v53 = vsel %vm5297_vm13, %v4629_v33, %v3664_v25  ;;  %v2482_v61 = vld [vmem:[#allocation3 + $0x2c] sm:$0x1] }
 0x156   : > { %v1789_v22 = vpop.permute.xlu0 %1788  ;;  %2912 = vrot.lane.b32.xlu1 %v2830_v40, %s4897_s25  ;;  %v3720_v40 = vrot.slane %v3591_v27, 5  ;;  %v2228_v27 = vrot.slane %v2226_v9, 4  ;;  %v2483_v14 = vld [vmem:[#allocation3 + $0x30] sm:$0xe] }
 0x157   : > { %1883 = vst.msk [vmem:[#allocation2 + $0x8] sm:$0xf] %vm1880_vm0, %v1789_v22  ;;  %v3668_v26 = vsel %vm5297_vm13, %v3666_v35, %v3667_v46 }
 0x158   : > { %2914 = vrot.lane.b32.xlu0 %v2831_v47, %s4897_s25  ;;  %v1791_v30 = vpop.permute.xlu1 %1790  ;;  %v3592_v47 = vld [vmem:[#allocation3 + $0x80] sm:$0x1]  ;;  %v3721_v1 = vsel %vm5297_vm13, %v4637_v51, %v3720_v40 }
 0x159   : > { %1884 = vst.msk [vmem:[#allocation2 + $0xc] sm:$0xf] %vm1880_vm0, %v1791_v30  ;;  %v3723_v58 = vrot.slane %v3592_v47, 5  ;;  %v3571_v30 = vld [vmem:[#allocation3 + $0x2c] sm:$0x1] }
 0x15a   : > { %v1793_v4 = vpop.permute.xlu0 %1792  ;;  %3437 = vrot.lane.b32.xlu1 %v3066_v57, %s4898_s26  ;;  %v3722_v57 = vrot.slane %v3720_v40, 4  ;;  %v3674_v12 = vrot.slane %v3571_v30, 5  ;;  %v2237_v40 = vrot.slane %v2235_v18, 5  ;;  %v2586_v30 = vrot.slane %v2481_v55, 5 }
 0x15b   : > { %1885 = vst.msk [vmem:[#allocation2 + $0x10] sm:$0xf] %vm1880_vm0, %v1793_v4  ;;  %v4850_v4 = vld [vmem:[%s6359_s1] sm:$0xff]   ;;  %v585_v55 = vrot.slane %v5389_v42, 4 }
 0x15c   : > { %3439 = vrot.lane.b32.xlu0 %v3076_v50, %s4898_s26  ;;  %v1795_v7 = vpop.permute.xlu1 %1794  ;;  %v3594_v50 = vld [vmem:[#allocation3 + $0x88] sm:$0xf]  ;;  %v3724_v11 = vsel %vm5297_vm13, %v3722_v57, %v3723_v58  ;;  %4772 = vmatprep.subr.bf16.mxu0 %v4850_v4  ;;  %v2480_v58 = vld [vmem:[#allocation3 + $0x24] sm:$0xe] }
 0x15d   : > { %1886 = vst.msk [vmem:[#allocation2 + $0x14] sm:$0xf] %vm1880_vm0, %v1795_v7  ;;  %v3727_v13 = vrot.slane %v3594_v50, 5  ;;  %4773 = vmatpush3.bf16.msra.mxu0 %v4850_v4  ;;  %4808 = vmatprep.subr.bf16.mxu1 %v4850_v4 }
 0x15e   : > { %v1797_v15 = vpop.permute.xlu0 %1796  ;;  %3469 = vrot.lane.b32.xlu1 %v3258_v8, %s4898_s26  ;;  %v2207_v8 = vrot.slane %v2205_v56, 5  ;;  %4811 = vmatpush3.bf16.msra.mxu1 %v4850_v4 }
 0x15f   : > { %1887 = vst.msk [vmem:[#allocation2 + $0x18] sm:$0xf] %vm1880_vm0, %v1797_v15  ;;  %v3595_v15 = vld [vmem:[#allocation3 + $0x8c] sm:$0x1]  ;;  %v3728_v35 = vsel %vm5297_vm13, %v4638_v24, %v3727_v13  ;;  %v4616_v24 = vrot.slane %v2483_v14, 9 }
 0x160   : > { %3471 = vrot.lane.b32.xlu0 %v3268_v63, %s4898_s26  ;;  %v1799_v19 = vpop.permute.xlu1 %1798  ;;  %v3673_v63 = vrot.slane %v3671_v59, 4  ;;  %v2208_v25 = vor.u32 %v2207_v8, %v2204_v6  ;;  %v3730_v33 = vrot.slane %v3595_v15, 5  ;;  %v2588_v6 = vrot.slane %v2586_v30, 4  ;;  %v3015_v14 = vld [vmem:[#allocation3 + $0x40] sm:$0xf] }
 0x161   : > { %1888 = vst.msk [vmem:[#allocation2 + $0x1c] sm:$0xf] %vm1880_vm0, %v1799_v19  ;;  %v2239_v19 = vshrl.u32 %v1947_v3, 16  ;;  %v2504_v3 = vld [vmem:[#allocation3 + $0x84] sm:$0xe]  ;;  %v2589_v8 = vrot.slane %v2482_v61, 5 }
 0x162   : > { %v1801_v23 = vpop.permute.xlu0 %1800  ;;  %3441 = vrot.lane.b32.xlu1 %v3090_v17, %s4898_s26  ;;  %v2217_v17 = vrot.slane %v2215_v62, 4  ;;  %v3675_v31 = vsel %vm5297_vm13, %v3673_v63, %v3674_v12  ;;  %v2209_v46 = vrot.slane %v2208_v25, 4  ;;  %v2505_v62 = vld [vmem:[#allocation3 + $0x88] sm:$0xf]  ;;  %v4623_v12 = vrot.slane %v2504_v3, 9 }
 0x163   : > { %1889 = vst.msk [vmem:[#allocation2 + $0x20] sm:$0xf] %vm1880_vm0, %v1801_v23  ;;  %v2231_v23 = vrot.slane %v2229_v10, 5  ;;  %v2241_v41 = vrot.slane %v2239_v19, 4  ;;  %v2642_v9 = vrot.slane %v2505_v62, 5  ;;  %v2590_v15 = vsel %vm5297_vm13, %v2588_v6, %v2589_v8 }
 0x164   : > { %3443 = vrot.lane.b32.xlu0 %v3100_v20, %s4898_s26  ;;  %v1803_v39 = vpop.permute.xlu1 %1802  ;;  %v3672_v20 = vsel %vm5297_vm13, %v4630_v2, %v3671_v59  ;;  %v2218_v36 = vor.u32 %v2217_v17, %v2213_v16  ;;  %v2214_v56 = vsel %vm5027_vm9, %v2209_v46, %v2213_v16 }
 0x165   : > { %1890 = vst.msk [vmem:[#allocation2 + $0x24] sm:$0xf] %vm1880_vm0, %v1803_v39  ;;  %v2221_v39 = vshll.u32 %v1945_v21, 16  ;;  %v2232_v47 = vor.u32 %v2231_v23, %v2228_v27  ;;  %v2242_v52 = vor.u32 %v2241_v41, %v2237_v40  ;;  %v2644_v16 = vrot.slane %v2642_v9, 4  ;;  %v2507_v27 = vld [vmem:[#allocation3 + $0x90] sm:$0xe] }
 0x166   : > { %v1805_v48 = vpop.permute.xlu0 %1804  ;;  %3473 = vrot.lane.b32.xlu1 %v3282_v32, %s4898_s26  ;;  %v3729_v32 = vrot.slane %v3727_v13, 4  ;;  %v2219_v51 = vrot.slane %v2218_v36, 4  ;;  %v2643_v21 = vsel %vm5297_vm13, %v4623_v12, %v2642_v9  ;;  %v2509_v36 = vld [vmem:[#allocation3 + $0x98] sm:$0x1] }
 0x167   : > { %1891 = vst.msk [vmem:[#allocation2 + $0x28] sm:$0xf] %vm1880_vm0, %v1805_v48  ;;  %v2223_v38 = vrot.slane %v2221_v39, 5  ;;  %v2243_v60 = vrot.slane %v2242_v52, 4 }
 0x168   : > { %3475 = vrot.lane.b32.xlu0 %v3292_v44, %s4898_s26  ;;  %v1807_v22 = vpop.permute.xlu1 %1806  ;;  %v1948_v44 = vld [vmem:[#allocation3 + $0x98] sm:$0x1]  ;;  %v3731_v48 = vsel %vm5297_vm13, %v3729_v32, %v3730_v33 }
 0x169   : > { %1892 = vst.msk [vmem:[#allocation2 + $0x2c] sm:$0xf] %vm1880_vm0, %v1807_v22  ;;  %v2233_v22 = vrot.slane %v2232_v47, 4  ;;  %v2224_v59 = vsel %vm5027_vm9, %v2219_v51, %v2223_v38  ;;  %v3012_v38 = vld [vmem:[#allocation3 + $0x34] sm:$0xf] }
 0x16a   : > { %v1809_v0 = vpop.permute.xlu0 %1808  ;;  %3774 = vrot.lane.b32.xlu1 %v3665_v53, %s4899_s4  ;;  %v2245_v53 = vshll.u32 %v1948_v44, 16 }
 0x16b   : > { %1893 = vst.msk [vmem:[#allocation2 + $0x30] sm:$0xf] %vm1880_vm0, %v1809_v0  ;;  %v2238_v0 = vsel %vm5027_vm9, %v2233_v22, %v2237_v40  ;;  %v4624_v40 = vrot.slane %v2507_v27, 9  ;;  %v3035_v22 = vld [vmem:[#allocation3 + $0x90] sm:$0xf] }
 0x16c   : > { %3776 = vrot.lane.b32.xlu0 %v3668_v26, %s4899_s4  ;;  %v1811_v7 = vpop.permute.xlu1 %1810  ;;  %v2247_v26 = vrot.slane %v2245_v53, 5  ;;  %v3294_v62 = vshrl.u32 %v3035_v22, 16  ;;  %v3037_v27 = vld [vmem:[#allocation3 + $0x98] sm:$0x1] }
 0x16d   : > { %1894 = vst.msk [vmem:[#allocation2 + $0x34] sm:$0xf] %vm1880_vm0, %v1811_v7  ;;  %v2506_v7 = vld [vmem:[#allocation3 + $0x8c] sm:$0x1] }
 0x16e   : > { %v1813_v49 = vpop.permute.xlu0 %1812  ;;  %3806 = vrot.lane.b32.xlu1 %v3721_v1, %s4899_s4  ;;  %v4615_v1 = vrot.slane %v2480_v58, 9  ;;  %v2248_v4 = vsel %vm5027_vm9, %v2243_v60, %v2247_v26  ;;  %v2645_v17 = vrot.slane %v2506_v7, 5  ;;  %v3111_v58 = vshll.u32 %v3012_v38, 16  ;;  %v2817_v60 = vld [vmem:[#allocation3 + $0x34] sm:$0xf] }
 0x16f   : > { %1895 = vst.msk [vmem:[#allocation2 + $0x38] sm:$0xf] %vm1880_vm0, %v1813_v49  ;;  %v2485_v49 = vld [vmem:[#allocation3 + $0x38] sm:$0x1]  ;;  %v3036_v26 = vld [vmem:[#allocation3 + $0x94] sm:$0xf] }
 0x170   : > { %3808 = vrot.lane.b32.xlu0 %v3724_v11, %s4899_s4  ;;  %v1815_v28 = vpop.permute.xlu1 %1814  ;;  %v2484_v11 = vld [vmem:[#allocation3 + $0x34] sm:$0xf]  ;;  %v2587_v63 = vsel %vm5297_vm13, %v4615_v1, %v2586_v30  ;;  %v2646_v23 = vsel %vm5297_vm13, %v2644_v16, %v2645_v17  ;;  %v749_v30 = vld [vmem:[#allocation3 + $0xc8] sm:$0x1]  ;;  %v2832_v1 = vld [vmem:[#allocation3 + $0x90] sm:$0xf] }
 0x171   : > { %1896 = vst.msk [vmem:[#allocation2 + $0x3c] sm:$0xf] %vm1880_vm0, %v1815_v28  ;;  %v2593_v18 = vrot.slane %v2484_v11, 5  ;;  %v3303_v8 = vshll.u32 %v3036_v26, 16  ;;  %v3307_v9 = vshrl.u32 %v3036_v26, 16  ;;  %v3296_v45 = vrot.slane %v3294_v62, 4 }
 0x172   : > { %v1817_v43 = vpop.permute.xlu0 %1816  ;;  %3778 = vrot.lane.b32.xlu1 %v3672_v20, %s4899_s4  ;;  %v2508_v20 = vld [vmem:[#allocation3 + $0x94] sm:$0xf]  ;;  %v3013_v11 = vld [vmem:[#allocation3 + $0x38] sm:$0x1] }
 0x173   : > { %1897 = vst.msk [vmem:[#allocation2 + $0x40] sm:$0xf] %vm1880_vm0, %v1817_v43  ;;  %v2595_v28 = vrot.slane %v2593_v18, 4  ;;  %v2649_v32 = vrot.slane %v2508_v20, 5  ;;  %v2594_v39 = vsel %vm5297_vm13, %v4616_v24, %v2593_v18  ;;  %v2833_v7 = vld [vmem:[#allocation3 + $0x94] sm:$0xf] }
 0x174   : > { %3780 = vrot.lane.b32.xlu0 %v3675_v31, %s4899_s4  ;;  %v1819_v5 = vpop.permute.xlu1 %1818  ;;  %v2596_v31 = vrot.slane %v2485_v49, 5  ;;  %v3121_v49 = vshll.u32 %v3013_v11, 16  ;;  %v5771_v20 = vrot.slane %v3303_v8, 5  ;;  %v3038_v24 = vld [vmem:[#allocation3 + $0x9c] sm:$0xf] }
 0x175   : > { %1898 = vst.msk [vmem:[#allocation2 + $0x44] sm:$0xf] %vm1880_vm0, %v1819_v5  ;;  %v2651_v44 = vrot.slane %v2649_v32, 4  ;;  %v2650_v47 = vsel %vm5297_vm13, %v4624_v40, %v2649_v32  ;;  %v3011_v5 = vld [vmem:[#allocation3 + $0x30] sm:$0xf] }
 0x176   : > { %v1821_v54 = vpop.permute.xlu0 %1820  ;;  %3810 = vrot.lane.b32.xlu1 %v3728_v35, %s4899_s4  ;;  %v2597_v43 = vsel %vm5297_vm13, %v2595_v28, %v2596_v31  ;;  %v2652_v35 = vrot.slane %v2509_v36, 5  ;;  %v3102_v53 = vshrl.u32 %v3011_v5, 16  ;;  %v3139_v28 = vshrl.u32 %v3015_v14, 16  ;;  %v3039_v36 = vld [vmem:[#allocation3 + $0xa0] sm:$0xf] }
 0x177   : > { %1899 = vst.msk [vmem:[#allocation2 + $0x48] sm:$0xf] %vm1880_vm0, %v1821_v54  ;;  %v3105_v54 = vshll.u32 %v3011_v5, 16 }
 0x178   : > { %3812 = vrot.lane.b32.xlu0 %v3731_v48, %s4899_s4  ;;  %v1823_v57 = vpop.permute.xlu1 %1822  ;;  %v2653_v51 = vsel %vm5297_vm13, %v2651_v44, %v2652_v35  ;;  %v3104_v61 = vrot.slane %v3102_v53, 4  ;;  %v3321_v44 = vshll.u32 %v3038_v24, 16  ;;  %v3327_v53 = vshll.u32 %v3039_v36, 16 }
 0x179   : > { %1900 = vst.msk [vmem:[#allocation2 + $0x4c] sm:$0xf] %vm1880_vm0, %v1823_v57  ;;  %v3107_v42 = vrot.slane %v3105_v54, 5  ;;  %v3331_v54 = vshrl.u32 %v3039_v36, 16  ;;  %v3596_v36 = vld [vmem:[#allocation3 + $0x90] sm:$0xe] }
 0x17a   : > { %v1825_v50 = vpop.permute.xlu0 %1824  ;;  %2385 = vrot.lane.b32.xlu1 %v2214_v56, %s4895_s23  ;;  %v2816_v56 = vld [vmem:[#allocation3 + $0x30] sm:$0xf] }
 0x17b   : > { %1901 = vst.msk [vmem:[#allocation2 + $0x50] sm:$0xf] %vm1880_vm0, %v1825_v50  ;;  %v3108_v12 = vor.u32 %v3107_v42, %v3104_v61 }
 0x17c   : > { %2387 = vrot.lane.b32.xlu0 %v2224_v59, %s4895_s23  ;;  %v1827_v2 = vpop.permute.xlu1 %1826  ;;  %v3115_v59 = vshrl.u32 %v3012_v38, 16 }
 0x17d   : > { %1902 = vst.msk [vmem:[#allocation2 + $0x54] sm:$0xf] %vm1880_vm0, %v1827_v2  ;;  %v750_v2 = vsel %vm5035_vm10, %v585_v55, %v749_v30  ;;  %v3109_v32 = vrot.slane %v3108_v12, 4 }
 0x17e   : > { %v1829_v10 = vpop.permute.xlu0 %1828  ;;  %2389 = vrot.lane.b32.xlu1 %v2238_v0, %s4895_s23  ;;  %v3297_v0 = vshll.u32 %v3035_v22, 16  ;;  %v3117_v6 = vrot.slane %v3115_v59, 4  ;;  %751 = vst [vmem:[#allocation3 + $0xc8] sm:$0x1] %v750_v2  ;;  %v3016_v22 = vld [vmem:[#allocation3 + $0x44] sm:$0x1] }
 0x17f   : > { %1903 = vst.msk [vmem:[#allocation2 + $0x58] sm:$0xf] %vm1880_vm0, %v1829_v10  ;;  %v3014_v10 = vld [vmem:[#allocation3 + $0x3c] sm:$0xf]  ;;  %v3145_v62 = vshll.u32 %v3016_v22, 16 }
 0x180   : > { %2391 = vrot.lane.b32.xlu0 %v2248_v4, %s4895_s23  ;;  %v1831_v13 = vpop.permute.xlu1 %1830  ;;  %v5764_v4 = vrot.slane %v3111_v58, 5  ;;  %v3126_v16 = vshrl.u32 %v3014_v10, 16  ;;  %v3129_v17 = vshll.u32 %v3014_v10, 16 }
 0x181   : > { %1904 = vst.msk [vmem:[#allocation2 + $0x5c] sm:$0xf] %vm1880_vm0, %v1831_v13  ;;  %v3299_v13 = vrot.slane %v3297_v0, 5  ;;  %v3329_v0 = vrot.slane %v3327_v53, 5  ;;  %v3147_v11 = vrot.slane %v3145_v62, 5 }
 0x182   : > { %v1833_v19 = vpop.permute.xlu0 %1832  ;;  %2690 = vrot.lane.b32.xlu1 %v2587_v63, %s4896_s24  ;;  %v3128_v40 = vrot.slane %v3126_v16, 4  ;;  %v1928_v62 = vld [vmem:[#allocation3 + $0x48] sm:$0xf] }
 0x183   : > { %1905 = vst.msk [vmem:[#allocation2 + $0x60] sm:$0xf] %vm1880_vm0, %v1833_v19  ;;  %v3118_v19 = vor.u32 %v3117_v6, %v5764_v4 }
 0x184   : > { %2692 = vrot.lane.b32.xlu0 %v2590_v15, %s4896_s24  ;;  %v1835_v25 = vpop.permute.xlu1 %1834  ;;  %v2818_v15 = vld [vmem:[#allocation3 + $0x3c] sm:$0xf] }
 0x185   : > { %1906 = vst.msk [vmem:[#allocation2 + $0x64] sm:$0xf] %vm1880_vm0, %v1835_v25  ;;  %v2819_v25 = vld [vmem:[#allocation3 + $0x40] sm:$0xf] }
 0x186   : > { %v1837_v33 = vpop.permute.xlu0 %1836  ;;  %2722 = vrot.lane.b32.xlu1 %v2643_v21, %s4896_s24  ;;  %v3309_v21 = vrot.slane %v3307_v9, 4 }
 0x187   : > { %1907 = vst.msk [vmem:[#allocation2 + $0x68] sm:$0xf] %vm1880_vm0, %v1837_v33  ;;  %v3300_v33 = vor.u32 %v3299_v13, %v3296_v45  ;;  %v3573_v45 = vld [vmem:[#allocation3 + $0x34] sm:$0xf] }
 0x188   : > { %2724 = vrot.lane.b32.xlu0 %v2646_v23, %s4896_s24  ;;  %v1839_v41 = vpop.permute.xlu1 %1838  ;;  %v3135_v23 = vshll.u32 %v3015_v14, 16  ;;  %v3310_v5 = vor.u32 %v3309_v21, %v5771_v20  ;;  %v3597_v21 = vld [vmem:[#allocation3 + $0x94] sm:$0xf] }
 0x189   : > { %1908 = vst.msk [vmem:[#allocation2 + $0x6c] sm:$0xf] %vm1880_vm0, %v1839_v41  ;;  %v3131_v41 = vrot.slane %v3129_v17, 5  ;;  %v3678_v17 = vrot.slane %v3573_v45, 5  ;;  %v2085_v45 = vshll.u32 %v1928_v62, 16 }
 0x18a   : > { %v1841_v46 = vpop.permute.xlu0 %1840  ;;  %2694 = vrot.lane.b32.xlu1 %v2594_v39, %s4896_s24  ;;  %v2834_v39 = vld [vmem:[#allocation3 + $0x9c] sm:$0xf]  ;;  %v3137_v38 = vrot.slane %v3135_v23, 5 }
 0x18b   : > { %1909 = vst.msk [vmem:[#allocation2 + $0x70] sm:$0xf] %vm1880_vm0, %v1841_v46  ;;  %v3119_v46 = vrot.slane %v3118_v19, 4  ;;  %v3132_v58 = vor.u32 %v3131_v41, %v3128_v40  ;;  %v3598_v41 = vld [vmem:[#allocation3 + $0x98] sm:$0x1] }
 0x18c   : > { %2696 = vrot.lane.b32.xlu0 %v2597_v43, %s4896_s24  ;;  %v1843_v48 = vpop.permute.xlu1 %1842  ;;  %v3318_v43 = vshrl.u32 %v3038_v24, 16 }
 0x18d   : > { %1910 = vst.msk [vmem:[#allocation2 + $0x74] sm:$0xf] %vm1880_vm0, %v1843_v48  ;;  %v3313_v48 = vshll.u32 %v3037_v27, 16  ;;  %v3133_v6 = vrot.slane %v3132_v58, 4  ;;  %v5806_v27 = vld [vmem:[#allocation3 + $0x40] sm:$0xf] }
 0x18e   : > { %v1845_v52 = vpop.permute.xlu0 %1844  ;;  %2726 = vrot.lane.b32.xlu1 %v2650_v47, %s4896_s24  ;;  %v3123_v47 = vrot.slane %v3121_v49, 5  ;;  %v3320_v59 = vrot.slane %v3318_v43, 4  ;;  %v3685_v43 = vrot.slane %v5806_v27, 5 }
 0x18f   : > { %1911 = vst.msk [vmem:[#allocation2 + $0x78] sm:$0xf] %vm1880_vm0, %v1845_v52  ;;  %v3141_v52 = vrot.slane %v3139_v28, 4  ;;  %v3315_v61 = vrot.slane %v3313_v48, 5  ;;  %v3138_v14 = vsel %vm5027_vm9, %v3133_v6, %v3137_v38 }
 0x190   : > { %2728 = vrot.lane.b32.xlu0 %v2653_v51, %s4896_s24  ;;  %v1847_v57 = vpop.permute.xlu1 %1846  ;;  %v2835_v51 = vld [vmem:[#allocation3 + $0xa0] sm:$0xf]  ;;  %v3124_v30 = vsel %vm5027_vm9, %v3119_v46, %v3123_v47  ;;  %v3687_v58 = vrot.slane %v3685_v43, 4 }
 0x191   : > { %1912 = vst.msk [vmem:[#allocation2 + $0x7c] sm:$0xf] %vm1880_vm0, %v1847_v57  ;;  %v3301_v57 = vrot.slane %v3300_v33, 4  ;;  %v3142_v42 = vor.u32 %v3141_v52, %v3137_v38  ;;  %v3734_v33 = vrot.slane %v3597_v21, 5  ;;  %v1950_v38 = vld [vmem:[#allocation3 + $0xa0] sm:$0xf] }
 0x192   : > { %v2346_v50 = vpop.permute.xlu0 %2345  ;;  %2884 = vrot.lane.b32.xlu1 %v2816_v56, %s4897_s25  ;;  %v3114_v56 = vsel %vm5027_vm9, %v3109_v32, %v5764_v4  ;;  %v3680_v32 = vrot.slane %v3678_v17, 4 }
 0x193   : > { %2442 = vst.msk [vmem:[#allocation2] sm:$0xf] %vm2441_vm2, %v2346_v50  ;;  %v3311_v50 = vrot.slane %v3310_v5, 4  ;;  %v3306_v4 = vsel %vm5027_vm9, %v3301_v57, %v5771_v20  ;;  %v3577_v5 = vld [vmem:[#allocation3 + $0x44] sm:$0x1]  ;;  %v3736_v53 = vrot.slane %v3734_v33, 4 }
 0x194   : > { %2886 = vrot.lane.b32.xlu0 %v2817_v60, %s4897_s25  ;;  %v2348_v3 = vpop.permute.xlu1 %2347  ;;  %v3323_v60 = vrot.slane %v3321_v44, 5  ;;  %v1949_v44 = vld [vmem:[#allocation3 + $0x9c] sm:$0xf] }
 0x195   : > { %2443 = vst.msk [vmem:[#allocation2 + $0x4] sm:$0xf] %vm2441_vm2, %v2348_v3  ;;  %v3040_v3 = vld [vmem:[#allocation3 + $0xa4] sm:$0x1]  ;;  %v3316_v10 = vsel %vm5027_vm9, %v3311_v50, %v3315_v61  ;;  %v2253_v22 = vshll.u32 %v1949_v44, 16  ;;  %v2259_v61 = vshll.u32 %v1950_v38, 16 }
 0x196   : > { %v2350_v63 = vpop.permute.xlu0 %2349  ;;  %2916 = vrot.lane.b32.xlu1 %v2832_v1, %s4897_s25  ;;  %v3333_v1 = vrot.slane %v3331_v54, 4  ;;  %v3324_v8 = vor.u32 %v3323_v60, %v3320_v59  ;;  %v3337_v12 = vshll.u32 %v3040_v3, 16  ;;  %v3737_v54 = vrot.slane %v3598_v41, 5  ;;  %v3600_v60 = vld [vmem:[#allocation3 + $0xa0] sm:$0xf] }
 0x197   : > { %2444 = vst.msk [vmem:[#allocation2 + $0x8] sm:$0xf] %vm2441_vm2, %v2350_v63  ;;  %v3688_v59 = vrot.slane %v3577_v5, 5 }
 0x198   : > { %2918 = vrot.lane.b32.xlu0 %v2833_v7, %s4897_s25  ;;  %v2352_v18 = vpop.permute.xlu1 %2351  ;;  %v3143_v7 = vrot.slane %v3142_v42, 4  ;;  %v3334_v63 = vor.u32 %v3333_v1, %v3329_v0  ;;  %v3339_v20 = vrot.slane %v3337_v12, 5  ;;  %v2263_v42 = vshrl.u32 %v1950_v38, 16  ;;  %v1930_v38 = vld [vmem:[#allocation3 + $0x50] sm:$0x1] }
 0x199   : > { %2445 = vst.msk [vmem:[#allocation2 + $0xc] sm:$0xf] %vm2441_vm2, %v2352_v18  ;;  %v3572_v18 = vld [vmem:[#allocation3 + $0x30] sm:$0xe]  ;;  %v2082_v12 = vshrl.u32 %v1928_v62, 16 }
 0x19a   : > { %v2354_v31 = vpop.permute.xlu0 %2353  ;;  %2888 = vrot.lane.b32.xlu1 %v2818_v15, %s4897_s25  ;;  %v3325_v15 = vrot.slane %v3324_v8, 4  ;;  %v3148_v19 = vsel %vm5027_vm9, %v3143_v7, %v3147_v11  ;;  %v3335_v49 = vrot.slane %v3334_v63, 4  ;;  %v4631_v28 = vrot.slane %v3572_v18, 9  ;;  %v3601_v63 = vld [vmem:[#allocation3 + $0xa4] sm:$0x1] }
 0x19b   : > { %2446 = vst.msk [vmem:[#allocation2 + $0x10] sm:$0xf] %vm2441_vm2, %v2354_v31  ;;  %v3738_v7 = vsel %vm5297_vm13, %v3736_v53, %v3737_v54  ;;  %v3689_v11 = vsel %vm5297_vm13, %v3687_v58, %v3688_v59  ;;  %v1952_v18 = vld [vmem:[#allocation3 + $0xa8] sm:$0xf]  ;;  %v3744_v27 = vrot.slane %v3601_v63, 5 }
 0x19c   : > { %2890 = vrot.lane.b32.xlu0 %v2819_v25, %s4897_s25  ;;  %v2356_v35 = vpop.permute.xlu1 %2355  ;;  %v3574_v25 = vld [vmem:[#allocation3 + $0x38] sm:$0x1]  ;;  %v3330_v23 = vsel %vm5027_vm9, %v3325_v15, %v3329_v0  ;;  %v3679_v48 = vsel %vm5297_vm13, %v4631_v28, %v3678_v17  ;;  %v2265_v17 = vrot.slane %v2263_v42, 4  ;;  %v1953_v28 = vld [vmem:[#allocation3 + $0xac] sm:$0xf] }
 0x19d   : > { %2447 = vst.msk [vmem:[#allocation2 + $0x14] sm:$0xf] %vm2441_vm2, %v2356_v35  ;;  %v3681_v40 = vrot.slane %v3574_v25, 5  ;;  %v4866_v35 = vld [vmem:[#allocation3 + $0x40] sm:$0xf]  ;;  %v2287_v5 = vshrl.u32 %v1953_v28, 16 }
 0x19e   : > { %v2358_v55 = vpop.permute.xlu0 %2357  ;;  %2920 = vrot.lane.b32.xlu1 %v2834_v39, %s4897_s25  ;;  %v3340_v39 = vsel %vm5027_vm9, %v3335_v49, %v3339_v20  ;;  %v2071_v46 = vshrl.u32 %v4866_v35, 16  ;;  %v1951_v49 = vld [vmem:[#allocation3 + $0xa4] sm:$0x1] }
 0x19f   : > { %2448 = vst.msk [vmem:[#allocation2 + $0x18] sm:$0xf] %vm2441_vm2, %v2358_v55  ;;  %v3575_v55 = vld [vmem:[#allocation3 + $0x3c] sm:$0xe]  ;;  %v3682_v57 = vsel %vm5297_vm13, %v3680_v32, %v3681_v40  ;;  %v2087_v32 = vrot.slane %v2085_v45, 5 }
 0x1a0   : > { %2922 = vrot.lane.b32.xlu0 %v2835_v51, %s4897_s25  ;;  %v2360_v26 = vpop.permute.xlu1 %2359  ;;  %v4639_v51 = vrot.slane %v3596_v36, 9  ;;  %v2073_v50 = vrot.slane %v2071_v46, 4  ;;  %v4632_v1 = vrot.slane %v3575_v55, 9  ;;  %v2277_v36 = vshll.u32 %v1952_v18, 16 }
 0x1a1   : > { %2449 = vst.msk [vmem:[#allocation2 + $0x1c] sm:$0xf] %vm2441_vm2, %v2360_v26  ;;  %v3599_v26 = vld [vmem:[#allocation3 + $0x9c] sm:$0xe] }
 0x1a2   : > { %v2362_v2 = vpop.permute.xlu0 %2361  ;;  %3445 = vrot.lane.b32.xlu1 %v3114_v56, %s4898_s26  ;;  %v2250_v56 = vshrl.u32 %v1949_v44, 16  ;;  %v3735_v0 = vsel %vm5297_vm13, %v4639_v51, %v3734_v33  ;;  %v4640_v6 = vrot.slane %v3599_v26, 9  ;;  %v2274_v33 = vshrl.u32 %v1952_v18, 16  ;;  %v2511_v18 = vld [vmem:[#allocation3 + $0xa0] sm:$0xf] }
 0x1a3   : > { %2450 = vst.msk [vmem:[#allocation2 + $0x20] sm:$0xf] %vm2441_vm2, %v2362_v2  ;;  %v1927_v2 = vld [vmem:[#allocation3 + $0x44] sm:$0x1]  ;;  %v2269_v44 = vshll.u32 %v1951_v49, 16  ;;  %v2279_v55 = vrot.slane %v2277_v36, 5 }
 0x1a4   : > { %3447 = vrot.lane.b32.xlu0 %v3124_v30, %s4898_s26  ;;  %v2378_v9 = vpop.permute.xlu1 %2377  ;;  %v2252_v8 = vrot.slane %v2250_v56, 4  ;;  %v2077_v15 = vshll.u32 %v1927_v2, 16  ;;  %v2276_v54 = vrot.slane %v2274_v33, 4 }
 0x1a5   : > { %2458 = vst.msk [vmem:[#allocation2 + $0x40] sm:$0xf] %vm2441_vm2, %v2378_v9  ;;  %v2255_v9 = vrot.slane %v2253_v22, 5  ;;  %v2271_v58 = vrot.slane %v2269_v44, 5 }
 0x1a6   : > { %v2380_v13 = vpop.permute.xlu0 %2379  ;;  %3477 = vrot.lane.b32.xlu1 %v3306_v4, %s4898_s26  ;;  %v3741_v4 = vrot.slane %v3600_v60, 5  ;;  %v2079_v41 = vrot.slane %v2077_v15, 5  ;;  %v2101_v60 = vshll.u32 %v1930_v38, 16  ;;  %v2513_v38 = vld [vmem:[#allocation3 + $0xa8] sm:$0xe] }
 0x1a7   : > { %2459 = vst.msk [vmem:[#allocation2 + $0x44] sm:$0xf] %vm2441_vm2, %v2380_v13 }
 0x1a8   : > { %3479 = vrot.lane.b32.xlu0 %v3316_v10, %s4898_s26  ;;  %v2382_v16 = vpop.permute.xlu1 %2381  ;;  %v1929_v10 = vld [vmem:[#allocation3 + $0x4c] sm:$0xf]  ;;  %v3743_v25 = vrot.slane %v3741_v4, 4 }
 0x1a9   : > { %2460 = vst.msk [vmem:[#allocation2 + $0x48] sm:$0xf] %vm2441_vm2, %v2382_v16  ;;  %v5836_v16 = vrot.slane %v2259_v61, 5  ;;  %v2091_v20 = vshll.u32 %v1929_v10, 16  ;;  %v2095_v21 = vshrl.u32 %v1929_v10, 16 }
 0x1aa   : > { %v2384_v24 = vpop.permute.xlu0 %2383  ;;  %3449 = vrot.lane.b32.xlu1 %v3138_v14, %s4898_s26  ;;  %v2074_v14 = vor.u32 %v2073_v50, %v5549_v37  ;;  %v3742_v37 = vsel %vm5297_vm13, %v4640_v6, %v3741_v4  ;;  %v3745_v51 = vsel %vm5297_vm13, %v3743_v25, %v3744_v27  ;;  %v1954_v61 = vld [vmem:[#allocation3 + $0xb0] sm:$0x1]  ;;  %v2103_v4 = vrot.slane %v2101_v60, 5  ;;  %v2487_v10 = vld [vmem:[#allocation3 + $0x40] sm:$0xf] }
 0x1ab   : > { %2461 = vst.msk [vmem:[#allocation2 + $0x4c] sm:$0xf] %vm2441_vm2, %v2384_v24  ;;  %v2093_v35 = vrot.slane %v2091_v20, 5  ;;  %v2097_v46 = vrot.slane %v2095_v21, 4  ;;  %v2600_v15 = vrot.slane %v2487_v10, 5 }
 0x1ac   : > { %3451 = vrot.lane.b32.xlu0 %v3148_v19, %s4898_s26  ;;  %v2683_v31 = vpop.permute.xlu1 %2682  ;;  %v3686_v19 = vsel %vm5297_vm13, %v4632_v1, %v3685_v43  ;;  %v2075_v40 = vrot.slane %v2074_v14, 4  ;;  %v2266_v43 = vor.u32 %v2265_v17, %v5836_v16  ;;  %v2488_v17 = vld [vmem:[#allocation3 + $0x44] sm:$0x1]  ;;  %v2510_v21 = vld [vmem:[#allocation3 + $0x9c] sm:$0xe] }
 0x1ad   : > { %2779 = vst.msk [vmem:[#allocation2] sm:$0xf] %vm2778_vm3, %v2683_v31  ;;  %v2084_v31 = vrot.slane %v2082_v12, 4  ;;  %v2098_v59 = vor.u32 %v2097_v46, %v2093_v35  ;;  %v2486_v12 = vld [vmem:[#allocation3 + $0x3c] sm:$0xe]  ;;  %v2602_v25 = vrot.slane %v2600_v15, 4 }
 0x1ae   : > { %v2685_v47 = vpop.permute.xlu0 %2684  ;;  %3481 = vrot.lane.b32.xlu1 %v3330_v23, %s4898_s26  ;;  %v2256_v23 = vor.u32 %v2255_v9, %v2252_v8  ;;  %v2080_v22 = vsel %vm5027_vm9, %v2075_v40, %v2079_v41  ;;  %v2293_v8 = vshll.u32 %v1954_v61, 16  ;;  %v4617_v49 = vrot.slane %v2486_v12, 9  ;;  %v2491_v46 = vld [vmem:[#allocation3 + $0x50] sm:$0x1] }
 0x1af   : > { %2780 = vst.msk [vmem:[#allocation2 + $0x4] sm:$0xf] %vm2778_vm3, %v2685_v47  ;;  %v2283_v47 = vshll.u32 %v1953_v28, 16  ;;  %v2088_v53 = vor.u32 %v2087_v32, %v2084_v31  ;;  %v2603_v27 = vrot.slane %v2488_v17, 5  ;;  %v2512_v28 = vld [vmem:[#allocation3 + $0xa4] sm:$0x1] }
 0x1b0   : > { %3483 = vrot.lane.b32.xlu0 %v3340_v39, %s4898_s26  ;;  %v2715_v52 = vpop.permute.xlu1 %2714  ;;  %v2295_v14 = vrot.slane %v2293_v8, 5  ;;  %v2490_v31 = vld [vmem:[#allocation3 + $0x4c] sm:$0xf]  ;;  %v2601_v32 = vsel %vm5297_vm13, %v4617_v49, %v2600_v15  ;;  %v4625_v33 = vrot.slane %v2510_v21, 9  ;;  %v3019_v49 = vld [vmem:[#allocation3 + $0x50] sm:$0x1] }
 0x1b1   : > { %2795 = vst.msk [vmem:[#allocation2 + $0x40] sm:$0xf] %vm2778_vm3, %v2715_v52  ;;  %v2257_v52 = vrot.slane %v2256_v23, 4  ;;  %v2285_v26 = vrot.slane %v2283_v47, 5  ;;  %v2089_v62 = vrot.slane %v2088_v53, 4  ;;  %v2604_v40 = vsel %vm5297_vm13, %v2602_v25, %v2603_v27 }
 0x1b2   : > { %v2717_v30 = vpop.permute.xlu0 %2716  ;;  %3782 = vrot.lane.b32.xlu1 %v3679_v48, %s4899_s4  ;;  %v2607_v44 = vrot.slane %v2490_v31, 5  ;;  %v2514_v47 = vld [vmem:[#allocation3 + $0xac] sm:$0xf]  ;;  %v2822_v27 = vld [vmem:[#allocation3 + $0x54] sm:$0xf] }
 0x1b3   : > { %2796 = vst.msk [vmem:[#allocation2 + $0x44] sm:$0xf] %vm2778_vm3, %v2717_v30  ;;  %v2289_v30 = vrot.slane %v2287_v5, 4  ;;  %v2262_v42 = vsel %vm5027_vm9, %v2257_v52, %v5836_v16  ;;  %v2837_v25 = vld [vmem:[#allocation3 + $0xac] sm:$0xf] }
 0x1b4   : > { %3784 = vrot.lane.b32.xlu0 %v3682_v57, %s4899_s4  ;;  %v2687_v3 = vpop.permute.xlu1 %2686  ;;  %v2267_v57 = vrot.slane %v2266_v43, 4  ;;  %v2659_v43 = vrot.slane %v2512_v28, 5  ;;  %v2609_v53 = vrot.slane %v2607_v44, 4 }
 0x1b5   : > { %2781 = vst.msk [vmem:[#allocation2 + $0x8] sm:$0xf] %vm2778_vm3, %v2687_v3  ;;  %v2099_v3 = vrot.slane %v2098_v59, 4  ;;  %v2290_v6 = vor.u32 %v2289_v30, %v2285_v26 }
 0x1b6   : > { %v2689_v13 = vpop.permute.xlu0 %2688  ;;  %3814 = vrot.lane.b32.xlu1 %v3735_v0, %s4899_s4  ;;  %v2280_v0 = vor.u32 %v2279_v55, %v2276_v54  ;;  %v2272_v2 = vsel %vm5027_vm9, %v2267_v57, %v2271_v58  ;;  %v2610_v54 = vrot.slane %v2491_v46, 5  ;;  %v2663_v55 = vrot.slane %v2514_v47, 5  ;;  %v3044_v47 = vld [vmem:[#allocation3 + $0xb4] sm:$0xf] }
 0x1b7   : > { %2782 = vst.msk [vmem:[#allocation2 + $0xc] sm:$0xf] %vm2778_vm3, %v2689_v13  ;;  %v2104_v45 = vsel %vm5027_vm9, %v2099_v3, %v2103_v4  ;;  %v2291_v13 = vrot.slane %v2290_v6, 4  ;;  %v4626_v58 = vrot.slane %v2513_v38, 9  ;;  %v2820_v6 = vld [vmem:[#allocation3 + $0x48] sm:$0xf] }
 0x1b8   : > { %3816 = vrot.lane.b32.xlu0 %v3738_v7, %s4899_s4  ;;  %v2719_v24 = vpop.permute.xlu1 %2718  ;;  %v2094_v7 = vsel %vm5027_vm9, %v2089_v62, %v2093_v35  ;;  %v2611_v60 = vsel %vm5297_vm13, %v2609_v53, %v2610_v54 }
 0x1b9   : > { %2797 = vst.msk [vmem:[#allocation2 + $0x48] sm:$0xf] %vm2778_vm3, %v2719_v24  ;;  %v2296_v24 = vsel %vm5027_vm9, %v2291_v13, %v2295_v14  ;;  %v2664_v61 = vsel %vm5297_vm13, %v4626_v58, %v2663_v55  ;;  %v3366_v58 = vshrl.u32 %v3044_v47, 16 }
 0x1ba   : > { %v2721_v39 = vpop.permute.xlu0 %2720  ;;  %3786 = vrot.lane.b32.xlu1 %v3686_v19, %s4899_s4 }
 0x1bb   : > { %2798 = vst.msk [vmem:[#allocation2 + $0x4c] sm:$0xf] %vm2778_vm3, %v2721_v39  ;;  %v2489_v39 = vld [vmem:[#allocation3 + $0x48] sm:$0xe] }
 0x1bc   : > { %3788 = vrot.lane.b32.xlu0 %v3689_v11, %s4899_s4  ;;  %v2877_v48 = vpop.permute.xlu1 %2876  ;;  %v2281_v11 = vrot.slane %v2280_v0, 4  ;;  %v3018_v0 = vld [vmem:[#allocation3 + $0x4c] sm:$0xf] }
 0x1bd   : > { %2973 = vst.msk [vmem:[#allocation2] sm:$0xf] %vm2972_vm4, %v2877_v48  ;;  %v4618_v48 = vrot.slane %v2489_v39, 9  ;;  %v3159_v8 = vshll.u32 %v3018_v0, 16 }
 0x1be   : > { %v2879_v56 = vpop.permute.xlu0 %2878  ;;  %3818 = vrot.lane.b32.xlu1 %v3742_v37, %s4899_s4  ;;  %v2286_v19 = vsel %vm5027_vm9, %v2281_v11, %v2285_v26  ;;  %v2656_v37 = vrot.slane %v2511_v18, 5  ;;  %v2665_v26 = vrot.slane %v2663_v55, 4  ;;  %v3042_v11 = vld [vmem:[#allocation3 + $0xac] sm:$0xf]  ;;  %v3045_v55 = vld [vmem:[#allocation3 + $0xb8] sm:$0xf] }
 0x1bf   : > { %2974 = vst.msk [vmem:[#allocation2 + $0x4] sm:$0xf] %vm2972_vm4, %v2879_v56  ;;  %v2608_v57 = vsel %vm5297_vm13, %v4618_v48, %v2607_v44  ;;  %v5919_v17 = vrot.slane %v3159_v8, 5  ;;  %v3351_v18 = vshll.u32 %v3042_v11, 16  ;;  %v3355_v21 = vshrl.u32 %v3042_v11, 16 }
 0x1c0   : > { %3820 = vrot.lane.b32.xlu0 %v3745_v51, %s4899_s4  ;;  %v2909_v50 = vpop.permute.xlu1 %2908  ;;  %v2658_v41 = vrot.slane %v2656_v37, 4  ;;  %v2657_v5 = vsel %vm5297_vm13, %v4625_v33, %v2656_v37  ;;  %v2823_v33 = vld [vmem:[#allocation3 + $0x58] sm:$0xf]  ;;  %v3043_v48 = vld [vmem:[#allocation3 + $0xb0] sm:$0x1] }
 0x1c1   : > { %2989 = vst.msk [vmem:[#allocation2 + $0x40] sm:$0xf] %vm2972_vm4, %v2909_v50  ;;  %v5925_v39 = vrot.slane %v3351_v18, 5  ;;  %v3357_v46 = vrot.slane %v3355_v21, 4 }
 0x1c2   : > { %v2911_v1 = vpop.permute.xlu0 %2910  ;;  %2363 = vrot.lane.b32.xlu1 %v2080_v22, %s4895_s23  ;;  %v2660_v52 = vsel %vm5297_vm13, %v2658_v41, %v2659_v43  ;;  %v2515_v22 = vld [vmem:[#allocation3 + $0xb0] sm:$0x1] }
 0x1c3   : > { %2990 = vst.msk [vmem:[#allocation2 + $0x44] sm:$0xf] %vm2972_vm4, %v2911_v1  ;;  %v2666_v30 = vrot.slane %v2515_v22, 5 }
 0x1c4   : > { %v2881_v9 = vpop.permute.xlu1 %2880  ;;  %2393 = vrot.lane.b32.xlu0 %v2262_v42, %s4895_s23  ;;  %v3017_v42 = vld [vmem:[#allocation3 + $0x48] sm:$0xf] }
 0x1c5   : > { %2975 = vst.msk [vmem:[#allocation2 + $0x8] sm:$0xf] %vm2972_vm4, %v2881_v9  ;;  %v2667_v1 = vsel %vm5297_vm13, %v2665_v26, %v2666_v30  ;;  %v3150_v3 = vshrl.u32 %v3017_v42, 16  ;;  %v3153_v4 = vshll.u32 %v3017_v42, 16  ;;  %v3041_v9 = vld [vmem:[#allocation3 + $0xa8] sm:$0xf] }
 0x1c6   : > { %v2883_v63 = vpop.permute.xlu0 %2882  ;;  %2395 = vrot.lane.b32.xlu1 %v2272_v2, %s4895_s23  ;;  %v3342_v14 = vshrl.u32 %v3041_v9, 16  ;;  %v3345_v15 = vshll.u32 %v3041_v9, 16  ;;  %v3361_v42 = vshll.u32 %v3043_v48, 16  ;;  %v3580_v48 = vld [vmem:[#allocation3 + $0x50] sm:$0x1] }
 0x1c7   : > { %2976 = vst.msk [vmem:[#allocation2 + $0xc] sm:$0xf] %vm2972_vm4, %v2883_v63  ;;  %v2821_v63 = vld [vmem:[#allocation3 + $0x4c] sm:$0xf]  ;;  %v3155_v13 = vrot.slane %v3153_v4, 5 }
 0x1c8   : > { %v2913_v16 = vpop.permute.xlu1 %2912  ;;  %2365 = vrot.lane.b32.xlu0 %v2094_v7, %s4895_s23  ;;  %v3163_v7 = vshrl.u32 %v3018_v0, 16  ;;  %v3344_v28 = vrot.slane %v3342_v14, 4  ;;  %v3347_v31 = vrot.slane %v3345_v15, 5  ;;  %v3022_v0 = vld [vmem:[#allocation3 + $0x5c] sm:$0x1] }
 0x1c9   : > { %2991 = vst.msk [vmem:[#allocation2 + $0x48] sm:$0xf] %vm2972_vm4, %v2913_v16  ;;  %v2836_v16 = vld [vmem:[#allocation3 + $0xa8] sm:$0xf] }
 0x1ca   : > { %v2915_v20 = vpop.permute.xlu0 %2914  ;;  %2367 = vrot.lane.b32.xlu1 %v2104_v45, %s4895_s23  ;;  %v3152_v45 = vrot.slane %v3150_v3, 4  ;;  %v3348_v54 = vor.u32 %v3347_v31, %v3344_v28  ;;  %v3379_v3 = vshrl.u32 %v3045_v55, 16 }
 0x1cb   : > { %2992 = vst.msk [vmem:[#allocation2 + $0x4c] sm:$0xf] %vm2972_vm4, %v2915_v20  ;;  %v3165_v20 = vrot.slane %v3163_v7, 4 }
 0x1cc   : > { %v3438_v23 = vpop.permute.xlu1 %3437  ;;  %2397 = vrot.lane.b32.xlu0 %v2286_v19, %s4895_s23  ;;  %v3349_v8 = vrot.slane %v3348_v54, 4 }
 0x1cd   : > { %3534 = vst.msk [vmem:[#allocation2] sm:$0xf] %vm3533_vm5, %v3438_v23  ;;  %v3156_v23 = vor.u32 %v3155_v13, %v3152_v45  ;;  %v3363_v45 = vrot.slane %v3361_v42, 5  ;;  %v3193_v13 = vshll.u32 %v3022_v0, 16 }
 0x1ce   : > { %v3440_v36 = vpop.permute.xlu0 %3439  ;;  %2399 = vrot.lane.b32.xlu1 %v2296_v24, %s4895_s23  ;;  %v3020_v24 = vld [vmem:[#allocation3 + $0x54] sm:$0xf] }
 0x1cf   : > { %3535 = vst.msk [vmem:[#allocation2 + $0x4] sm:$0xf] %vm3533_vm5, %v3440_v36  ;;  %v3169_v36 = vshll.u32 %v3019_v49, 16  ;;  %v3177_v41 = vshll.u32 %v3020_v24, 16  ;;  %v3157_v53 = vrot.slane %v3156_v23, 4  ;;  %v3354_v49 = vsel %vm5027_vm9, %v3349_v8, %v5925_v39 }
 0x1d0   : > { %v3470_v35 = vpop.permute.xlu1 %3469  ;;  %2698 = vrot.lane.b32.xlu0 %v2601_v32, %s4896_s24  ;;  %v3021_v32 = vld [vmem:[#allocation3 + $0x58] sm:$0xf] }
 0x1d1   : > { %3550 = vst.msk [vmem:[#allocation2 + $0x40] sm:$0xf] %vm3533_vm5, %v3470_v35  ;;  %v3166_v35 = vor.u32 %v3165_v20, %v5919_v17  ;;  %v3187_v38 = vshrl.u32 %v3021_v32, 16 }
 0x1d2   : > { %v3472_v51 = vpop.permute.xlu0 %3471  ;;  %2700 = vrot.lane.b32.xlu1 %v2604_v40, %s4896_s24  ;;  %v3174_v40 = vshrl.u32 %v3020_v24, 16 }
 0x1d3   : > { %3551 = vst.msk [vmem:[#allocation2 + $0x44] sm:$0xf] %vm3533_vm5, %v3472_v51  ;;  %v3183_v51 = vshll.u32 %v3021_v32, 16  ;;  %v3167_v30 = vrot.slane %v3166_v35, 4 }
 0x1d4   : > { %v3442_v56 = vpop.permute.xlu1 %3441  ;;  %2730 = vrot.lane.b32.xlu0 %v2657_v5, %s4896_s24  ;;  %v2838_v5 = vld [vmem:[#allocation3 + $0xb4] sm:$0xf]  ;;  %v3176_v22 = vrot.slane %v3174_v40, 4 }
 0x1d5   : > { %3536 = vst.msk [vmem:[#allocation2 + $0x8] sm:$0xf] %vm3533_vm5, %v3442_v56  ;;  %v2839_v56 = vld [vmem:[#allocation3 + $0xb8] sm:$0xf] }
 0x1d6   : > { %v3444_v59 = vpop.permute.xlu0 %3443  ;;  %2732 = vrot.lane.b32.xlu1 %v2660_v52, %s4896_s24 }
 0x1d7   : > { %3537 = vst.msk [vmem:[#allocation2 + $0xc] sm:$0xf] %vm3533_vm5, %v3444_v59  ;;  %v3369_v59 = vshll.u32 %v3044_v47, 16 }
 0x1d8   : > { %v3474_v50 = vpop.permute.xlu1 %3473  ;;  %2702 = vrot.lane.b32.xlu0 %v2608_v57, %s4896_s24  ;;  %v3179_v57 = vrot.slane %v3177_v41, 5  ;;  %v3578_v41 = vld [vmem:[#allocation3 + $0x48] sm:$0xe] }
 0x1d9   : > { %3552 = vst.msk [vmem:[#allocation2 + $0x48] sm:$0xf] %vm3533_vm5, %v3474_v50  ;;  %v3171_v50 = vrot.slane %v3169_v36, 5  ;;  %v3371_v7 = vrot.slane %v3369_v59, 5  ;;  %v1932_v59 = vld [vmem:[#allocation3 + $0x58] sm:$0xf] }
 0x1da   : > { %v3476_v62 = vpop.permute.xlu0 %3475  ;;  %2704 = vrot.lane.b32.xlu1 %v2611_v60, %s4896_s24  ;;  %v3180_v9 = vor.u32 %v3179_v57, %v3176_v22  ;;  %v2119_v8 = vshrl.u32 %v1932_v59, 16 }
 0x1db   : > { %3553 = vst.msk [vmem:[#allocation2 + $0x4c] sm:$0xf] %vm3533_vm5, %v3476_v62  ;;  %v3185_v62 = vrot.slane %v3183_v51, 5 }
 0x1dc   : > { %v3775_v2 = vpop.permute.xlu1 %3774  ;;  %2734 = vrot.lane.b32.xlu0 %v2664_v61, %s4896_s24  ;;  %v3358_v61 = vor.u32 %v3357_v46, %v5925_v39  ;;  %v3181_v20 = vrot.slane %v3180_v9, 4 }
 0x1dd   : > { %3871 = vst.msk [vmem:[#allocation2] sm:$0xf] %vm3870_vm6, %v3775_v2  ;;  %v3375_v2 = vshll.u32 %v3045_v55, 16  ;;  %v3602_v55 = vld [vmem:[#allocation3 + $0xa8] sm:$0xe] }
 0x1de   : > { %v3777_v10 = vpop.permute.xlu0 %3776  ;;  %2736 = vrot.lane.b32.xlu1 %v2667_v1, %s4896_s24  ;;  %v3189_v1 = vrot.slane %v3187_v38, 4  ;;  %v3359_v14 = vrot.slane %v3358_v61, 4  ;;  %v3186_v36 = vsel %vm5027_vm9, %v3181_v20, %v3185_v62  ;;  %v4633_v38 = vrot.slane %v3578_v41, 9 }
 0x1df   : > { %3872 = vst.msk [vmem:[#allocation2 + $0x4] sm:$0xf] %vm3870_vm6, %v3777_v10  ;;  %v3368_v10 = vrot.slane %v3366_v58, 4  ;;  %v3695_v58 = vrot.slane %v3580_v48, 5 }
 0x1e0   : > { %v3807_v12 = vpop.permute.xlu1 %3806  ;;  %2892 = vrot.lane.b32.xlu0 %v2820_v6, %s4897_s25  ;;  %v3162_v6 = vsel %vm5027_vm9, %v3157_v53, %v5919_v17  ;;  %v3190_v15 = vor.u32 %v3189_v1, %v3185_v62  ;;  %v3381_v17 = vrot.slane %v3379_v3, 4  ;;  %v1931_v53 = vld [vmem:[#allocation3 + $0x54] sm:$0xf]  ;;  %v4641_v62 = vrot.slane %v3602_v55, 9  ;;  %v1957_v55 = vld [vmem:[#allocation3 + $0xbc] sm:$0x1] }
 0x1e1   : > { %3887 = vst.msk [vmem:[#allocation2 + $0x40] sm:$0xf] %vm3870_vm6, %v3807_v12  ;;  %v3172_v12 = vsel %vm5027_vm9, %v3167_v30, %v3171_v50  ;;  %v3372_v21 = vor.u32 %v3371_v7, %v3368_v10  ;;  %v5974_v30 = vld [vmem:[#allocation3 + $0xb8] sm:$0xf]  ;;  %v2106_v50 = vshrl.u32 %v1931_v53, 16  ;;  %v2109_v61 = vshll.u32 %v1931_v53, 16 }
 0x1e2   : > { %v3809_v19 = vpop.permute.xlu0 %3808  ;;  %2894 = vrot.lane.b32.xlu1 %v2821_v63, %s4897_s25  ;;  %v3191_v23 = vrot.slane %v3190_v15, 4  ;;  %v3583_v7 = vld [vmem:[#allocation3 + $0x5c] sm:$0x1]  ;;  %v1958_v53 = vld [vmem:[#allocation3 + $0xc0] sm:$0xf] }
 0x1e3   : > { %3888 = vst.msk [vmem:[#allocation2 + $0x44] sm:$0xf] %vm3870_vm6, %v3809_v19  ;;  %v3046_v19 = vld [vmem:[#allocation3 + $0xbc] sm:$0x1]  ;;  %v3373_v39 = vrot.slane %v3372_v21, 4 }
 0x1e4   : > { %v3779_v37 = vpop.permute.xlu1 %3778  ;;  %2924 = vrot.lane.b32.xlu0 %v2836_v16, %s4897_s25  ;;  %v3377_v16 = vrot.slane %v3375_v2, 5  ;;  %v3385_v31 = vshll.u32 %v3046_v19, 16  ;;  %v1955_v2 = vld [vmem:[#allocation3 + $0xb4] sm:$0xf] }
 0x1e5   : > { %3873 = vst.msk [vmem:[#allocation2 + $0x8] sm:$0xf] %vm3870_vm6, %v3779_v37  ;;  %v3364_v37 = vsel %vm5027_vm9, %v3359_v14, %v3363_v45  ;;  %v3605_v45 = vld [vmem:[#allocation3 + $0xb4] sm:$0xe]  ;;  %v2111_v14 = vrot.slane %v2109_v61, 5  ;;  %v2298_v15 = vshrl.u32 %v1955_v2, 16 }
 0x1e6   : > { %v3781_v43 = vpop.permute.xlu0 %3780  ;;  %2926 = vrot.lane.b32.xlu1 %v2837_v25, %s4897_s25  ;;  %v4849_v44 = vld [vmem:[#allocation2] sm:$0xff]   ;;  %v3382_v28 = vor.u32 %v3381_v17, %v3377_v16  ;;  %v3387_v46 = vrot.slane %v3385_v31, 5  ;;  %v3378_v51 = vsel %vm5027_vm9, %v3373_v39, %v3377_v16  ;;  %v2301_v16 = vshll.u32 %v1955_v2, 16 }
 0x1e7   : > { %3874 = vst.msk [vmem:[#allocation2 + $0xc] sm:$0xf] %vm3870_vm6, %v3781_v43  ;;  %4774 = vmatprep.mubr.msk.bf16.mxu0 %vm4035_vm7, %v4849_v44  ;;  %v3603_v43 = vld [vmem:[#allocation3 + $0xac] sm:$0xf]  ;;  %v4642_v31 = vrot.slane %v3605_v45, 9  ;;  %v2300_v41 = vrot.slane %v2298_v15, 4 }
 0x1e8   : > { %v3811_v52 = vpop.permute.xlu1 %3810  ;;  %2896 = vrot.lane.b32.xlu0 %v2822_v27, %s4897_s25  ;;  %v3195_v27 = vrot.slane %v3193_v13, 5  ;;  %v3383_v35 = vrot.slane %v3382_v28, 4  ;;  %v2108_v13 = vrot.slane %v2106_v50, 4  ;;  %v3702_v28 = vrot.slane %v3583_v7, 5 }
 0x1e9   : > { %3889 = vst.msk [vmem:[#allocation2 + $0x48] sm:$0xf] %vm3870_vm6, %v3811_v52  ;;  %v3748_v52 = vrot.slane %v3603_v43, 5  ;;  %v2303_v43 = vrot.slane %v2301_v16, 5 }
 0x1ea   : > { %v3813_v60 = vpop.permute.xlu0 %3812  ;;  %2898 = vrot.lane.b32.xlu1 %v2823_v33, %s4897_s25  ;;  %v4851_v26 = vld [vmem:[#allocation2 + $0x40] sm:$0xff]   ;;  %v3579_v33 = vld [vmem:[#allocation3 + $0x4c] sm:$0xf]  ;;  %v3196_v44 = vsel %vm5027_vm9, %v3191_v23, %v3195_v27  ;;  %v3388_v22 = vsel %vm5027_vm9, %v3383_v35, %v3387_v46 }
 0x1eb   : > { %3890 = vst.msk [vmem:[#allocation2 + $0x4c] sm:$0xf] %vm3870_vm6, %v3813_v60  ;;  %4790 = vmatprep.mubr.msk.bf16.mxu1 %vm4035_vm7, %v4851_v26  ;;  %v3692_v47 = vrot.slane %v3579_v33, 5  ;;  %v3582_v26 = vld [vmem:[#allocation3 + $0x58] sm:$0xf]  ;;  %v3750_v0 = vrot.slane %v3748_v52, 4  ;;  %v3749_v17 = vsel %vm5297_vm13, %v4641_v62, %v3748_v52 }
 0x1ec   : > { %v2386_v4 = vpop.permute.xlu1 %2385  ;;  %2928 = vrot.lane.b32.xlu0 %v2838_v5, %s4897_s25  ;;  %v3699_v10 = vrot.slane %v3582_v26, 5  ;;  %v1933_v33 = vld [vmem:[#allocation3 + $0x5c] sm:$0x1]  ;;  %v2304_v26 = vor.u32 %v2303_v43, %v2300_v41  ;;  %v2325_v62 = vshll.u32 %v1958_v53, 16  ;;  %v2493_v41 = vld [vmem:[#allocation3 + $0x58] sm:$0xf] }
 0x1ed   : > { %2462 = vst.msk [vmem:[#allocation2 + $0x50] sm:$0xf] %vm2441_vm2, %v2386_v4  ;;  %v3694_v57 = vrot.slane %v3692_v47, 4  ;;  %v3693_v42 = vsel %vm5297_vm13, %v4633_v38, %v3692_v47  ;;  %v3581_v4 = vld [vmem:[#allocation3 + $0x54] sm:$0xe] }
 0x1ee   : > { %v2388_v11 = vpop.permute.xlu0 %2387  ;;  %2930 = vrot.lane.b32.xlu1 %v2839_v56, %s4897_s25  ;;  %v4852_v63 = vld [vmem:[#allocation2 + $0x8] sm:$0xff]   ;;  %v3604_v56 = vld [vmem:[#allocation3 + $0xb0] sm:$0x1]  ;;  %v4634_v19 = vrot.slane %v3581_v4, 9  ;;  %v3701_v23 = vrot.slane %v3699_v10, 4  ;;  %v2317_v4 = vshll.u32 %v1957_v55, 16 }
 0x1ef   : > { %2463 = vst.msk [vmem:[#allocation2 + $0x54] sm:$0xf] %vm2441_vm2, %v2388_v11  ;;  %4775 = vmatmul.mubr.msk.bf16.vlgmr.msra.gmra.mxu0 %vm4035_vm7, %v4852_v63  ;;  %v3751_v1 = vrot.slane %v3604_v56, 5  ;;  %v3696_v9 = vsel %vm5297_vm13, %v3694_v57, %v3695_v58  ;;  %v3755_v11 = vrot.slane %v5974_v30, 5  ;;  %v1956_v63 = vld [vmem:[#allocation3 + $0xb8] sm:$0xf] }
 0x1f0   : > { %v2390_v18 = vpop.permute.xlu1 %2389  ;;  %3453 = vrot.lane.b32.xlu0 %v3162_v6, %s4898_s26  ;;  %v2115_v6 = vshll.u32 %v1932_v59, 16  ;;  %v2311_v27 = vshrl.u32 %v1956_v63, 16  ;;  %v3700_v35 = vsel %vm5297_vm13, %v4634_v19, %v3699_v10  ;;  %v1959_v30 = vld [vmem:[#allocation3 + $0xc4] sm:$0xf] }
 0x1f1   : > { %2464 = vst.msk [vmem:[#allocation2 + $0x58] sm:$0xf] %vm2441_vm2, %v2390_v18  ;;  %v3752_v18 = vsel %vm5297_vm13, %v3750_v0, %v3751_v1  ;;  %v3756_v58 = vsel %vm5297_vm13, %v4642_v31, %v3755_v11  ;;  %v2335_v10 = vshrl.u32 %v1959_v30, 16 }
 0x1f2   : > { %v2392_v24 = vpop.permute.xlu0 %2391  ;;  %3455 = vrot.lane.b32.xlu1 %v3172_v12, %s4898_s26  ;;  %v4853_v25 = vld [vmem:[#allocation2 + $0x48] sm:$0xff]   ;;  %v5991_v21 = vrot.slane %v2115_v6, 5  ;;  %v2313_v52 = vrot.slane %v2311_v27, 4 }
 0x1f3   : > { %2465 = vst.msk [vmem:[#allocation2 + $0x5c] sm:$0xf] %vm2441_vm2, %v2392_v24  ;;  %4791 = vmatmul.mubr.msk.bf16.vlgmr.msra.gmra.mxu1 %vm4035_vm7, %v4853_v25  ;;  %v2121_v24 = vrot.slane %v2119_v8, 4  ;;  %v2307_v25 = vshll.u32 %v1956_v63, 16  ;;  %v1936_v63 = vld [vmem:[#allocation3 + $0x68] sm:$0x1] }
 0x1f4   : > { %v2691_v32 = vpop.permute.xlu1 %2690  ;;  %3485 = vrot.lane.b32.xlu0 %v3354_v49, %s4898_s26  ;;  %v3607_v49 = vld [vmem:[#allocation3 + $0xbc] sm:$0x1] }
 0x1f5   : > { %2783 = vst.msk [vmem:[#allocation2 + $0x10] sm:$0xf] %vm2778_vm3, %v2691_v32  ;;  %v3757_v32 = vrot.slane %v3755_v11, 4  ;;  %v3758_v39 = vrot.slane %v3607_v49, 5  ;;  %v2122_v48 = vor.u32 %v2121_v24, %v5991_v21  ;;  %v6000_v38 = vrot.slane %v2307_v25, 5 }
 0x1f6   : > { %v2693_v40 = vpop.permute.xlu0 %2692  ;;  %3487 = vrot.lane.b32.xlu1 %v3364_v37, %s4898_s26  ;;  %v1934_v37 = vld [vmem:[#allocation3 + $0x60] sm:$0xf]  ;;  %v2149_v49 = vshll.u32 %v1936_v63, 16  ;;  %v1960_v25 = vld [vmem:[#allocation3 + $0xc8] sm:$0x1] }
 0x1f7   : > { %2784 = vst.msk [vmem:[#allocation2 + $0x14] sm:$0xf] %vm2778_vm3, %v2693_v40  ;;  %v2112_v40 = vor.u32 %v2111_v14, %v2108_v13  ;;  %v2130_v46 = vshrl.u32 %v1934_v37, 16  ;;  %v2133_v47 = vshll.u32 %v1934_v37, 16  ;;  %v3759_v59 = vsel %vm5297_vm13, %v3757_v32, %v3758_v39  ;;  %v2519_v63 = vld [vmem:[#allocation3 + $0xc0] sm:$0xe] }
 0x1f8   : > { %v2723_v5 = vpop.permute.xlu1 %2722  ;;  %3457 = vrot.lane.b32.xlu0 %v3186_v36, %s4898_s26  ;;  %v2123_v1 = vrot.slane %v2122_v48, 4  ;;  %v2327_v14 = vrot.slane %v2325_v62, 5  ;;  %v2341_v39 = vshll.u32 %v1960_v25, 16 }
 0x1f9   : > { %2799 = vst.msk [vmem:[#allocation2 + $0x50] sm:$0xf] %vm2778_vm3, %v2723_v5  ;;  %v2132_v50 = vrot.slane %v2130_v46, 4  ;;  %v2135_v61 = vrot.slane %v2133_v47, 5  ;;  %v2492_v46 = vld [vmem:[#allocation3 + $0x54] sm:$0xe] }
 0x1fa   : > { %v2725_v54 = vpop.permute.xlu0 %2724  ;;  %3459 = vrot.lane.b32.xlu1 %v3196_v44, %s4898_s26  ;;  %v1935_v44 = vld [vmem:[#allocation3 + $0x64] sm:$0xf]  ;;  %v2343_v48 = vrot.slane %v2341_v39, 5  ;;  %v4619_v55 = vrot.slane %v2492_v46, 9 }
 0x1fb   : > { %2800 = vst.msk [vmem:[#allocation2 + $0x54] sm:$0xf] %vm2778_vm3, %v2725_v54  ;;  %v3703_v54 = vsel %vm5297_vm13, %v3701_v23, %v3702_v28  ;;  %v2139_v56 = vshll.u32 %v1935_v44, 16  ;;  %v2136_v45 = vor.u32 %v2135_v61, %v2132_v50  ;;  %v2496_v50 = vld [vmem:[#allocation3 + $0x64] sm:$0xf] }
 0x1fc   : > { %v2695_v60 = vpop.permute.xlu1 %2694  ;;  %3489 = vrot.lane.b32.xlu0 %v3378_v51, %s4898_s26  ;;  %v2125_v51 = vshll.u32 %v1933_v33, 16  ;;  %v2151_v33 = vrot.slane %v2149_v49, 5  ;;  %v2825_v46 = vld [vmem:[#allocation3 + $0x64] sm:$0xf] }
 0x1fd   : > { %2785 = vst.msk [vmem:[#allocation2 + $0x18] sm:$0xf] %vm2778_vm3, %v2695_v60  ;;  %v2113_v60 = vrot.slane %v2112_v40, 4  ;;  %v2141_v6 = vrot.slane %v2139_v56, 5  ;;  %v2137_v37 = vrot.slane %v2136_v45, 4 }
 0x1fe   : > { %v2697_v3 = vpop.permute.xlu0 %2696  ;;  %3491 = vrot.lane.b32.xlu1 %v3388_v22, %s4898_s26  ;;  %v2143_v22 = vshrl.u32 %v1935_v44, 16  ;;  %v2127_v2 = vrot.slane %v2125_v51, 5  ;;  %v2614_v51 = vrot.slane %v2493_v41, 5  ;;  %v3047_v41 = vld [vmem:[#allocation3 + $0xc0] sm:$0xf] }
 0x1ff   : > { %2786 = vst.msk [vmem:[#allocation2 + $0x1c] sm:$0xf] %vm2778_vm3, %v2697_v3  ;;  %v2314_v3 = vor.u32 %v2313_v52, %v6000_v38  ;;  %v2118_v11 = vsel %vm5027_vm9, %v2113_v60, %v5991_v21  ;;  %v2337_v21 = vrot.slane %v2335_v10, 4  ;;  %v2142_v43 = vsel %vm5027_vm9, %v2137_v37, %v2141_v6  ;;  %v2494_v52 = vld [vmem:[#allocation3 + $0x5c] sm:$0x1] }
 0x200   : > { %v2727_v12 = vpop.permute.xlu1 %2726  ;;  %3790 = vrot.lane.b32.xlu0 %v3693_v42, %s4899_s4  ;;  %v2322_v42 = vshrl.u32 %v1958_v53, 16  ;;  %v2145_v8 = vrot.slane %v2143_v22, 4  ;;  %v2128_v16 = vsel %vm5027_vm9, %v2123_v1, %v2127_v2  ;;  %v2517_v53 = vld [vmem:[#allocation3 + $0xb8] sm:$0xf]  ;;  %v2516_v22 = vld [vmem:[#allocation3 + $0xb4] sm:$0xe]  ;;  %v2615_v61 = vsel %vm5297_vm13, %v4619_v55, %v2614_v51 }
 0x201   : > { %2801 = vst.msk [vmem:[#allocation2 + $0x58] sm:$0xf] %vm2778_vm3, %v2727_v12  ;;  %v2305_v12 = vrot.slane %v2304_v26, 4  ;;  %v2670_v60 = vrot.slane %v2517_v53, 5 }
 0x202   : > { %v2729_v20 = vpop.permute.xlu0 %2728  ;;  %3792 = vrot.lane.b32.xlu1 %v3696_v9, %s4899_s4  ;;  %v2331_v9 = vshll.u32 %v1959_v30, 16  ;;  %v2324_v13 = vrot.slane %v2322_v42, 4  ;;  %v2146_v19 = vor.u32 %v2145_v8, %v2141_v6  ;;  %v2518_v30 = vld [vmem:[#allocation3 + $0xbc] sm:$0x1]  ;;  %v4627_v42 = vrot.slane %v2516_v22, 9 }
 0x203   : > { %2802 = vst.msk [vmem:[#allocation2 + $0x5c] sm:$0xf] %vm2778_vm3, %v2729_v20  ;;  %v2310_v27 = vsel %vm5027_vm9, %v2305_v12, %v6000_v38  ;;  %v2672_v2 = vrot.slane %v2670_v60, 4  ;;  %v2497_v8 = vld [vmem:[#allocation3 + $0x68] sm:$0x1] }
 0x204   : > { %v2885_v36 = vpop.permute.xlu1 %2884  ;;  %3822 = vrot.lane.b32.xlu0 %v3749_v17, %s4899_s4  ;;  %v2315_v17 = vrot.slane %v2314_v3, 4  ;;  %v2333_v20 = vrot.slane %v2331_v9, 5  ;;  %v2328_v23 = vor.u32 %v2327_v14, %v2324_v13  ;;  %v2147_v32 = vrot.slane %v2146_v19, 4  ;;  %v2520_v9 = vld [vmem:[#allocation3 + $0xc4] sm:$0xf] }
 0x205   : > { %2977 = vst.msk [vmem:[#allocation2 + $0x10] sm:$0xf] %vm2972_vm4, %v2885_v36  ;;  %v2673_v3 = vrot.slane %v2518_v30, 5  ;;  %v2671_v10 = vsel %vm5297_vm13, %v4627_v42, %v2670_v60  ;;  %v2624_v13 = vrot.slane %v2497_v8, 5  ;;  %v2677_v14 = vrot.slane %v2520_v9, 5 }
 0x206   : > { %v2887_v5 = vpop.permute.xlu0 %2886  ;;  %3824 = vrot.lane.b32.xlu1 %v3752_v18, %s4899_s4  ;;  %v2319_v18 = vrot.slane %v2317_v4, 5  ;;  %v2338_v36 = vor.u32 %v2337_v21, %v2333_v20  ;;  %v2329_v44 = vrot.slane %v2328_v23, 4  ;;  %v2152_v47 = vsel %vm5027_vm9, %v2147_v32, %v2151_v33  ;;  %v3024_v23 = vld [vmem:[#allocation3 + $0x64] sm:$0xf]  ;;  %v3027_v42 = vld [vmem:[#allocation3 + $0x70] sm:$0xf] }
 0x207   : > { %2978 = vst.msk [vmem:[#allocation2 + $0x14] sm:$0xf] %vm2972_vm4, %v2887_v5  ;;  %v2621_v4 = vrot.slane %v2496_v50, 5  ;;  %v2674_v12 = vsel %vm5297_vm13, %v2672_v2, %v2673_v3  ;;  %v3207_v39 = vshll.u32 %v3024_v23, 16  ;;  %v2841_v60 = vld [vmem:[#allocation3 + $0xc4] sm:$0xf] }
 0x208   : > { %v2917_v57 = vpop.permute.xlu1 %2916  ;;  %3794 = vrot.lane.b32.xlu0 %v3700_v35, %s4899_s4  ;;  %v2320_v31 = vsel %vm5027_vm9, %v2315_v17, %v2319_v18  ;;  %v2339_v5 = vrot.slane %v2338_v36, 4  ;;  %v4628_v18 = vrot.slane %v2519_v63, 9  ;;  %v2824_v36 = vld [vmem:[#allocation3 + $0x60] sm:$0xf]  ;;  %v3231_v63 = vshll.u32 %v3027_v42, 16 }
 0x209   : > { %2993 = vst.msk [vmem:[#allocation2 + $0x50] sm:$0xf] %vm2972_vm4, %v2917_v57  ;;  %v2623_v45 = vrot.slane %v2621_v4, 4  ;;  %v6087_v53 = vrot.slane %v3207_v39, 5 }
 0x20a   : > { %v2919_v0 = vpop.permute.xlu0 %2918  ;;  %3796 = vrot.lane.b32.xlu1 %v3703_v54, %s4899_s4  ;;  %v2334_v54 = vsel %vm5027_vm9, %v2329_v44, %v2333_v20  ;;  %v2344_v57 = vsel %vm5027_vm9, %v2339_v5, %v2343_v48  ;;  %v2679_v20 = vrot.slane %v2677_v14, 4  ;;  %v2678_v25 = vsel %vm5297_vm13, %v4628_v18, %v2677_v14 }
 0x20b   : > { %2994 = vst.msk [vmem:[#allocation2 + $0x54] sm:$0xf] %vm2972_vm4, %v2919_v0  ;;  %v2495_v0 = vld [vmem:[#allocation3 + $0x60] sm:$0xe]  ;;  %v2625_v49 = vsel %vm5297_vm13, %v2623_v45, %v2624_v13 }
 0x20c   : > { %v2889_v7 = vpop.permute.xlu1 %2888  ;;  %3826 = vrot.lane.b32.xlu0 %v3756_v58, %s4899_s4  ;;  %v2616_v58 = vrot.slane %v2614_v51, 4 }
 0x20d   : > { %2979 = vst.msk [vmem:[#allocation2 + $0x18] sm:$0xf] %vm2972_vm4, %v2889_v7  ;;  %v4620_v7 = vrot.slane %v2495_v0, 9 }
 0x20e   : > { %v2891_v15 = vpop.permute.xlu0 %2890  ;;  %3828 = vrot.lane.b32.xlu1 %v3759_v59, %s4899_s4  ;;  %v2617_v59 = vrot.slane %v2494_v52, 5  ;;  %v3393_v52 = vshll.u32 %v3047_v41, 16 }
 0x20f   : > { %2980 = vst.msk [vmem:[#allocation2 + $0x1c] sm:$0xf] %vm2972_vm4, %v2891_v15  ;;  %v2622_v17 = vsel %vm5297_vm13, %v4620_v7, %v2621_v4  ;;  %v2827_v7 = vld [vmem:[#allocation3 + $0x70] sm:$0xf] }
 0x210   : > { %v2921_v24 = vpop.permute.xlu1 %2920  ;;  %2369 = vrot.lane.b32.xlu0 %v2118_v11, %s4895_s23  ;;  %v2618_v1 = vsel %vm5297_vm13, %v2616_v58, %v2617_v59  ;;  %v3026_v59 = vld [vmem:[#allocation3 + $0x6c] sm:$0xf] }
 0x211   : > { %2995 = vst.msk [vmem:[#allocation2 + $0x58] sm:$0xf] %vm2972_vm4, %v2921_v24  ;;  %v3222_v2 = vshrl.u32 %v3026_v59, 16  ;;  %v3225_v3 = vshll.u32 %v3026_v59, 16 }
 0x212   : > { %v2923_v28 = vpop.permute.xlu0 %2922  ;;  %2371 = vrot.lane.b32.xlu1 %v2128_v16, %s4895_s23  ;;  %v2521_v16 = vld [vmem:[#allocation3 + $0xc8] sm:$0x1] }
 0x213   : > { %2996 = vst.msk [vmem:[#allocation2 + $0x5c] sm:$0xf] %vm2972_vm4, %v2923_v28  ;;  %v2680_v21 = vrot.slane %v2521_v16, 5  ;;  %v2842_v16 = vld [vmem:[#allocation3 + $0xcc] sm:$0xf]  ;;  %v3227_v18 = vrot.slane %v3225_v3, 5 }
 0x214   : > { %v3446_v40 = vpop.permute.xlu1 %3445  ;;  %2401 = vrot.lane.b32.xlu0 %v2310_v27, %s4895_s23  ;;  %v3023_v27 = vld [vmem:[#allocation3 + $0x60] sm:$0xf] }
 0x215   : > { %3538 = vst.msk [vmem:[#allocation2 + $0x10] sm:$0xf] %vm3533_vm5, %v3446_v40  ;;  %v2681_v28 = vsel %vm5297_vm13, %v2679_v20, %v2680_v21  ;;  %v3198_v32 = vshrl.u32 %v3023_v27, 16  ;;  %v3201_v33 = vshll.u32 %v3023_v27, 16  ;;  %v3211_v40 = vshrl.u32 %v3024_v23, 16 }
 0x216   : > { %v3448_v35 = vpop.permute.xlu0 %3447  ;;  %2403 = vrot.lane.b32.xlu1 %v2320_v31, %s4895_s23  ;;  %v2843_v23 = vld [vmem:[#allocation3 + $0xd0] sm:$0xf] }
 0x217   : > { %3539 = vst.msk [vmem:[#allocation2 + $0x14] sm:$0xf] %vm3533_vm5, %v3448_v35  ;;  %v3048_v35 = vld [vmem:[#allocation3 + $0xc4] sm:$0xf]  ;;  %v3200_v48 = vrot.slane %v3198_v32, 4  ;;  %v3203_v51 = vrot.slane %v3201_v33, 5 }
 0x218   : > { %v3478_v38 = vpop.permute.xlu1 %3477  ;;  %2373 = vrot.lane.b32.xlu0 %v2142_v43, %s4895_s23  ;;  %v3213_v55 = vrot.slane %v3211_v40, 4  ;;  %v3403_v58 = vshrl.u32 %v3048_v35, 16  ;;  %v3028_v40 = vld [vmem:[#allocation3 + $0x74] sm:$0x1] }
 0x219   : > { %3554 = vst.msk [vmem:[#allocation2 + $0x50] sm:$0xf] %vm3533_vm5, %v3478_v38  ;;  %v3390_v38 = vshrl.u32 %v3047_v41, 16  ;;  %v3204_v30 = vor.u32 %v3203_v51, %v3200_v48 }
 0x21a   : > { %v3480_v56 = vpop.permute.xlu0 %3479  ;;  %2375 = vrot.lane.b32.xlu1 %v2152_v47, %s4895_s23  ;;  %v2840_v47 = vld [vmem:[#allocation3 + $0xc0] sm:$0xf]  ;;  %v3214_v8 = vor.u32 %v3213_v55, %v6087_v53  ;;  %v3405_v9 = vrot.slane %v3403_v58, 4  ;;  %v3052_v55 = vld [vmem:[#allocation3 + $0xd4] sm:$0x1] }
 0x21b   : > { %3555 = vst.msk [vmem:[#allocation2 + $0x54] sm:$0xf] %vm3533_vm5, %v3480_v56  ;;  %v3399_v56 = vshll.u32 %v3048_v35, 16  ;;  %v3392_v50 = vrot.slane %v3390_v38, 4  ;;  %v3205_v13 = vrot.slane %v3204_v30, 4  ;;  %v3241_v38 = vshll.u32 %v3028_v40, 16 }
 0x21c   : > { %v3450_v26 = vpop.permute.xlu1 %3449  ;;  %2405 = vrot.lane.b32.xlu0 %v2334_v54, %s4895_s23  ;;  %v3025_v54 = vld [vmem:[#allocation3 + $0x68] sm:$0x1] }
 0x21d   : > { %3540 = vst.msk [vmem:[#allocation2 + $0x18] sm:$0xf] %vm3533_vm5, %v3450_v26  ;;  %v3217_v0 = vshll.u32 %v3025_v54, 16  ;;  %v3210_v39 = vsel %vm5027_vm9, %v3205_v13, %v6087_v53 }
 0x21e   : > { %v3452_v62 = vpop.permute.xlu0 %3451  ;;  %2407 = vrot.lane.b32.xlu1 %v2344_v57, %s4895_s23 }
 0x21f   : > { %3541 = vst.msk [vmem:[#allocation2 + $0x1c] sm:$0xf] %vm3533_vm5, %v3452_v62  ;;  %v2826_v62 = vld [vmem:[#allocation3 + $0x6c] sm:$0xf] }
 0x220   : > { %v3482_v6 = vpop.permute.xlu1 %3481  ;;  %2706 = vrot.lane.b32.xlu0 %v2615_v61, %s4896_s24  ;;  %v3395_v61 = vrot.slane %v3393_v52, 5 }
 0x221   : > { %3556 = vst.msk [vmem:[#allocation2 + $0x58] sm:$0xf] %vm3533_vm5, %v3482_v6 }
 0x222   : > { %v3484_v11 = vpop.permute.xlu0 %3483  ;;  %2708 = vrot.lane.b32.xlu1 %v2618_v1, %s4896_s24  ;;  %v6094_v1 = vrot.slane %v3399_v56, 5  ;;  %v3396_v14 = vor.u32 %v3395_v61, %v3392_v50  ;;  %v3433_v50 = vshll.u32 %v3052_v55, 16 }
 0x223   : > { %3557 = vst.msk [vmem:[#allocation2 + $0x5c] sm:$0xf] %vm3533_vm5, %v3484_v11  ;;  %v3049_v11 = vld [vmem:[#allocation3 + $0xc8] sm:$0x1] }
 0x224   : > { %v3783_v15 = vpop.permute.xlu1 %3782  ;;  %2738 = vrot.lane.b32.xlu0 %v2671_v10, %s4896_s24  ;;  %v3050_v10 = vld [vmem:[#allocation3 + $0xcc] sm:$0xf]  ;;  %v3406_v27 = vor.u32 %v3405_v9, %v6094_v1  ;;  %v3397_v41 = vrot.slane %v3396_v14, 4 }
 0x225   : > { %3875 = vst.msk [vmem:[#allocation2 + $0x10] sm:$0xf] %vm3870_vm6, %v3783_v15  ;;  %v3051_v15 = vld [vmem:[#allocation3 + $0xd0] sm:$0xf] }
 0x226   : > { %v3785_v19 = vpop.permute.xlu0 %3784  ;;  %2740 = vrot.lane.b32.xlu1 %v2674_v12, %s4896_s24  ;;  %v3235_v12 = vshrl.u32 %v3027_v42, 16  ;;  %v3423_v32 = vshll.u32 %v3051_v15, 16  ;;  %v3427_v33 = vshrl.u32 %v3051_v15, 16  ;;  %v3402_v56 = vsel %vm5027_vm9, %v3397_v41, %v6094_v1  ;;  %v3585_v42 = vld [vmem:[#allocation3 + $0x64] sm:$0xf] }
 0x227   : > { %3876 = vst.msk [vmem:[#allocation2 + $0x14] sm:$0xf] %vm3870_vm6, %v3785_v19  ;;  %v3414_v19 = vshrl.u32 %v3050_v10, 16 }
 0x228   : > { %v3815_v24 = vpop.permute.xlu1 %3814  ;;  %2710 = vrot.lane.b32.xlu0 %v2622_v17, %s4896_s24  ;;  %v3224_v17 = vrot.slane %v3222_v2, 4  ;;  %v3425_v52 = vrot.slane %v3423_v32, 5  ;;  %v3429_v53 = vrot.slane %v3427_v33, 4  ;;  %v3584_v2 = vld [vmem:[#allocation3 + $0x60] sm:$0xe] }
 0x229   : > { %3891 = vst.msk [vmem:[#allocation2 + $0x50] sm:$0xf] %vm3870_vm6, %v3815_v24  ;;  %v3215_v24 = vrot.slane %v3214_v8, 4  ;;  %v3706_v8 = vrot.slane %v3585_v42, 5 }
 0x22a   : > { %v3817_v37 = vpop.permute.xlu0 %3816  ;;  %2712 = vrot.lane.b32.xlu1 %v2625_v49, %s4896_s24  ;;  %v3417_v49 = vshll.u32 %v3050_v10, 16  ;;  %v3430_v30 = vor.u32 %v3429_v53, %v3425_v52  ;;  %v3586_v10 = vld [vmem:[#allocation3 + $0x68] sm:$0x1] }
 0x22b   : > { %3892 = vst.msk [vmem:[#allocation2 + $0x54] sm:$0xf] %vm3870_vm6, %v3817_v37  ;;  %v3409_v37 = vshll.u32 %v3049_v11, 16  ;;  %v3708_v14 = vrot.slane %v3706_v8, 4  ;;  %v3709_v15 = vrot.slane %v3586_v10, 5 }
 0x22c   : > { %v3787_v31 = vpop.permute.xlu1 %3786  ;;  %2742 = vrot.lane.b32.xlu0 %v2678_v25, %s4896_s24  ;;  %v3219_v25 = vrot.slane %v3217_v0, 5  ;;  %v3419_v35 = vrot.slane %v3417_v49, 5 }
 0x22d   : > { %3877 = vst.msk [vmem:[#allocation2 + $0x18] sm:$0xf] %vm3870_vm6, %v3787_v31  ;;  %v3237_v31 = vrot.slane %v3235_v12, 4  ;;  %v3411_v48 = vrot.slane %v3409_v37, 5  ;;  %v3710_v34 = vsel %vm5297_vm13, %v3708_v14, %v3709_v15 }
 0x22e   : > { %v3789_v43 = vpop.permute.xlu0 %3788  ;;  %2744 = vrot.lane.b32.xlu1 %v2681_v28, %s4896_s24  ;;  %v4854_v44 = vld [vmem:[#allocation2 + $0x10] sm:$0xff]   ;;  %v3233_v28 = vrot.slane %v3231_v63, 5  ;;  %v4635_v63 = vrot.slane %v3584_v2, 9 }
 0x22f   : > { %3878 = vst.msk [vmem:[#allocation2 + $0x1c] sm:$0xf] %vm3870_vm6, %v3789_v43  ;;  %4778 = vmatprep.mubr.msk.bf16.mxu0 %vm4035_vm7, %v4854_v44  ;;  %v3228_v43 = vor.u32 %v3227_v18, %v3224_v17  ;;  %v3416_v44 = vrot.slane %v3414_v19, 4  ;;  %v3610_v18 = vld [vmem:[#allocation3 + $0xc8] sm:$0x1] }
 0x230   : > { %v3819_v5 = vpop.permute.xlu1 %3818  ;;  %2900 = vrot.lane.b32.xlu0 %v2824_v36, %s4897_s25  ;;  %v3238_v51 = vor.u32 %v3237_v31, %v3233_v28  ;;  %v3588_v19 = vld [vmem:[#allocation3 + $0x70] sm:$0xf]  ;;  %v3707_v49 = vsel %vm5297_vm13, %v4635_v63, %v3706_v8 }
 0x231   : > { %3893 = vst.msk [vmem:[#allocation2 + $0x58] sm:$0xf] %vm3870_vm6, %v3819_v5  ;;  %v3407_v5 = vrot.slane %v3406_v27, 4  ;;  %v3765_v27 = vrot.slane %v3610_v18, 5  ;;  %v3713_v37 = vrot.slane %v3588_v19, 5 }
 0x232   : > { %v3821_v22 = vpop.permute.xlu0 %3820  ;;  %2902 = vrot.lane.b32.xlu1 %v2825_v46, %s4897_s25  ;;  %v4855_v57 = vld [vmem:[#allocation2 + $0x50] sm:$0xff]  }
 0x233   : > { %3894 = vst.msk [vmem:[#allocation2 + $0x5c] sm:$0xf] %vm3870_vm6, %v3821_v22  ;;  %4794 = vmatprep.mubr.msk.bf16.mxu1 %vm4035_vm7, %v4855_v57  ;;  %v3229_v22 = vrot.slane %v3228_v43, 4  ;;  %v3420_v57 = vor.u32 %v3419_v35, %v3416_v44  ;;  %v3412_v59 = vsel %vm5027_vm9, %v3407_v5, %v3411_v48  ;;  %v3612_v31 = vld [vmem:[#allocation3 + $0xd0] sm:$0xf]  ;;  %v3715_v41 = vrot.slane %v3713_v37, 4 }
 0x234   : > { %v2364_v26 = vpop.permute.xlu1 %2363  ;;  %2932 = vrot.lane.b32.xlu0 %v2840_v47, %s4897_s25  ;;  %v3220_v47 = vsel %vm5027_vm9, %v3215_v24, %v3219_v25  ;;  %v3587_v24 = vld [vmem:[#allocation3 + $0x6c] sm:$0xe]  ;;  %v3769_v44 = vrot.slane %v3612_v31, 5 }
 0x235   : > { %2451 = vst.msk [vmem:[#allocation2 + $0x24] sm:$0xf] %vm2441_vm2, %v2364_v26  ;;  %v3243_v26 = vrot.slane %v3241_v38, 5  ;;  %v3421_v0 = vrot.slane %v3420_v57, 4  ;;  %v4636_v33 = vrot.slane %v3587_v24, 9 }
 0x236   : > { %2934 = vrot.lane.b32.xlu1 %v2841_v60, %s4897_s25  ;;  %v4856_v4 = vld [vmem:[#allocation2 + $0x18] sm:$0xff]   ;;  %v2394_v6 = vpop.permute.xlu0 %2393  ;;  %v3239_v60 = vrot.slane %v3238_v51, 4  ;;  %v3771_v38 = vrot.slane %v3769_v44, 4 }
 0x237   : > { %2466 = vst.msk [vmem:[#allocation2 + $0x60] sm:$0xf] %vm2441_vm2, %v2394_v6  ;;  %4779 = vmatmul.mubr.msk.bf16.gmra.mxu0 %vm4035_vm7, %v4856_v4  ;;  %v3431_v4 = vrot.slane %v3430_v30, 4  ;;  %v3435_v6 = vrot.slane %v3433_v50, 5  ;;  %v3426_v11 = vsel %vm5027_vm9, %v3421_v0, %v3425_v52 }
 0x238   : > { %v2396_v45 = vpop.permute.xlu1 %2395  ;;  %2904 = vrot.lane.b32.xlu0 %v2826_v62, %s4897_s25  ;;  %v3234_v62 = vsel %vm5027_vm9, %v3229_v22, %v3233_v28  ;;  %v3244_v3 = vsel %vm5027_vm9, %v3239_v60, %v3243_v26  ;;  %v3589_v28 = vld [vmem:[#allocation3 + $0x74] sm:$0x1] }
 0x239   : > { %2467 = vst.msk [vmem:[#allocation2 + $0x64] sm:$0xf] %vm2441_vm2, %v2396_v45  ;;  %v3608_v45 = vld [vmem:[#allocation3 + $0xc0] sm:$0xe]  ;;  %v3436_v13 = vsel %vm5027_vm9, %v3431_v4, %v3435_v6  ;;  %v3716_v43 = vrot.slane %v3589_v28, 5 }
 0x23a   : > { %2906 = vrot.lane.b32.xlu1 %v2827_v7, %s4897_s25  ;;  %v4857_v20 = vld [vmem:[#allocation2 + $0x58] sm:$0xff]   ;;  %v2366_v21 = vpop.permute.xlu0 %2365  ;;  %v3609_v7 = vld [vmem:[#allocation3 + $0xc4] sm:$0xf] }
 0x23b   : > { %2452 = vst.msk [vmem:[#allocation2 + $0x28] sm:$0xf] %vm2441_vm2, %v2366_v21  ;;  %4795 = vmatmul.mubr.msk.bf16.gmra.mxu1 %vm4035_vm7, %v4857_v20  ;;  %v4643_v20 = vrot.slane %v3608_v45, 9  ;;  %v3717_v51 = vsel %vm5297_vm13, %v3715_v41, %v3716_v43 }
 0x23c   : > { %v2368_v36 = vpop.permute.xlu1 %2367  ;;  %2936 = vrot.lane.b32.xlu0 %v2842_v16, %s4897_s25  ;;  %v3762_v16 = vrot.slane %v3609_v7, 5 }
 0x23d   : > { %2453 = vst.msk [vmem:[#allocation2 + $0x2c] sm:$0xf] %vm2441_vm2, %v2368_v36 }
 0x23e   : > { %2938 = vrot.lane.b32.xlu1 %v2843_v23, %s4897_s25  ;;  %v2398_v46 = vpop.permute.xlu0 %2397  ;;  %v3764_v25 = vrot.slane %v3762_v16, 4  ;;  %v3763_v32 = vsel %vm5297_vm13, %v4643_v20, %v3762_v16 }
 0x23f   : > { %2468 = vst.msk [vmem:[#allocation2 + $0x68] sm:$0xf] %vm2441_vm2, %v2398_v46  ;;  %v3613_v46 = vld [vmem:[#allocation3 + $0xd4] sm:$0x1] }
 0x240   : > { %v2400_v54 = vpop.permute.xlu1 %2399  ;;  %3461 = vrot.lane.b32.xlu0 %v3210_v39, %s4898_s26  ;;  %v3611_v39 = vld [vmem:[#allocation3 + $0xcc] sm:$0xe]  ;;  %v3766_v40 = vsel %vm5297_vm13, %v3764_v25, %v3765_v27  ;;  %v3772_v52 = vrot.slane %v3613_v46, 5 }
 0x241   : > { %2469 = vst.msk [vmem:[#allocation2 + $0x6c] sm:$0xf] %vm2441_vm2, %v2400_v54  ;;  %v4644_v5 = vrot.slane %v3611_v39, 9  ;;  %v6223_v39 = vld [vmem:[%s6360_s2] ss:$0 sm:$0xff] }
 0x242   : > { %3463 = vrot.lane.b32.xlu1 %v3220_v47, %s4898_s26  ;;  %v2699_v58 = vpop.permute.xlu0 %2698  ;;  %v3714_v47 = vsel %vm5297_vm13, %v4636_v33, %v3713_v37 }
 0x243   : > { %2787 = vst.msk [vmem:[#allocation2 + $0x20] sm:$0xf] %vm2778_vm3, %v2699_v58  ;;  %v3770_v54 = vsel %vm5297_vm13, %v4644_v5, %v3769_v44 }
 0x244   : > { %v2701_v61 = vpop.permute.xlu1 %2700  ;;  %3493 = vrot.lane.b32.xlu0 %v3402_v56, %s4898_s26  ;;  %v3773_v56 = vsel %vm5297_vm13, %v3771_v38, %v3772_v52 }
 0x245   : > { %2788 = vst.msk [vmem:[#allocation2 + $0x24] sm:$0xf] %vm2778_vm3, %v2701_v61 }
 0x246   : > { %3495 = vrot.lane.b32.xlu1 %v3412_v59, %s4898_s26  ;;  %v2731_v1 = vpop.permute.xlu0 %2730 }
 0x247   : > { %2803 = vst.msk [vmem:[#allocation2 + $0x60] sm:$0xf] %vm2778_vm3, %v2731_v1 }
 0x248   : > { %v2733_v9 = vpop.permute.xlu1 %2732  ;;  %3465 = vrot.lane.b32.xlu0 %v3234_v62, %s4898_s26 }
 0x249   : > { %2804 = vst.msk [vmem:[#allocation2 + $0x64] sm:$0xf] %vm2778_vm3, %v2733_v9 }
 0x24a   : > { %3467 = vrot.lane.b32.xlu1 %v3244_v3, %s4898_s26  ;;  %v2703_v12 = vpop.permute.xlu0 %2702 }
 0x24b   : > { %2789 = vst.msk [vmem:[#allocation2 + $0x28] sm:$0xf] %vm2778_vm3, %v2703_v12 }
 0x24c   : > { %v2705_v17 = vpop.permute.xlu1 %2704  ;;  %3497 = vrot.lane.b32.xlu0 %v3426_v11, %s4898_s26 }
 0x24d   : > { %2790 = vst.msk [vmem:[#allocation2 + $0x2c] sm:$0xf] %vm2778_vm3, %v2705_v17 }
 0x24e   : > { %3499 = vrot.lane.b32.xlu1 %v3436_v13, %s4898_s26  ;;  %v2735_v21 = vpop.permute.xlu0 %2734 }
 0x24f   : > { %2805 = vst.msk [vmem:[#allocation2 + $0x68] sm:$0xf] %vm2778_vm3, %v2735_v21 }
 0x250   : > { %v2737_v23 = vpop.permute.xlu1 %2736  ;;  %3798 = vrot.lane.b32.xlu0 %v3707_v49, %s4899_s4 }
 0x251   : > { %2806 = vst.msk [vmem:[#allocation2 + $0x6c] sm:$0xf] %vm2778_vm3, %v2737_v23 }
 0x252   : > { %3800 = vrot.lane.b32.xlu1 %v3710_v34, %s4899_s4  ;;  %v2893_v36 = vpop.permute.xlu0 %2892 }
 0x253   : > { %2981 = vst.msk [vmem:[#allocation2 + $0x20] sm:$0xf] %vm2972_vm4, %v2893_v36 }
 0x254   : > { %v2895_v35 = vpop.permute.xlu1 %2894  ;;  %3830 = vrot.lane.b32.xlu0 %v3763_v32, %s4899_s4 }
 0x255   : > { %2982 = vst.msk [vmem:[#allocation2 + $0x24] sm:$0xf] %vm2972_vm4, %v2895_v35 }
 0x256   : > { %3832 = vrot.lane.b32.xlu1 %v3766_v40, %s4899_s4  ;;  %v2925_v48 = vpop.permute.xlu0 %2924 }
 0x257   : > { %2997 = vst.msk [vmem:[#allocation2 + $0x60] sm:$0xf] %vm2972_vm4, %v2925_v48 }
 0x258   : > { %v2927_v53 = vpop.permute.xlu1 %2926  ;;  %3802 = vrot.lane.b32.xlu0 %v3714_v47, %s4899_s4 }
 0x259   : > { %2998 = vst.msk [vmem:[#allocation2 + $0x64] sm:$0xf] %vm2972_vm4, %v2927_v53 }
 0x25a   : > { %3804 = vrot.lane.b32.xlu1 %v3717_v51, %s4899_s4  ;;  %v2897_v55 = vpop.permute.xlu0 %2896 }
 0x25b   : > { %2983 = vst.msk [vmem:[#allocation2 + $0x28] sm:$0xf] %vm2972_vm4, %v2897_v55 }
 0x25c   : > { %v2899_v22 = vpop.permute.xlu1 %2898  ;;  %3834 = vrot.lane.b32.xlu0 %v3770_v54, %s4899_s4 }
 0x25d   : > { %2984 = vst.msk [vmem:[#allocation2 + $0x2c] sm:$0xf] %vm2972_vm4, %v2899_v22 }
 0x25e   : > { %3836 = vrot.lane.b32.xlu1 %v3773_v56, %s4899_s4  ;;  %v2929_v57 = vpop.permute.xlu0 %2928 }
 0x25f   : > { %2999 = vst.msk [vmem:[#allocation2 + $0x68] sm:$0xf] %vm2972_vm4, %v2929_v57 }
 0x260   : > { %v2931_v58 = vpop.permute.xlu1 %2930 }
 0x261   : > { %3000 = vst.msk [vmem:[#allocation2 + $0x6c] sm:$0xf] %vm2972_vm4, %v2931_v58 }
 0x262   : > { %v3454_v59 = vpop.permute.xlu0 %3453 }
 0x263   : > { %3542 = vst.msk [vmem:[#allocation2 + $0x20] sm:$0xf] %vm3533_vm5, %v3454_v59 }
 0x264   : > { %v3456_v60 = vpop.permute.xlu1 %3455 }
 0x265   : > { %3543 = vst.msk [vmem:[#allocation2 + $0x24] sm:$0xf] %vm3533_vm5, %v3456_v60 }
 0x266   : > { %v3486_v29 = vpop.permute.xlu0 %3485 }
 0x267   : > { %3558 = vst.msk [vmem:[#allocation2 + $0x60] sm:$0xf] %vm3533_vm5, %v3486_v29 }
 0x268   : > { %v3488_v26 = vpop.permute.xlu1 %3487 }
 0x269   : > { %3559 = vst.msk [vmem:[#allocation2 + $0x64] sm:$0xf] %vm3533_vm5, %v3488_v26 }
 0x26a   : > { %v3458_v30 = vpop.permute.xlu0 %3457 }
 0x26b   : > { %3544 = vst.msk [vmem:[#allocation2 + $0x28] sm:$0xf] %vm3533_vm5, %v3458_v30 }
 0x26c   : > { %v3460_v50 = vpop.permute.xlu1 %3459 }
 0x26d   : > { %3545 = vst.msk [vmem:[#allocation2 + $0x2c] sm:$0xf] %vm3533_vm5, %v3460_v50 }
 0x26e   : > { %v3490_v61 = vpop.permute.xlu0 %3489 }
 0x26f   : > { %3560 = vst.msk [vmem:[#allocation2 + $0x68] sm:$0xf] %vm3533_vm5, %v3490_v61 }
 0x270   : > { %v3492_v42 = vpop.permute.xlu1 %3491 }
 0x271   : > { %3561 = vst.msk [vmem:[#allocation2 + $0x6c] sm:$0xf] %vm3533_vm5, %v3492_v42 }
 0x272   : > { %v3791_v62 = vpop.permute.xlu0 %3790 }
 0x273   : > { %3879 = vst.msk [vmem:[#allocation2 + $0x20] sm:$0xf] %vm3870_vm6, %v3791_v62 }
 0x274   : > { %v3793_v0 = vpop.permute.xlu1 %3792 }
 0x275   : > { %3880 = vst.msk [vmem:[#allocation2 + $0x24] sm:$0xf] %vm3870_vm6, %v3793_v0 }
 0x276   : > { %v3823_v1 = vpop.permute.xlu0 %3822 }
 0x277   : > { %3895 = vst.msk [vmem:[#allocation2 + $0x60] sm:$0xf] %vm3870_vm6, %v3823_v1 }
 0x278   : > { %v3825_v2 = vpop.permute.xlu1 %3824 }
 0x279   : > { %3896 = vst.msk [vmem:[#allocation2 + $0x64] sm:$0xf] %vm3870_vm6, %v3825_v2 }
 0x27a   : > { %v3795_v3 = vpop.permute.xlu0 %3794 }
 0x27b   : > { %3881 = vst.msk [vmem:[#allocation2 + $0x28] sm:$0xf] %vm3870_vm6, %v3795_v3 }
 0x27c   : > { %v3797_v4 = vpop.permute.xlu1 %3796  ;;  %v4858_v6 = vld [vmem:[#allocation2 + $0x20] sm:$0xff]  }
 0x27d   : > { %3882 = vst.msk [vmem:[#allocation2 + $0x2c] sm:$0xf] %vm3870_vm6, %v3797_v4  ;;  %4782 = vmatprep.mubr.msk.bf16.mxu0 %vm4035_vm7, %v4858_v6 }
 0x27e   : > { %v3827_v8 = vpop.permute.xlu0 %3826 }
 0x27f   : > { %3897 = vst.msk [vmem:[#allocation2 + $0x68] sm:$0xf] %vm3870_vm6, %v3827_v8 }
 0x280   : > { %v3829_v9 = vpop.permute.xlu1 %3828  ;;  %v4859_v10 = vld [vmem:[#allocation2 + $0x60] sm:$0xff]  }
 0x281   : > { %3898 = vst.msk [vmem:[#allocation2 + $0x6c] sm:$0xf] %vm3870_vm6, %v3829_v9  ;;  %4798 = vmatprep.mubr.msk.bf16.mxu1 %vm4035_vm7, %v4859_v10 }
 0x282   : > { %v2370_v7 = vpop.permute.xlu0 %2369 }
 0x283   : > { %2454 = vst.msk [vmem:[#allocation2 + $0x30] sm:$0xf] %vm2441_vm2, %v2370_v7 }
 0x284   : > { %v2372_v11 = vpop.permute.xlu1 %2371  ;;  %v4860_v63 = vld [vmem:[#allocation2 + $0x28] sm:$0xff]  }
 0x285   : > { %2455 = vst.msk [vmem:[#allocation2 + $0x34] sm:$0xf] %vm2441_vm2, %v2372_v11  ;;  %4783 = vmatmul.mubr.msk.bf16.gmra.mxu0 %vm4035_vm7, %v4860_v63 }
 0x286   : > { %v2402_v12 = vpop.permute.xlu0 %2401 }
 0x287   : > { %2470 = vst.msk [vmem:[#allocation2 + $0x70] sm:$0xf] %vm2441_vm2, %v2402_v12 }
 0x288   : > { %v2404_v45 = vpop.permute.xlu1 %2403  ;;  %v4861_v13 = vld [vmem:[#allocation2 + $0x68] sm:$0xff]  }
 0x289   : > { %2471 = vst.msk [vmem:[#allocation2 + $0x74] sm:$0xf] %vm2441_vm2, %v2404_v45  ;;  %4799 = vmatmul.mubr.msk.bf16.gmra.mxu1 %vm4035_vm7, %v4861_v13 }
 0x28a   : > { %v2374_v14 = vpop.permute.xlu0 %2373 }
 0x28b   : > { %2456 = vst.msk [vmem:[#allocation2 + $0x38] sm:$0xf] %vm2441_vm2, %v2374_v14 }
 0x28c   : > { %v2376_v15 = vpop.permute.xlu1 %2375 }
 0x28d   : > { %2457 = vst.msk [vmem:[#allocation2 + $0x3c] sm:$0xf] %vm2441_vm2, %v2376_v15 }
 0x28e   : > { %v2406_v16 = vpop.permute.xlu0 %2405 }
 0x28f   : > { %2472 = vst.msk [vmem:[#allocation2 + $0x78] sm:$0xf] %vm2441_vm2, %v2406_v16 }
 0x290   : > { %v2408_v17 = vpop.permute.xlu1 %2407 }
 0x291   : > { %2473 = vst.msk [vmem:[#allocation2 + $0x7c] sm:$0xf] %vm2441_vm2, %v2408_v17 }
 0x292   : > { %v2707_v18 = vpop.permute.xlu0 %2706 }
 0x293   : > { %2791 = vst.msk [vmem:[#allocation2 + $0x30] sm:$0xf] %vm2778_vm3, %v2707_v18 }
 0x294   : > { %v2709_v19 = vpop.permute.xlu1 %2708 }
 0x295   : > { %2792 = vst.msk [vmem:[#allocation2 + $0x34] sm:$0xf] %vm2778_vm3, %v2709_v19 }
 0x296   : > { %v2739_v49 = vpop.permute.xlu0 %2738 }
 0x297   : > { %2807 = vst.msk [vmem:[#allocation2 + $0x70] sm:$0xf] %vm2778_vm3, %v2739_v49 }
 0x298   : > { %v2741_v20 = vpop.permute.xlu1 %2740 }
 0x299   : > { %2808 = vst.msk [vmem:[#allocation2 + $0x74] sm:$0xf] %vm2778_vm3, %v2741_v20 }
 0x29a   : > { %v2711_v21 = vpop.permute.xlu0 %2710 }
 0x29b   : > { %2793 = vst.msk [vmem:[#allocation2 + $0x38] sm:$0xf] %vm2778_vm3, %v2711_v21 }
 0x29c   : > { %v2713_v24 = vpop.permute.xlu1 %2712 }
 0x29d   : > { %2794 = vst.msk [vmem:[#allocation2 + $0x3c] sm:$0xf] %vm2778_vm3, %v2713_v24 }
 0x29e   : > { %v2743_v34 = vpop.permute.xlu0 %2742 }
 0x29f   : > { %2809 = vst.msk [vmem:[#allocation2 + $0x78] sm:$0xf] %vm2778_vm3, %v2743_v34 }
 0x2a0   : > { %v2745_v25 = vpop.permute.xlu1 %2744 }
 0x2a1   : > { %2810 = vst.msk [vmem:[#allocation2 + $0x7c] sm:$0xf] %vm2778_vm3, %v2745_v25 }
 0x2a2   : > { %v2901_v27 = vpop.permute.xlu0 %2900 }
 0x2a3   : > { %2985 = vst.msk [vmem:[#allocation2 + $0x30] sm:$0xf] %vm2972_vm4, %v2901_v27 }
 0x2a4   : > { %v2903_v37 = vpop.permute.xlu1 %2902 }
 0x2a5   : > { %2986 = vst.msk [vmem:[#allocation2 + $0x34] sm:$0xf] %vm2972_vm4, %v2903_v37 }
 0x2a6   : > { %v2933_v23 = vpop.permute.xlu0 %2932 }
 0x2a7   : > { %3001 = vst.msk [vmem:[#allocation2 + $0x70] sm:$0xf] %vm2972_vm4, %v2933_v23 }
 0x2a8   : > { %v2935_v28 = vpop.permute.xlu1 %2934 }
 0x2a9   : > { %3002 = vst.msk [vmem:[#allocation2 + $0x74] sm:$0xf] %vm2972_vm4, %v2935_v28 }
 0x2aa   : > { %v2905_v31 = vpop.permute.xlu0 %2904 }
 0x2ab   : > { %2987 = vst.msk [vmem:[#allocation2 + $0x38] sm:$0xf] %vm2972_vm4, %v2905_v31 }
 0x2ac   : > { %v2907_v32 = vpop.permute.xlu1 %2906 }
 0x2ad   : > { %2988 = vst.msk [vmem:[#allocation2 + $0x3c] sm:$0xf] %vm2972_vm4, %v2907_v32 }
 0x2ae   : > { %v2937_v33 = vpop.permute.xlu0 %2936 }
 0x2af   : > { %3003 = vst.msk [vmem:[#allocation2 + $0x78] sm:$0xf] %vm2972_vm4, %v2937_v33  ;;  %v4776_v36 = vpop.f32.mrf.mxu0 }
 0x2b0   : > { %v2939_v40 = vpop.permute.xlu1 %2938  ;;  %v4251_v41 = vmul.f32 0.16666667, %v4776_v36 }
 0x2b1   : > { %3004 = vst.msk [vmem:[#allocation2 + $0x7c] sm:$0xf] %vm2972_vm4, %v2939_v40  ;;  %v4122_v43 = vpop.f32.mrf.mxu0 }
 0x2b2   : > { %v3462_v44 = vpop.permute.xlu0 %3461  ;;  %v4290_v35 = vadd.f32 %v6223_v39, %v4251_v41  ;;  %v4249_v46 = vmul.f32 0.16666667, %v4122_v43 }
 0x2b3   : > { %3546 = vst.msk [vmem:[#allocation2 + $0x30] sm:$0xf] %vm3533_vm5, %v3462_v44  ;;  %v4777_v47 = vpop.f32.mrf.mxu0  ;;  %v4792_v5 = vpop.f32.mrf.mxu1 }
 0x2b4   : > { %v4719_v48 = vpack.c.bf16 %v4290_v35, %v4290_v35  ;;  %v4288_v51 = vadd.f32 %v6223_v39, %v4249_v46  ;;  %v4252_v38 = vmul.f32 0.16666667, %v4777_v47  ;;  %v4267_v52 = vmul.f32 0.16666667, %v4792_v5  ;;  %v3464_v53 = vpop.permute.xlu1 %3463 }
 0x2b5   : > { %3547 = vst.msk [vmem:[#allocation2 + $0x34] sm:$0xf] %vm3533_vm5, %v3464_v53  ;;  %v4125_v54 = vpop.f32.mrf.mxu0  ;;  %v4186_v55 = vpop.f32.mrf.mxu1 }
 0x2b6   : > { %4451 = vst.msk [vmem:[%s6233_s11 + $0x8] sm:$0xf] %vm4448_vm8, %v4719_v48  ;;  %v4717_v56 = vpack.c.bf16 %v4288_v51, %v4288_v51  ;;  %v4291_v22 = vadd.f32 %v6223_v39, %v4252_v38  ;;  %v4306_v57 = vadd.f32 %v6223_v39, %v4267_v52  ;;  %v4250_v58 = vmul.f32 0.16666667, %v4125_v54  ;;  %v3494_v59 = vpop.permute.xlu0 %3493 }
 0x2b7   : > { %v4265_v60 = vmul.f32 0.16666667, %v4186_v55  ;;  %v4793_v29 = vpop.f32.mrf.mxu1  ;;  %3562 = vst.msk [vmem:[#allocation2 + $0x70] sm:$0xf] %vm3533_vm5, %v3494_v59 }
 0x2b8   : > { %4449 = vst.msk [vmem:[%s6233_s11] sm:$0xf] %vm4448_vm8, %v4717_v56  ;;  %v4720_v26 = vpack.c.bf16 %v4291_v22, %v4291_v22  ;;  %v4735_v30 = vpack.c.bf16 %v4306_v57, %v4306_v57  ;;  %v4289_v50 = vadd.f32 %v6223_v39, %v4250_v58  ;;  %v4268_v61 = vmul.f32 0.16666667, %v4793_v29  ;;  %v3496_v42 = vpop.permute.xlu1 %3495 }
 0x2b9   : > { %v4304_v62 = vadd.f32 %v6223_v39, %v4265_v60  ;;  %3563 = vst.msk [vmem:[#allocation2 + $0x74] sm:$0xf] %vm3533_vm5, %v3496_v42  ;;  %v4189_v0 = vpop.f32.mrf.mxu1 }
 0x2ba   : > { %4452 = vst.msk [vmem:[%s6233_s11 + $0xc] sm:$0xf] %vm4448_vm8, %v4720_v26  ;;  %4467 = vst.msk [vmem:[%s6233_s11 + $0x48] sm:$0xf] %vm4448_vm8, %v4735_v30  ;;  %v4718_v1 = vpack.c.bf16 %v4289_v50, %v4289_v50  ;;  %v4307_v2 = vadd.f32 %v6223_v39, %v4268_v61  ;;  %v4266_v3 = vmul.f32 0.16666667, %v4189_v0  ;;  %v3466_v4 = vpop.permute.xlu0 %3465 }
 0x2bb   : > { %v4733_v6 = vpack.c.bf16 %v4304_v62, %v4304_v62  ;;  %3548 = vst.msk [vmem:[#allocation2 + $0x38] sm:$0xf] %vm3533_vm5, %v3466_v4 }
 0x2bc   : > { %4450 = vst.msk [vmem:[%s6233_s11 + $0x4] sm:$0xf] %vm4448_vm8, %v4718_v1  ;;  %v4736_v8 = vpack.c.bf16 %v4307_v2, %v4307_v2  ;;  %v4305_v9 = vadd.f32 %v6223_v39, %v4266_v3  ;;  %v3468_v10 = vpop.permute.xlu1 %3467 }
 0x2bd   : > { %4465 = vst.msk [vmem:[%s6233_s11 + $0x40] sm:$0xf] %vm4448_vm8, %v4733_v6 }
 0x2be   : > { %3549 = vst.msk [vmem:[#allocation2 + $0x3c] sm:$0xf] %vm3533_vm5, %v3468_v10  ;;  %v4734_v7 = vpack.c.bf16 %v4305_v9, %v4305_v9  ;;  %v3498_v11 = vpop.permute.xlu0 %3497 }
 0x2bf   : > { %4468 = vst.msk [vmem:[%s6233_s11 + $0x4c] sm:$0xf] %vm4448_vm8, %v4736_v8 }
 0x2c0   : > { %3564 = vst.msk [vmem:[#allocation2 + $0x78] sm:$0xf] %vm3533_vm5, %v3498_v11  ;;  %v3500_v63 = vpop.permute.xlu1 %3499 }
 0x2c1   : > { %4466 = vst.msk [vmem:[%s6233_s11 + $0x44] sm:$0xf] %vm4448_vm8, %v4734_v7 }
 0x2c2   : > { %3565 = vst.msk [vmem:[#allocation2 + $0x7c] sm:$0xf] %vm3533_vm5, %v3500_v63  ;;  %v3799_v12 = vpop.permute.xlu0 %3798 }
 0x2c3   : > { %3883 = vst.msk [vmem:[#allocation2 + $0x30] sm:$0xf] %vm3870_vm6, %v3799_v12 }
 0x2c4   : > { %v3801_v45 = vpop.permute.xlu1 %3800 }
 0x2c5   : > { %3884 = vst.msk [vmem:[#allocation2 + $0x34] sm:$0xf] %vm3870_vm6, %v3801_v45 }
 0x2c6   : > { %v3831_v13 = vpop.permute.xlu0 %3830 }
 0x2c7   : > { %3899 = vst.msk [vmem:[#allocation2 + $0x70] sm:$0xf] %vm3870_vm6, %v3831_v13 }
 0x2c8   : > { %v3833_v14 = vpop.permute.xlu1 %3832 }
 0x2c9   : > { %3900 = vst.msk [vmem:[#allocation2 + $0x74] sm:$0xf] %vm3870_vm6, %v3833_v14 }
 0x2ca   : > { %v3803_v15 = vpop.permute.xlu0 %3802 }
 0x2cb   : > { %3885 = vst.msk [vmem:[#allocation2 + $0x38] sm:$0xf] %vm3870_vm6, %v3803_v15 }
 0x2cc   : > { %v3805_v16 = vpop.permute.xlu1 %3804  ;;  %v4862_v17 = vld [vmem:[#allocation2 + $0x30] sm:$0xff]  }
 0x2cd   : > { %3886 = vst.msk [vmem:[#allocation2 + $0x3c] sm:$0xf] %vm3870_vm6, %v3805_v16  ;;  %4786 = vmatprep.mubr.msk.bf16.mxu0 %vm4035_vm7, %v4862_v17 }
 0x2ce   : > { %v3835_v18 = vpop.permute.xlu0 %3834 }
 0x2cf   : > { %3901 = vst.msk [vmem:[#allocation2 + $0x78] sm:$0xf] %vm3870_vm6, %v3835_v18 }
 0x2d0   : > { %v3837_v19 = vpop.permute.xlu1 %3836  ;;  %v4863_v49 = vld [vmem:[#allocation2 + $0x70] sm:$0xff]  }
 0x2d1   : > { %3902 = vst.msk [vmem:[#allocation2 + $0x7c] sm:$0xf] %vm3870_vm6, %v3837_v19  ;;  %4802 = vmatprep.mubr.msk.bf16.mxu1 %vm4035_vm7, %v4863_v49 }
 0x2d4   : > { %v4864_v20 = vld [vmem:[#allocation2 + $0x38] sm:$0xff]  }
 0x2d5   : > { %4787 = vmatmul.mubr.msk.bf16.gmra.mxu0 %vm4035_vm7, %v4864_v20 }
 0x2d8   : > { %v4865_v21 = vld [vmem:[#allocation2 + $0x78] sm:$0xff]  }
 0x2d9   : > { %4803 = vmatmul.mubr.msk.bf16.gmra.mxu1 %vm4035_vm7, %v4865_v21 }
 0x2f7   : > { %v4780_v24 = vpop.f32.mrf.mxu0 }
 0x2f8   : > { %v4255_v34 = vmul.f32 0.16666667, %v4780_v24 }
 0x2f9   : > { %v4138_v25 = vpop.f32.mrf.mxu0 }
 0x2fa   : > { %v4294_v27 = vadd.f32 %v6223_v39, %v4255_v34  ;;  %v4253_v37 = vmul.f32 0.16666667, %v4138_v25 }
 0x2fb   : > { %v4781_v23 = vpop.f32.mrf.mxu0  ;;  %v4796_v28 = vpop.f32.mrf.mxu1 }
 0x2fc   : > { %v4723_v31 = vpack.c.bf16 %v4294_v27, %v4294_v27  ;;  %v4292_v32 = vadd.f32 %v6223_v39, %v4253_v37  ;;  %v4256_v33 = vmul.f32 0.16666667, %v4781_v23  ;;  %v4271_v36 = vmul.f32 0.16666667, %v4796_v28 }
 0x2fd   : > { %v4141_v40 = vpop.f32.mrf.mxu0  ;;  %v4202_v41 = vpop.f32.mrf.mxu1 }
 0x2fe   : > { %4455 = vst.msk [vmem:[%s6233_s11 + $0x18] sm:$0xf] %vm4448_vm8, %v4723_v31  ;;  %v4721_v43 = vpack.c.bf16 %v4292_v32, %v4292_v32  ;;  %v4295_v44 = vadd.f32 %v6223_v39, %v4256_v33  ;;  %v4310_v35 = vadd.f32 %v6223_v39, %v4271_v36  ;;  %v4254_v46 = vmul.f32 0.16666667, %v4141_v40 }
 0x2ff   : > { %v4269_v47 = vmul.f32 0.16666667, %v4202_v41  ;;  %v4797_v5 = vpop.f32.mrf.mxu1 }
 0x300   : > { %4453 = vst.msk [vmem:[%s6233_s11 + $0x10] sm:$0xf] %vm4448_vm8, %v4721_v43  ;;  %v4724_v48 = vpack.c.bf16 %v4295_v44, %v4295_v44  ;;  %v4739_v51 = vpack.c.bf16 %v4310_v35, %v4310_v35  ;;  %v4293_v38 = vadd.f32 %v6223_v39, %v4254_v46  ;;  %v4272_v52 = vmul.f32 0.16666667, %v4797_v5 }
 0x301   : > { %v4308_v53 = vadd.f32 %v6223_v39, %v4269_v47  ;;  %v4205_v54 = vpop.f32.mrf.mxu1 }
 0x302   : > { %4456 = vst.msk [vmem:[%s6233_s11 + $0x1c] sm:$0xf] %vm4448_vm8, %v4724_v48  ;;  %4471 = vst.msk [vmem:[%s6233_s11 + $0x58] sm:$0xf] %vm4448_vm8, %v4739_v51  ;;  %v4722_v55 = vpack.c.bf16 %v4293_v38, %v4293_v38  ;;  %v4311_v56 = vadd.f32 %v6223_v39, %v4272_v52  ;;  %v4270_v22 = vmul.f32 0.16666667, %v4205_v54 }
 0x303   : > { %v4737_v57 = vpack.c.bf16 %v4308_v53, %v4308_v53 }
 0x304   : > { %4454 = vst.msk [vmem:[%s6233_s11 + $0x14] sm:$0xf] %vm4448_vm8, %v4722_v55  ;;  %v4740_v58 = vpack.c.bf16 %v4311_v56, %v4311_v56  ;;  %v4309_v59 = vadd.f32 %v6223_v39, %v4270_v22 }
 0x305   : > { %4469 = vst.msk [vmem:[%s6233_s11 + $0x50] sm:$0xf] %vm4448_vm8, %v4737_v57 }
 0x306   : > { %4472 = vst.msk [vmem:[%s6233_s11 + $0x5c] sm:$0xf] %vm4448_vm8, %v4740_v58  ;;  %v4738_v60 = vpack.c.bf16 %v4309_v59, %v4309_v59 }
 0x308   : > { %4470 = vst.msk [vmem:[%s6233_s11 + $0x54] sm:$0xf] %vm4448_vm8, %v4738_v60 }
 0x345   : > { %v4784_v29 = vpop.f32.mrf.mxu0 }
 0x346   : > { %v4259_v26 = vmul.f32 0.16666667, %v4784_v29 }
 0x347   : > { %v4154_v30 = vpop.f32.mrf.mxu0 }
 0x348   : > { %v4298_v50 = vadd.f32 %v6223_v39, %v4259_v26  ;;  %v4257_v61 = vmul.f32 0.16666667, %v4154_v30 }
 0x349   : > { %v4785_v42 = vpop.f32.mrf.mxu0  ;;  %v4800_v62 = vpop.f32.mrf.mxu1 }
 0x34a   : > { %v4727_v0 = vpack.c.bf16 %v4298_v50, %v4298_v50  ;;  %v4296_v1 = vadd.f32 %v6223_v39, %v4257_v61  ;;  %v4260_v2 = vmul.f32 0.16666667, %v4785_v42  ;;  %v4275_v3 = vmul.f32 0.16666667, %v4800_v62 }
 0x34b   : > { %v4157_v4 = vpop.f32.mrf.mxu0  ;;  %v4218_v6 = vpop.f32.mrf.mxu1 }
 0x34c   : > { %4459 = vst.msk [vmem:[%s6233_s11 + $0x28] sm:$0xf] %vm4448_vm8, %v4727_v0  ;;  %v4725_v8 = vpack.c.bf16 %v4296_v1, %v4296_v1  ;;  %v4299_v9 = vadd.f32 %v6223_v39, %v4260_v2  ;;  %v4314_v10 = vadd.f32 %v6223_v39, %v4275_v3  ;;  %v4258_v7 = vmul.f32 0.16666667, %v4157_v4 }
 0x34d   : > { %v4273_v11 = vmul.f32 0.16666667, %v4218_v6  ;;  %v4801_v63 = vpop.f32.mrf.mxu1 }
 0x34e   : > { %4457 = vst.msk [vmem:[%s6233_s11 + $0x20] sm:$0xf] %vm4448_vm8, %v4725_v8  ;;  %v4728_v12 = vpack.c.bf16 %v4299_v9, %v4299_v9  ;;  %v4743_v45 = vpack.c.bf16 %v4314_v10, %v4314_v10  ;;  %v4297_v13 = vadd.f32 %v6223_v39, %v4258_v7  ;;  %v4276_v14 = vmul.f32 0.16666667, %v4801_v63 }
 0x34f   : > { %v4312_v15 = vadd.f32 %v6223_v39, %v4273_v11  ;;  %v4221_v16 = vpop.f32.mrf.mxu1 }
 0x350   : > { %4460 = vst.msk [vmem:[%s6233_s11 + $0x2c] sm:$0xf] %vm4448_vm8, %v4728_v12  ;;  %4475 = vst.msk [vmem:[%s6233_s11 + $0x68] sm:$0xf] %vm4448_vm8, %v4743_v45  ;;  %v4726_v17 = vpack.c.bf16 %v4297_v13, %v4297_v13  ;;  %v4315_v18 = vadd.f32 %v6223_v39, %v4276_v14  ;;  %v4274_v19 = vmul.f32 0.16666667, %v4221_v16 }
 0x351   : > { %v4741_v49 = vpack.c.bf16 %v4312_v15, %v4312_v15 }
 0x352   : > { %4458 = vst.msk [vmem:[%s6233_s11 + $0x24] sm:$0xf] %vm4448_vm8, %v4726_v17  ;;  %v4744_v20 = vpack.c.bf16 %v4315_v18, %v4315_v18  ;;  %v4313_v21 = vadd.f32 %v6223_v39, %v4274_v19 }
 0x353   : > { %4473 = vst.msk [vmem:[%s6233_s11 + $0x60] sm:$0xf] %vm4448_vm8, %v4741_v49 }
 0x354   : > { %4476 = vst.msk [vmem:[%s6233_s11 + $0x6c] sm:$0xf] %vm4448_vm8, %v4744_v20  ;;  %v4742_v24 = vpack.c.bf16 %v4313_v21, %v4313_v21 }
 0x356   : > { %4474 = vst.msk [vmem:[%s6233_s11 + $0x64] sm:$0xf] %vm4448_vm8, %v4742_v24 }
 0x395   : > { %v4788_v34 = vpop.f32.mrf.mxu0 }
 0x396   : > { %v4263_v25 = vmul.f32 0.16666667, %v4788_v34 }
 0x397   : > { %v4170_v27 = vpop.f32.mrf.mxu0 }
 0x398   : > { %v4302_v37 = vadd.f32 %v6223_v39, %v4263_v25  ;;  %v4261_v23 = vmul.f32 0.16666667, %v4170_v27 }
 0x399   : > { %v4789_v28 = vpop.f32.mrf.mxu0  ;;  %v4804_v31 = vpop.f32.mrf.mxu1 }
 0x39a   : > { %v4731_v32 = vpack.c.bf16 %v4302_v37, %v4302_v37  ;;  %v4300_v33 = vadd.f32 %v6223_v39, %v4261_v23  ;;  %v4264_v36 = vmul.f32 0.16666667, %v4789_v28  ;;  %v4279_v40 = vmul.f32 0.16666667, %v4804_v31 }
 0x39b   : > { %v4173_v41 = vpop.f32.mrf.mxu0  ;;  %v4234_v43 = vpop.f32.mrf.mxu1 }
 0x39c   : > { %4463 = vst.msk [vmem:[%s6233_s11 + $0x38] sm:$0xf] %vm4448_vm8, %v4731_v32  ;;  %v4729_v44 = vpack.c.bf16 %v4300_v33, %v4300_v33  ;;  %v4303_v35 = vadd.f32 %v6223_v39, %v4264_v36  ;;  %v4318_v46 = vadd.f32 %v6223_v39, %v4279_v40  ;;  %v4262_v47 = vmul.f32 0.16666667, %v4173_v41 }
 0x39d   : > { %v4277_v5 = vmul.f32 0.16666667, %v4234_v43  ;;  %v4805_v48 = vpop.f32.mrf.mxu1 }
 0x39e   : > { %4461 = vst.msk [vmem:[%s6233_s11 + $0x30] sm:$0xf] %vm4448_vm8, %v4729_v44  ;;  %v4732_v51 = vpack.c.bf16 %v4303_v35, %v4303_v35  ;;  %v4747_v38 = vpack.c.bf16 %v4318_v46, %v4318_v46  ;;  %v4301_v52 = vadd.f32 %v6223_v39, %v4262_v47  ;;  %v4280_v53 = vmul.f32 0.16666667, %v4805_v48 }
 0x39f   : > { %v4316_v54 = vadd.f32 %v6223_v39, %v4277_v5  ;;  %v4237_v55 = vpop.f32.mrf.mxu1 }
 0x3a0   : > { %4464 = vst.msk [vmem:[%s6233_s11 + $0x3c] sm:$0xf] %vm4448_vm8, %v4732_v51  ;;  %4479 = vst.msk [vmem:[%s6233_s11 + $0x78] sm:$0xf] %vm4448_vm8, %v4747_v38  ;;  %v4730_v56 = vpack.c.bf16 %v4301_v52, %v4301_v52  ;;  %v4319_v22 = vadd.f32 %v6223_v39, %v4280_v53  ;;  %v4278_v57 = vmul.f32 0.16666667, %v4237_v55 }
 0x3a1   : > { %v4745_v58 = vpack.c.bf16 %v4316_v54, %v4316_v54 }
 0x3a2   : > { %4462 = vst.msk [vmem:[%s6233_s11 + $0x34] sm:$0xf] %vm4448_vm8, %v4730_v56  ;;  %v4748_v59 = vpack.c.bf16 %v4319_v22, %v4319_v22  ;;  %v4317_v60 = vadd.f32 %v6223_v39, %v4278_v57 }
 0x3a3   : > { %4477 = vst.msk [vmem:[%s6233_s11 + $0x70] sm:$0xf] %vm4448_vm8, %v4745_v58 }
 0x3a4   : > { %4480 = vst.msk [vmem:[%s6233_s11 + $0x7c] sm:$0xf] %vm4448_vm8, %v4748_v59  ;;  %v4746_v29 = vpack.c.bf16 %v4317_v60, %v4317_v60 }
 0x3a6   : > { %4478 = vst.msk [vmem:[%s6233_s11 + $0x74] sm:$0xf] %vm4448_vm8, %v4746_v29 }
 0x3a7 PF: > { %s13_s14 = sadd.s32 1, %s4889_s14   ;;  %s6372_s12 = smov %s4885_s13 }
 0x3a8   : > { %p10_p5 = scmp.ge.s32.totalorder %s13_s14, 4   ;;  %s6373_s13 = smov %s6375_s15 }
 0x3aa   :  { %12 = sbr.rel (!%p10_p5) target bundleno = 2 (0x2), region = 70 }

</bundles_post_ra>
